<compile_context>
chip_gen: v7x
topology: tpu7x:2x2x1
jax: 0.10.0
libtpu: 0.0.40
codegen_flags: <defaults>
</compile_context>

<pallas_src>
import jax
import jax.numpy as jnp
from jax import lax
from jax.experimental import pallas as pl
from jax.experimental.pallas import tpu as pltpu

# Hyperparameters from UpsampleLoss.__init__
ALPHA = 1.0          # unused in forward
NN_SIZE = 5
RADIUS = 0.07
H = 0.03
EPS = 1e-12

_CPAD = 8            # xyz (3) zero-padded to 8 for MXU / sublane alignment
_BIG = 1e30


def _pairwise_sqdist(a_nc, b_cn):
    """Squared distances. a_nc: (Na, C), b_cn: (C, Nb) -> (Na, Nb)."""
    ab = jnp.dot(a_nc, b_cn, preferred_element_type=jnp.float32)      # MXU
    a_sq = jnp.sum(a_nc * a_nc, axis=1, keepdims=True)                # (Na, 1)
    b_sq = jnp.sum(b_cn * b_cn, axis=0, keepdims=True)                # (1, Nb)
    return a_sq + b_sq - 2.0 * ab


def _loss_kernel(pf_nc_ref, pf_cn_ref, gf_cn_ref, ps_nc_ref, gs_cn_ref,
                 out_ref):
    pf_nc = pf_nc_ref[0]       # (Nf, C)  pred fullpoint, channels-last (lhs)
    pf_cn = pf_cn_ref[0]       # (C, Nf)  pred fullpoint, channels-first (rhs)
    gf_cn = gf_cn_ref[0]       # (C, Nf)  gt fullpoint, channels-first
    ps_nc = ps_nc_ref[0]       # (Ns, C)  pred skeleton, channels-last
    gs_cn = gs_cn_ref[0]       # (C, Ns)  gt skeleton, channels-first

    # ---- EMD (nearest-neighbour matching approximation) -------------------
    # TODO(synk): exact auction_match (iterative 1-to-1 assignment) has no
    # clean Pallas equivalent; approximated with per-point nearest neighbour.
    d_fg = _pairwise_sqdist(pf_nc, gf_cn)                        # (Nf, Nf)
    emd_sum = jnp.sum(
        jnp.maximum(jnp.min(d_fg, axis=1, keepdims=True), 0.0), keepdims=True)

    # ---- Chamfer distance on skeletons (both directions, same matrix) -----
    d_sk = _pairwise_sqdist(ps_nc, gs_cn)                        # (Ns, Ns)
    cd_for_sum = jnp.sum(
        jnp.maximum(jnp.min(d_sk, axis=1, keepdims=True), 0.0), keepdims=True)
    cd_bac_sum = jnp.sum(
        jnp.maximum(jnp.min(d_sk, axis=0, keepdims=True), 0.0), keepdims=True)

    # ---- Repulsion on pred fullpoint (k-1 = 4 nearest non-self NN) --------
    d_pp = _pairwise_sqdist(pf_nc, pf_cn)                        # (Nf, Nf)
    nf = d_pp.shape[0]
    row = lax.broadcasted_iota(jnp.int32, (nf, nf), 0)
    col = lax.broadcasted_iota(jnp.int32, (nf, nf), 1)
    d_cur = jnp.where(row == col, jnp.float32(_BIG), d_pp)       # drop self

    acc = jnp.zeros((nf, 1), jnp.float32)
    for _ in range(NN_SIZE - 1):                                 # static unroll
        m = jnp.min(d_cur, axis=1, keepdims=True)                # (Nf, 1)
        d2 = jnp.maximum(m, jnp.float32(EPS))
        dist = jnp.sqrt(d2)
        w = jnp.exp(-d2 * jnp.float32(1.0 / (H * H)))            # EUP
        acc = acc + (jnp.float32(RADIUS) - dist) * w
        # Mask current minimum (and exact ties) so the next iteration finds
        # the next-nearest neighbour.
        d_cur = jnp.where(d_cur <= m, jnp.float32(_BIG), d_cur)
    rep_sum = jnp.sum(acc, keepdims=True)                        # (1, 1)

    # ---- Emit per-batch partial sums on a lane-dense (1, 128) vector ------
    lane = lax.broadcasted_iota(jnp.int32, (1, 128), 1)
    vals = jnp.where(lane == 0, emd_sum,
           jnp.where(lane == 1, cd_for_sum,
           jnp.where(lane == 2, cd_bac_sum,
           jnp.where(lane == 3, rep_sum, 0.0))))
    out_ref[...] = vals[None]                                    # (1, 1, 128)


def _pad_channels(x, c=_CPAD):
    b, n, c0 = x.shape
    return jnp.concatenate([x, jnp.zeros((b, n, c - c0), x.dtype)], axis=-1)


def upsample_loss(pred_fullpoint, gt_fullpoint, pred_skeleton, gt_skeleton,
                  radius_data):
    B, Nf, C = pred_fullpoint.shape
    _, Ns, _ = pred_skeleton.shape

    # Zero-pad xyz -> 8 channels (distances unchanged) and build the
    # channels-first copies used as MXU rhs operands.
    pf_nc = _pad_channels(pred_fullpoint)                  # (B, Nf, 8)
    ps_nc = _pad_channels(pred_skeleton)                   # (B, Ns, 8)
    pf_cn = jnp.transpose(pf_nc, (0, 2, 1))                # (B, 8, Nf)
    gf_cn = jnp.transpose(_pad_channels(gt_fullpoint), (0, 2, 1))
    gs_cn = jnp.transpose(_pad_channels(gt_skeleton), (0, 2, 1))

    # TODO(synk): for production point counts (N >= 2K) the (N, N) distance
    # matrices should be streamed over column tiles with a running-min
    # accumulator (pl.when init/finalize) instead of materialized whole.
    sums = pl.pallas_call(
        _loss_kernel,
        out_shape=jax.ShapeDtypeStruct((B, 1, 128), jnp.float32),
        grid_spec=pltpu.PrefetchScalarGridSpec(
            num_scalar_prefetch=0,
            grid=(B,),
            in_specs=[
                pl.BlockSpec((1, Nf, _CPAD), lambda b: (b, 0, 0)),
                pl.BlockSpec((1, _CPAD, Nf), lambda b: (b, 0, 0)),
                pl.BlockSpec((1, _CPAD, Nf), lambda b: (b, 0, 0)),
                pl.BlockSpec((1, Ns, _CPAD), lambda b: (b, 0, 0)),
                pl.BlockSpec((1, _CPAD, Ns), lambda b: (b, 0, 0)),
            ],
            out_specs=pl.BlockSpec((1, 1, 128), lambda b: (b, 0, 0))),
        compiler_params=pltpu.CompilerParams(
            dimension_semantics=("parallel",)),
    )(pf_nc, pf_cn, gf_cn, ps_nc, gs_cn)

    sums = sums[:, 0, :]                                   # (B, 128)
    emd_sum = sums[:, 0:1]                                 # (B, 1)
    cd_for_sum = sums[:, 1]                                # (B,)
    cd_bac_sum = sums[:, 2]
    rep_sum = sums[:, 3]

    # EMD: per-batch mean over N*3 matched squared diffs, / radius, batch mean.
    dist2 = emd_sum / float(Nf * C)                        # (B, 1)
    dist2 = dist2 / radius_data                            # (B, 1)
    emd_loss = jnp.mean(dist2)

    # Chamfer: mean over (B, Ns) per direction.
    cd_loss = (jnp.mean(cd_for_sum) + jnp.mean(cd_bac_sum)) / float(Ns)

    # Repulsion: mean over (B, Nf, nn_size-1) neighbour terms.
    repulsion_loss = jnp.mean(rep_sum) / float(Nf * (NN_SIZE - 1))

    return emd_loss * 250.0, cd_loss * 25.0, repulsion_loss


if __name__ == "__main__":
    key = jax.random.PRNGKey(0)
    k1, k2, k3, k4 = jax.random.split(key, 4)

    B, N_FULL, N_SK = 2, 128, 64
    pred_fullpoint = jax.random.normal(k1, (B, N_FULL, 3), jnp.float32)
    gt_fullpoint = jax.random.normal(k2, (B, N_FULL, 3), jnp.float32)
    pred_skeleton = jax.random.normal(k3, (B, N_SK, 3), jnp.float32)
    gt_skeleton = jax.random.normal(k4, (B, N_SK, 3), jnp.float32)
    radius_data = jnp.ones((B, 1), jnp.float32)

    out = jax.jit(upsample_loss)(pred_fullpoint, gt_fullpoint,
                                 pred_skeleton, gt_skeleton, radius_data)
    jax.block_until_ready(out)
    print("KERNEL_OK")
</pallas_src>

<mosaic_0001>
module attributes {stable_mosaic.version = 11 : i64} {
  func.func @_loss_kernel(%arg0: i32, %arg1: memref<1x128x8xf32, #tpu.memory_space<vmem>>, %arg2: memref<1x8x128xf32, #tpu.memory_space<vmem>>, %arg3: memref<1x8x128xf32, #tpu.memory_space<vmem>>, %arg4: memref<1x64x8xf32, #tpu.memory_space<vmem>>, %arg5: memref<1x8x64xf32, #tpu.memory_space<vmem>>, %arg6: memref<1x1x128xf32, #tpu.memory_space<vmem>>) attributes {dimension_semantics = [#tpu.dimension_semantics<parallel>], iteration_bounds = array<i64: 2>, scalar_prefetch = 0 : i64, scratch_operands = 0 : i64, tpu.core_type = #tpu.core_type<tc>, window_params = [{transform_indices = @transform_0, window_bounds = array<i64: 1, 128, 8>}, {transform_indices = @transform_1, window_bounds = array<i64: 1, 8, 128>}, {transform_indices = @transform_2, window_bounds = array<i64: 1, 8, 128>}, {transform_indices = @transform_3, window_bounds = array<i64: 1, 64, 8>}, {transform_indices = @transform_4, window_bounds = array<i64: 1, 8, 64>}, {transform_indices = @transform_5, window_bounds = array<i64: 1, 1, 128>}]} {
    %c0 = arith.constant 0 : index
    %c0_0 = arith.constant 0 : index
    %c0_1 = arith.constant 0 : index
    %0 = vector.load %arg1[%c0, %c0_0, %c0_1] : memref<1x128x8xf32, #tpu.memory_space<vmem>>, vector<1x128x8xf32>
    %1 = vector.shape_cast %0 : vector<1x128x8xf32> to vector<128x8xf32>
    %c0_2 = arith.constant 0 : index
    %c0_3 = arith.constant 0 : index
    %c0_4 = arith.constant 0 : index
    %2 = vector.load %arg2[%c0_2, %c0_3, %c0_4] : memref<1x8x128xf32, #tpu.memory_space<vmem>>, vector<1x8x128xf32>
    %3 = vector.shape_cast %2 : vector<1x8x128xf32> to vector<8x128xf32>
    %c0_5 = arith.constant 0 : index
    %c0_6 = arith.constant 0 : index
    %c0_7 = arith.constant 0 : index
    %4 = vector.load %arg3[%c0_5, %c0_6, %c0_7] : memref<1x8x128xf32, #tpu.memory_space<vmem>>, vector<1x8x128xf32>
    %5 = vector.shape_cast %4 : vector<1x8x128xf32> to vector<8x128xf32>
    %c0_8 = arith.constant 0 : index
    %c0_9 = arith.constant 0 : index
    %c0_10 = arith.constant 0 : index
    %6 = vector.load %arg4[%c0_8, %c0_9, %c0_10] : memref<1x64x8xf32, #tpu.memory_space<vmem>>, vector<1x64x8xf32>
    %7 = vector.shape_cast %6 : vector<1x64x8xf32> to vector<64x8xf32>
    %c0_11 = arith.constant 0 : index
    %c0_12 = arith.constant 0 : index
    %c0_13 = arith.constant 0 : index
    %8 = vector.load %arg5[%c0_11, %c0_12, %c0_13] : memref<1x8x64xf32, #tpu.memory_space<vmem>>, vector<1x8x64xf32>
    %9 = vector.shape_cast %8 : vector<1x8x64xf32> to vector<8x64xf32>
    %cst = arith.constant dense<0.000000e+00> : vector<128x128xf32>
    %10 = tpu.matmul %1, %5, %cst {dimension_numbers = #tpu.dot_dimension_numbers<[1], [0], [0], [1], [0, 0, 1, 1], [], []>} : vector<128x8xf32>, vector<8x128xf32>, vector<128x128xf32> -> vector<128x128xf32>
    %11 = arith.mulf %1, %1 : vector<128x8xf32>
    %cst_14 = arith.constant dense<0.000000e+00> : vector<128xf32>
    %12 = vector.multi_reduction <add>, %11, %cst_14 [1] : vector<128x8xf32> to vector<128xf32>
    %13 = vector.shape_cast %12 : vector<128xf32> to vector<128x1xf32>
    %14 = arith.mulf %5, %5 : vector<8x128xf32>
    %cst_15 = arith.constant dense<0.000000e+00> : vector<128xf32>
    %15 = vector.multi_reduction <add>, %14, %cst_15 [0] : vector<8x128xf32> to vector<128xf32>
    %16 = vector.shape_cast %15 : vector<128xf32> to vector<1x128xf32>
    %17 = vector.broadcast %13 : vector<128x1xf32> to vector<128x128xf32>
    %18 = vector.broadcast %16 : vector<1x128xf32> to vector<128x128xf32>
    %19 = arith.addf %17, %18 : vector<128x128xf32>
    %cst_16 = arith.constant 2.000000e+00 : f32
    %20 = vector.broadcast %cst_16 : f32 to vector<128x128xf32>
    %21 = arith.mulf %20, %10 : vector<128x128xf32>
    %22 = arith.subf %19, %21 : vector<128x128xf32>
    %cst_17 = arith.constant dense<0x7F800000> : vector<128xf32>
    %23 = vector.multi_reduction <minimumf>, %22, %cst_17 [1] : vector<128x128xf32> to vector<128xf32>
    %24 = vector.shape_cast %23 : vector<128xf32> to vector<128x1xf32>
    %cst_18 = arith.constant 0.000000e+00 : f32
    %25 = vector.broadcast %cst_18 : f32 to vector<128x1xf32>
    %26 = arith.maximumf %24, %25 : vector<128x1xf32>
    %27 = vector.shape_cast %26 : vector<128x1xf32> to vector<1x128x1xf32>
    %cst_19 = arith.constant dense<0.000000e+00> : vector<1xf32>
    %28 = vector.multi_reduction <add>, %27, %cst_19 [1, 2] : vector<1x128x1xf32> to vector<1xf32>
    %29 = vector.shape_cast %28 : vector<1xf32> to vector<1x1x1xf32>
    %30 = vector.extract %29[0, 0, 0] : f32 from vector<1x1x1xf32>
    %31 = vector.broadcast %30 : f32 to vector<1x1xf32>
    %cst_20 = arith.constant dense<0.000000e+00> : vector<64x64xf32>
    %32 = tpu.matmul %7, %9, %cst_20 {dimension_numbers = #tpu.dot_dimension_numbers<[1], [0], [0], [1], [0, 0, 1, 1], [], []>} : vector<64x8xf32>, vector<8x64xf32>, vector<64x64xf32> -> vector<64x64xf32>
    %33 = arith.mulf %7, %7 : vector<64x8xf32>
    %cst_21 = arith.constant dense<0.000000e+00> : vector<64xf32>
    %34 = vector.multi_reduction <add>, %33, %cst_21 [1] : vector<64x8xf32> to vector<64xf32>
    %35 = vector.shape_cast %34 : vector<64xf32> to vector<64x1xf32>
    %36 = arith.mulf %9, %9 : vector<8x64xf32>
    %cst_22 = arith.constant dense<0.000000e+00> : vector<64xf32>
    %37 = vector.multi_reduction <add>, %36, %cst_22 [0] : vector<8x64xf32> to vector<64xf32>
    %38 = vector.shape_cast %37 : vector<64xf32> to vector<1x64xf32>
    %39 = vector.broadcast %35 : vector<64x1xf32> to vector<64x64xf32>
    %40 = vector.broadcast %38 : vector<1x64xf32> to vector<64x64xf32>
    %41 = arith.addf %39, %40 : vector<64x64xf32>
    %cst_23 = arith.constant 2.000000e+00 : f32
    %42 = vector.broadcast %cst_23 : f32 to vector<64x64xf32>
    %43 = arith.mulf %42, %32 : vector<64x64xf32>
    %44 = arith.subf %41, %43 : vector<64x64xf32>
    %cst_24 = arith.constant dense<0x7F800000> : vector<64xf32>
    %45 = vector.multi_reduction <minimumf>, %44, %cst_24 [1] : vector<64x64xf32> to vector<64xf32>
    %46 = vector.shape_cast %45 : vector<64xf32> to vector<64x1xf32>
    %cst_25 = arith.constant 0.000000e+00 : f32
    %47 = vector.broadcast %cst_25 : f32 to vector<64x1xf32>
    %48 = arith.maximumf %46, %47 : vector<64x1xf32>
    %49 = vector.shape_cast %48 : vector<64x1xf32> to vector<1x64x1xf32>
    %cst_26 = arith.constant dense<0.000000e+00> : vector<1xf32>
    %50 = vector.multi_reduction <add>, %49, %cst_26 [1, 2] : vector<1x64x1xf32> to vector<1xf32>
    %51 = vector.shape_cast %50 : vector<1xf32> to vector<1x1x1xf32>
    %52 = vector.extract %51[0, 0, 0] : f32 from vector<1x1x1xf32>
    %53 = vector.broadcast %52 : f32 to vector<1x1xf32>
    %cst_27 = arith.constant dense<0x7F800000> : vector<64xf32>
    %54 = vector.multi_reduction <minimumf>, %44, %cst_27 [0] : vector<64x64xf32> to vector<64xf32>
    %55 = vector.shape_cast %54 : vector<64xf32> to vector<1x64xf32>
    %cst_28 = arith.constant 0.000000e+00 : f32
    %56 = vector.broadcast %cst_28 : f32 to vector<1x64xf32>
    %57 = arith.maximumf %55, %56 : vector<1x64xf32>
    %58 = vector.shape_cast %57 : vector<1x64xf32> to vector<1x1x64xf32>
    %cst_29 = arith.constant dense<0.000000e+00> : vector<1xf32>
    %59 = vector.multi_reduction <add>, %58, %cst_29 [1, 2] : vector<1x1x64xf32> to vector<1xf32>
    %60 = vector.shape_cast %59 : vector<1xf32> to vector<1x1x1xf32>
    %61 = vector.extract %60[0, 0, 0] : f32 from vector<1x1x1xf32>
    %62 = vector.broadcast %61 : f32 to vector<1x1xf32>
    %cst_30 = arith.constant dense<0.000000e+00> : vector<128x128xf32>
    %63 = tpu.matmul %1, %3, %cst_30 {dimension_numbers = #tpu.dot_dimension_numbers<[1], [0], [0], [1], [0, 0, 1, 1], [], []>} : vector<128x8xf32>, vector<8x128xf32>, vector<128x128xf32> -> vector<128x128xf32>
    %64 = arith.mulf %1, %1 : vector<128x8xf32>
    %cst_31 = arith.constant dense<0.000000e+00> : vector<128xf32>
    %65 = vector.multi_reduction <add>, %64, %cst_31 [1] : vector<128x8xf32> to vector<128xf32>
    %66 = vector.shape_cast %65 : vector<128xf32> to vector<128x1xf32>
    %67 = arith.mulf %3, %3 : vector<8x128xf32>
    %cst_32 = arith.constant dense<0.000000e+00> : vector<128xf32>
    %68 = vector.multi_reduction <add>, %67, %cst_32 [0] : vector<8x128xf32> to vector<128xf32>
    %69 = vector.shape_cast %68 : vector<128xf32> to vector<1x128xf32>
    %70 = vector.broadcast %66 : vector<128x1xf32> to vector<128x128xf32>
    %71 = vector.broadcast %69 : vector<1x128xf32> to vector<128x128xf32>
    %72 = arith.addf %70, %71 : vector<128x128xf32>
    %cst_33 = arith.constant 2.000000e+00 : f32
    %73 = vector.broadcast %cst_33 : f32 to vector<128x128xf32>
    %74 = arith.mulf %73, %63 : vector<128x128xf32>
    %75 = arith.subf %72, %74 : vector<128x128xf32>
    %76 = tpu.iota {dimensions = array<i32: 0>} : vector<128x128xi32>
    %77 = tpu.iota {dimensions = array<i32: 1>} : vector<128x128xi32>
    %78 = arith.cmpi eq, %76, %77 : vector<128x128xi32>
    %cst_34 = arith.constant 1.000000e+30 : f32
    %79 = vector.broadcast %cst_34 : f32 to vector<128x128xf32>
    %80 = arith.select %78, %79, %75 : vector<128x128xi1>, vector<128x128xf32>
    %cst_35 = arith.constant 0.000000e+00 : f32
    %81 = vector.broadcast %cst_35 : f32 to vector<128x1xf32>
    %cst_36 = arith.constant dense<0x7F800000> : vector<128xf32>
    %82 = vector.multi_reduction <minimumf>, %80, %cst_36 [1] : vector<128x128xf32> to vector<128xf32>
    %83 = vector.shape_cast %82 : vector<128xf32> to vector<128x1xf32>
    %cst_37 = arith.constant 9.99999996E-13 : f32
    %84 = vector.broadcast %cst_37 : f32 to vector<128x1xf32>
    %85 = arith.maximumf %83, %84 : vector<128x1xf32>
    %86 = math.sqrt %85 : vector<128x1xf32>
    %cst_38 = arith.constant 0.000000e+00 : f32
    %87 = vector.broadcast %cst_38 : f32 to vector<128x1xf32>
    %88 = arith.subf %87, %85 : vector<128x1xf32>
    %cst_39 = arith.constant 1111.11108 : f32
    %89 = vector.broadcast %cst_39 : f32 to vector<128x1xf32>
    %90 = arith.mulf %88, %89 : vector<128x1xf32>
    %91 = math.exp %90 : vector<128x1xf32>
    %cst_40 = arith.constant 7.000000e-02 : f32
    %92 = vector.broadcast %cst_40 : f32 to vector<128x1xf32>
    %93 = arith.subf %92, %86 : vector<128x1xf32>
    %94 = arith.mulf %93, %91 : vector<128x1xf32>
    %95 = arith.addf %81, %94 : vector<128x1xf32>
    %96 = vector.broadcast %83 : vector<128x1xf32> to vector<128x128xf32>
    %97 = arith.cmpf ole, %80, %96 : vector<128x128xf32>
    %cst_41 = arith.constant 1.000000e+30 : f32
    %98 = vector.broadcast %cst_41 : f32 to vector<128x128xf32>
    %99 = arith.select %97, %98, %80 : vector<128x128xi1>, vector<128x128xf32>
    %cst_42 = arith.constant dense<0x7F800000> : vector<128xf32>
    %100 = vector.multi_reduction <minimumf>, %99, %cst_42 [1] : vector<128x128xf32> to vector<128xf32>
    %101 = vector.shape_cast %100 : vector<128xf32> to vector<128x1xf32>
    %cst_43 = arith.constant 9.99999996E-13 : f32
    %102 = vector.broadcast %cst_43 : f32 to vector<128x1xf32>
    %103 = arith.maximumf %101, %102 : vector<128x1xf32>
    %104 = math.sqrt %103 : vector<128x1xf32>
    %cst_44 = arith.constant 0.000000e+00 : f32
    %105 = vector.broadcast %cst_44 : f32 to vector<128x1xf32>
    %106 = arith.subf %105, %103 : vector<128x1xf32>
    %cst_45 = arith.constant 1111.11108 : f32
    %107 = vector.broadcast %cst_45 : f32 to vector<128x1xf32>
    %108 = arith.mulf %106, %107 : vector<128x1xf32>
    %109 = math.exp %108 : vector<128x1xf32>
    %cst_46 = arith.constant 7.000000e-02 : f32
    %110 = vector.broadcast %cst_46 : f32 to vector<128x1xf32>
    %111 = arith.subf %110, %104 : vector<128x1xf32>
    %112 = arith.mulf %111, %109 : vector<128x1xf32>
    %113 = arith.addf %95, %112 : vector<128x1xf32>
    %114 = vector.broadcast %101 : vector<128x1xf32> to vector<128x128xf32>
    %115 = arith.cmpf ole, %99, %114 : vector<128x128xf32>
    %cst_47 = arith.constant 1.000000e+30 : f32
    %116 = vector.broadcast %cst_47 : f32 to vector<128x128xf32>
    %117 = arith.select %115, %116, %99 : vector<128x128xi1>, vector<128x128xf32>
    %cst_48 = arith.constant dense<0x7F800000> : vector<128xf32>
    %118 = vector.multi_reduction <minimumf>, %117, %cst_48 [1] : vector<128x128xf32> to vector<128xf32>
    %119 = vector.shape_cast %118 : vector<128xf32> to vector<128x1xf32>
    %cst_49 = arith.constant 9.99999996E-13 : f32
    %120 = vector.broadcast %cst_49 : f32 to vector<128x1xf32>
    %121 = arith.maximumf %119, %120 : vector<128x1xf32>
    %122 = math.sqrt %121 : vector<128x1xf32>
    %cst_50 = arith.constant 0.000000e+00 : f32
    %123 = vector.broadcast %cst_50 : f32 to vector<128x1xf32>
    %124 = arith.subf %123, %121 : vector<128x1xf32>
    %cst_51 = arith.constant 1111.11108 : f32
    %125 = vector.broadcast %cst_51 : f32 to vector<128x1xf32>
    %126 = arith.mulf %124, %125 : vector<128x1xf32>
    %127 = math.exp %126 : vector<128x1xf32>
    %cst_52 = arith.constant 7.000000e-02 : f32
    %128 = vector.broadcast %cst_52 : f32 to vector<128x1xf32>
    %129 = arith.subf %128, %122 : vector<128x1xf32>
    %130 = arith.mulf %129, %127 : vector<128x1xf32>
    %131 = arith.addf %113, %130 : vector<128x1xf32>
    %132 = vector.broadcast %119 : vector<128x1xf32> to vector<128x128xf32>
    %133 = arith.cmpf ole, %117, %132 : vector<128x128xf32>
    %cst_53 = arith.constant 1.000000e+30 : f32
    %134 = vector.broadcast %cst_53 : f32 to vector<128x128xf32>
    %135 = arith.select %133, %134, %117 : vector<128x128xi1>, vector<128x128xf32>
    %cst_54 = arith.constant dense<0x7F800000> : vector<128xf32>
    %136 = vector.multi_reduction <minimumf>, %135, %cst_54 [1] : vector<128x128xf32> to vector<128xf32>
    %137 = vector.shape_cast %136 : vector<128xf32> to vector<128x1xf32>
    %cst_55 = arith.constant 9.99999996E-13 : f32
    %138 = vector.broadcast %cst_55 : f32 to vector<128x1xf32>
    %139 = arith.maximumf %137, %138 : vector<128x1xf32>
    %140 = math.sqrt %139 : vector<128x1xf32>
    %cst_56 = arith.constant 0.000000e+00 : f32
    %141 = vector.broadcast %cst_56 : f32 to vector<128x1xf32>
    %142 = arith.subf %141, %139 : vector<128x1xf32>
    %cst_57 = arith.constant 1111.11108 : f32
    %143 = vector.broadcast %cst_57 : f32 to vector<128x1xf32>
    %144 = arith.mulf %142, %143 : vector<128x1xf32>
    %145 = math.exp %144 : vector<128x1xf32>
    %cst_58 = arith.constant 7.000000e-02 : f32
    %146 = vector.broadcast %cst_58 : f32 to vector<128x1xf32>
    %147 = arith.subf %146, %140 : vector<128x1xf32>
    %148 = arith.mulf %147, %145 : vector<128x1xf32>
    %149 = arith.addf %131, %148 : vector<128x1xf32>
    %150 = vector.shape_cast %149 : vector<128x1xf32> to vector<1x128x1xf32>
    %cst_59 = arith.constant dense<0.000000e+00> : vector<1xf32>
    %151 = vector.multi_reduction <add>, %150, %cst_59 [1, 2] : vector<1x128x1xf32> to vector<1xf32>
    %152 = vector.shape_cast %151 : vector<1xf32> to vector<1x1x1xf32>
    %153 = vector.extract %152[0, 0, 0] : f32 from vector<1x1x1xf32>
    %154 = vector.broadcast %153 : f32 to vector<1x1xf32>
    %155 = tpu.iota {dimensions = array<i32: 1>} : vector<1x128xi32>
    %c0_i32 = arith.constant 0 : i32
    %156 = vector.broadcast %c0_i32 : i32 to vector<1x128xi32>
    %157 = arith.cmpi eq, %155, %156 : vector<1x128xi32>
    %c1_i32 = arith.constant 1 : i32
    %158 = vector.broadcast %c1_i32 : i32 to vector<1x128xi32>
    %159 = arith.cmpi eq, %155, %158 : vector<1x128xi32>
    %c2_i32 = arith.constant 2 : i32
    %160 = vector.broadcast %c2_i32 : i32 to vector<1x128xi32>
    %161 = arith.cmpi eq, %155, %160 : vector<1x128xi32>
    %c3_i32 = arith.constant 3 : i32
    %162 = vector.broadcast %c3_i32 : i32 to vector<1x128xi32>
    %163 = arith.cmpi eq, %155, %162 : vector<1x128xi32>
    %cst_60 = arith.constant 0.000000e+00 : f32
    %164 = vector.shape_cast %154 : vector<1x1xf32> to vector<1x1xf32>
    %165 = vector.broadcast %164 : vector<1x1xf32> to vector<1x128xf32>
    %166 = vector.broadcast %cst_60 : f32 to vector<1x128xf32>
    %167 = arith.select %163, %165, %166 : vector<1x128xi1>, vector<1x128xf32>
    %168 = vector.shape_cast %62 : vector<1x1xf32> to vector<1x1xf32>
    %169 = vector.broadcast %168 : vector<1x1xf32> to vector<1x128xf32>
    %170 = arith.select %161, %169, %167 : vector<1x128xi1>, vector<1x128xf32>
    %171 = vector.shape_cast %53 : vector<1x1xf32> to vector<1x1xf32>
    %172 = vector.broadcast %171 : vector<1x1xf32> to vector<1x128xf32>
    %173 = arith.select %159, %172, %170 : vector<1x128xi1>, vector<1x128xf32>
    %174 = vector.shape_cast %31 : vector<1x1xf32> to vector<1x1xf32>
    %175 = vector.broadcast %174 : vector<1x1xf32> to vector<1x128xf32>
    %176 = arith.select %157, %175, %173 : vector<1x128xi1>, vector<1x128xf32>
    %177 = vector.shape_cast %176 : vector<1x128xf32> to vector<1x1x128xf32>
    %c0_61 = arith.constant 0 : index
    %c0_62 = arith.constant 0 : index
    %c0_63 = arith.constant 0 : index
    %178 = vector.load %arg6[%c0_61, %c0_62, %c0_63] : memref<1x1x128xf32, #tpu.memory_space<vmem>>, vector<1x1x128xf32>
    tpu.vector_store %arg6[%c0_61, %c0_62, %c0_63], %177 {strides = array<i32>} : memref<1x1x128xf32, #tpu.memory_space<vmem>>, vector<1x1x128xf32>,
    return
  }
  func.func @transform_0(%arg0: i32) -> (i32, i32, i32) {
    %c0_i32 = arith.constant 0 : i32
    %c0_i32_0 = arith.constant 0 : i32
    %c0_i32_1 = arith.constant 0 : i32
    return %arg0, %c0_i32, %c0_i32_0 : i32, i32, i32
  }
  func.func @transform_1(%arg0: i32) -> (i32, i32, i32) {
    %c0_i32 = arith.constant 0 : i32
    %c0_i32_0 = arith.constant 0 : i32
    %c0_i32_1 = arith.constant 0 : i32
    return %arg0, %c0_i32, %c0_i32_0 : i32, i32, i32
  }
  func.func @transform_2(%arg0: i32) -> (i32, i32, i32) {
    %c0_i32 = arith.constant 0 : i32
    %c0_i32_0 = arith.constant 0 : i32
    %c0_i32_1 = arith.constant 0 : i32
    return %arg0, %c0_i32, %c0_i32_0 : i32, i32, i32
  }
  func.func @transform_3(%arg0: i32) -> (i32, i32, i32) {
    %c0_i32 = arith.constant 0 : i32
    %c0_i32_0 = arith.constant 0 : i32
    %c0_i32_1 = arith.constant 0 : i32
    return %arg0, %c0_i32, %c0_i32_0 : i32, i32, i32
  }
  func.func @transform_4(%arg0: i32) -> (i32, i32, i32) {
    %c0_i32 = arith.constant 0 : i32
    %c0_i32_0 = arith.constant 0 : i32
    %c0_i32_1 = arith.constant 0 : i32
    return %arg0, %c0_i32, %c0_i32_0 : i32, i32, i32
  }
  func.func @transform_5(%arg0: i32) -> (i32, i32, i32) {
    %c0_i32 = arith.constant 0 : i32
    %c0_i32_0 = arith.constant 0 : i32
    %c0_i32_1 = arith.constant 0 : i32
    return %arg0, %c0_i32, %c0_i32_0 : i32, i32, i32
  }
}

</mosaic_0001>

<bundles_post_ra>
// kernel: upsample_loss.1
= control target key start
LH: loop header
LB: loop body
LE: loop exit
PB: predicated region body
PF: predicated region fallthrough
CT: control target
= control target key end

     0   :  { %s3060_s18 = smov 0   ;;  %s4889_s0 = inlined_call_operand.vmem [shape: f32[2,128,8], index: 0, kind: input, shape index: {}]   ;;  %s4890_s1 = inlined_call_operand.vmem [shape: f32[2,8,128], index: 1, kind: input, shape index: {}]   ;;  %s4891_s2 = inlined_call_operand.vmem [shape: f32[2,8,128], index: 2, kind: input, shape index: {}]   ;;  %s4892_s3 = inlined_call_operand.vmem [shape: f32[2,64,8], index: 3, kind: input, shape index: {}]   ;;  %s4893_s4 = inlined_call_operand.vmem [shape: f32[2,8,64], index: 4, kind: input, shape index: {}]   ;;  %s4894_s5 = inlined_call_operand.vmem [shape: f32[2,1,128], index: 5, kind: output, shape index: {}]  }
   0x1 LB: > { %s2579_s19 = sadd.s32 4294967295, %s3028_s18   ;;  %p2583_p0 = scmp.ge.s32.totalorder %s3028_s18, 1  ;;  %s3028_s18 = sphi %s3060_s18, %s15_s18  }
   0x2   : > { %p224_p1 = scmp.lt.s32.totalorder %s3028_s18, 3 }
   0x4   : > { %p225_p2 = pnand %p2583_p0, %p224_p1 }
   0x6   : > { %228 = sbr.rel (%p225_p2) target bundleno = 1143 (0x477), region = 40 }
   0xd   : > { %p267_p3 = scmp.lt.s32.totalorder %s2579_s19, 1  ;;  %vm319_vm0 = vcmask 64512  }
   0xf   : > { %s5066_s19 = smov (!%p267_p3, %s2579_s19), 1 }
  0x10   : > { %s2633_s20 = sshll.u32 %s5066_s19, 7  ;;  %s2586_s21 = sshll.u32 %s5066_s19, 3 }
  0x11   : > { %s3075_s24 = scalar_lea.vmem %s4889_s0, %s2633_s20  ;;  %s3080_s27 = scalar_lea.vmem %s4893_s4, %s2586_s21 }
  0x12   : > { %v318_v0 = vld [vmem:[%s3080_s27] sm:$0xff]  ;;  %s2634_s28 = sshll.u32 %s5066_s19, 6  ;;  %s275_s6 = scalar_lea.vmem %s4890_s1, %s2586_s21  ;;  %v293_v3 = vld [vmem:[%s3075_s24 + $0x8] sm:$0xff]  ;;  %v294_v4 = vld [vmem:[%s3075_s24 + $0x10] sm:$0xff] }
  0x13   : > { %v292_v1 = vld [vmem:[%s3075_s24] sm:$0xff]  ;;  %2744 = vmatprep.subr.mxu1 %v318_v0  ;;  %s3091_s9 = scalar_lea.vmem %s4892_s3, %s2634_s28  ;;  %s279_s12 = scalar_lea.vmem %s4891_s2, %s2586_s21  ;;  %v515_v9 = vmul.f32 %v294_v4, %v294_v4  ;;  %v295_v11 = vld [vmem:[%s3075_s24 + $0x18] sm:$0xff]  ;;  %v514_v13 = vmul.f32 %v293_v3, %v293_v3  ;;  %v297_v18 = vld [vmem:[%s3075_s24 + $0x28] sm:$0xff] }
  0x14   : > { %v3093_v2 = vld [vmem:[%s275_s6] sm:$0xff]  ;;  %2680 = vmatprep.mubr.msk.f32.mxu0 %vm319_vm0, %v292_v1  ;;  %v513_v5 = vmul.f32 %v292_v1, %v292_v1  ;;  %2745 = vmatpush3.msra.mxu1 %v318_v0  ;;  %v315_v7 = vld [vmem:[%s3091_s9 + $0x28] sm:$0xff]  ;;  %v316_v8 = vld [vmem:[%s3091_s9 + $0x30] sm:$0xff]  ;;  %v516_v15 = vmul.f32 %v295_v11, %v295_v11  ;;  %v518_v22 = vmul.f32 %v297_v18, %v297_v18  ;;  %s291_s21 = scalar_lea.vmem %s4894_s5, %s5066_s19 }
  0x15   : > { %v3102_v6 = vld [vmem:[%s3091_s9 + $0x20] sm:$0xff]  ;;  %2718 = vmatprep.subr.mxu1 %v3093_v2  ;;  %v535_v14 = vsel %vm319_vm0, %v515_v9, 0.0  ;;  %v317_v16 = vld [vmem:[%s3091_s9 + $0x38] sm:$0xff]  ;;  %v532_v19 = vsel %vm319_vm0, %v514_v13, 0.0  ;;  %v298_v23 = vld [vmem:[%s3075_s24 + $0x30] sm:$0xff]  ;;  %v1141_v56 = vmul.f32 %v3093_v2, %v3093_v2 }
  0x16   : > { %2712 = vmatprep.mubr.msk.f32.mxu1 %vm319_vm0, %v3102_v6  ;;  %v3109_v10 = vld [vmem:[%s279_s12] sm:$0xff]  ;;  %v529_v12 = vsel %vm319_vm0, %v513_v5, 0.0  ;;  %536 = vadd.xlane.f32.xlu1 %v535_v14  ;;  %v538_v21 = vsel %vm319_vm0, %v516_v15, 0.0  ;;  %v299_v24 = vld [vmem:[%s3075_s24 + $0x38] sm:$0xff]  ;;  %v519_v26 = vmul.f32 %v298_v23, %v298_v23  ;;  %v544_v27 = vsel %vm319_vm0, %v518_v22, 0.0  ;;  %v301_v30 = vld [vmem:[%s3075_s24 + $0x48] sm:$0xff] }
  0x17   : > { %2713 = vmatmul.mubr.msk.f32.vlgmr.msra.gmra.mrb[0].mxu1 %vm319_vm0, %v315_v7  ;;  %2678 = vmatprep.subr.mxu0 %v3109_v10  ;;  %v296_v17 = vld [vmem:[%s3075_s24 + $0x20] sm:$0xff]  ;;  %v520_v28 = vmul.f32 %v299_v24, %v299_v24  ;;  %v522_v34 = vmul.f32 %v301_v30, %v301_v30  ;;  %v302_v35 = vld [vmem:[%s3075_s24 + $0x50] sm:$0xff]  ;;  %v303_v36 = vld [vmem:[%s3075_s24 + $0x58] sm:$0xff]  ;;  %v577_v55 = vmul.f32 %v3109_v10, %v3109_v10  ;;  %v1142_v58 = vrot.slane %v1141_v56, 4 }
  0x18   : > { %2719 = vmatpush3.msra.mxu1 %v3093_v2  ;;  %2715 = vmatprep.mubr.msk.f32.mxu1 %vm319_vm0, %v316_v8  ;;  %v517_v20 = vmul.f32 %v296_v17, %v296_v17  ;;  %v300_v29 = vld [vmem:[%s3075_s24 + $0x40] sm:$0xff]  ;;  %v547_v31 = vsel %vm319_vm0, %v519_v26, 0.0  ;;  %v523_v38 = vmul.f32 %v302_v35, %v302_v35  ;;  %v524_v40 = vmul.f32 %v303_v36, %v303_v36  ;;  %v305_v42 = vld [vmem:[%s3075_s24 + $0x68] sm:$0xff]  ;;  %v306_v47 = vld [vmem:[%s3075_s24 + $0x70] sm:$0xff] }
  0x19   : > { %2679 = vmatpush3.msra.mxu0 %v3109_v10  ;;  %530 = vadd.xlane.f32.xlu0 %v529_v12  ;;  %v521_v32 = vmul.f32 %v300_v29, %v300_v29  ;;  %v550_v33 = vsel %vm319_vm0, %v520_v28, 0.0  ;;  %v556_v39 = vsel %vm319_vm0, %v522_v34, 0.0  ;;  %v304_v41 = vld [vmem:[%s3075_s24 + $0x60] sm:$0xff]  ;;  %v526_v46 = vmul.f32 %v305_v42, %v305_v42  ;;  %v307_v48 = vld [vmem:[%s3075_s24 + $0x78] sm:$0xff] }
  0x1a   : > { %2681 = vmatmul.mubr.msk.f32.vlgmr.msra.gmra.mrb[0].mxu0 %vm319_vm0, %v293_v3  ;;  %2704 = vmatprep.subr.mxu0 %v318_v0  ;;  %v541_v25 = vsel %vm319_vm0, %v517_v20, 0.0  ;;  %v559_v43 = vsel %vm319_vm0, %v523_v38, 0.0  ;;  %v525_v44 = vmul.f32 %v304_v41, %v304_v41  ;;  %v562_v45 = vsel %vm319_vm0, %v524_v40, 0.0 }
  0x1b   : > { %2716 = vmatmul.mubr.msk.f32.gmra.mrb[2].mxu1 %vm319_vm0, %v317_v16  ;;  %2683 = vmatprep.mubr.msk.f32.mxu0 %vm319_vm0, %v294_v4  ;;  %v553_v37 = vsel %vm319_vm0, %v521_v32, 0.0  ;;  %v527_v50 = vmul.f32 %v306_v47, %v306_v47  ;;  %v568_v51 = vsel %vm319_vm0, %v526_v46, 0.0  ;;  %v528_v52 = vmul.f32 %v307_v48, %v307_v48 }
  0x1c   : > { %2720 = vmatprep.mubr.msk.f32.mxu1 %vm319_vm0, %v292_v1  ;;  %2705 = vmatpush3.msra.mxu0 %v318_v0  ;;  %v565_v49 = vsel %vm319_vm0, %v525_v44, 0.0  ;;  %v578_v57 = vrot.slane %v577_v55, 4  ;;  %v1143_v60 = vadd.f32 %v1142_v58, %v1141_v56  ;;  %v1196_v5 = vlaneseq }
  0x1d   : > { %533 = vadd.xlane.f32.xlu0 %v532_v19  ;;  %539 = vadd.xlane.f32.xlu1 %v538_v21  ;;  %v571_v53 = vsel %vm319_vm0, %v527_v50, 0.0  ;;  %v574_v54 = vsel %vm319_vm0, %v528_v52, 0.0 }
  0x1e   : > { %2684 = vmatmul.mubr.msk.f32.gmra.mrb[2].mxu0 %vm319_vm0, %v295_v11  ;;  %v579_v59 = vadd.f32 %v578_v57, %v577_v55  ;;  %v1144_v0 = vrot.slane %v1143_v60, 2  ;;  %v3186_v10 = vshrl.u32 %v1196_v5, 7  ;;  %v3197_v16 = vand.u32 127, %v1196_v5 }
  0x1f   : > { %2721 = vmatmul.mubr.msk.f32.vlgmr.msra.gmra.mrb[4].mxu1 %vm319_vm0, %v293_v3  ;;  %2686 = vmatprep.mubr.msk.f32.mxu0 %vm319_vm0, %v296_v17 }
  0x20   : > { %2723 = vmatprep.mubr.msk.f32.mxu1 %vm319_vm0, %v294_v4  ;;  %v580_v61 = vrot.slane %v579_v59, 2  ;;  %v1145_v7 = vadd.f32 %v1144_v0, %v1143_v60  ;;  %v1198_v15 = vadd.s32 8, %v3186_v10  ;;  %4948 = vst [vmem:[#allocation4_spill] sm:$0xff] %v3197_v16  ;;  %v3221_v28 = vadd.s32 16, %v3186_v10 }
  0x21   : > { %542 = vadd.xlane.f32.xlu0 %v541_v25  ;;  %545 = vadd.xlane.f32.xlu1 %v544_v27  ;;  %v3214_v25 = vadd.s32 24, %v3186_v10  ;;  %vm1215_vm2 = vcmp.eq.s32.totalorder %v3186_v10, %v3197_v16  ;;  %v3258_v46 = vadd.s32 56, %v3186_v10  ;;  %v3296_v5 = vadd.s32 64, %v3186_v10 }
  0x22   : > { %2687 = vmatmul.mubr.msk.f32.gmra.mrb[4].mxu0 %vm319_vm0, %v297_v18  ;;  %v581_v1 = vadd.f32 %v580_v61, %v579_v59  ;;  %v1146_v2 = vrot.slane %v1145_v7, 1  ;;  %vm1216_vm1 = vcmp.eq.s32.totalorder %v1198_v15, %v3197_v16  ;;  %vm1217_vm4 = vcmp.eq.s32.totalorder %v3221_v28, %v3197_v16 }
  0x23   : > { %2724 = vmatmul.mubr.msk.f32.gmra.mrb[6].mxu1 %vm319_vm0, %v295_v11  ;;  %2689 = vmatprep.mubr.msk.f32.mxu0 %vm319_vm0, %v298_v23  ;;  %vm1218_vm3 = vcmp.eq.s32.totalorder %v3214_v25, %v3197_v16  ;;  %vm1222_vm7 = vcmp.eq.s32.totalorder %v3258_v46, %v3197_v16  ;;  %vm1223_vm10 = vcmp.eq.s32.totalorder %v3296_v5, %v3197_v16 }
  0x24   : > { %2726 = vmatprep.mubr.msk.f32.mxu1 %vm319_vm0, %v296_v17  ;;  %v582_v8 = vrot.slane %v581_v1, 1 }
  0x25   : > { %548 = vadd.xlane.f32.xlu0 %v547_v31  ;;  %551 = vadd.xlane.f32.xlu1 %v550_v33 }
  0x26   : > { %2690 = vmatmul.mubr.msk.f32.gmra.mrb[6].mxu0 %vm319_vm0, %v299_v24  ;;  %v3188_v11 = vadd.f32 %v582_v8, %v581_v1 }
  0x27   : > { %2727 = vmatmul.mubr.msk.f32.gmra.mrb[8].mxu1 %vm319_vm0, %v297_v18  ;;  %2692 = vmatprep.mubr.msk.f32.mxu0 %vm319_vm0, %v300_v29  ;;  %v3202_v18 = vadd.f32 %v1146_v2, %v1145_v7 }
  0x28   : > { %2729 = vmatprep.mubr.msk.f32.mxu1 %vm319_vm0, %v298_v23 }
  0x29   : > { %554 = vadd.xlane.f32.xlu0 %v553_v37  ;;  %557 = vadd.xlane.f32.xlu1 %v556_v39 }
  0x2a   : > { %2693 = vmatmul.mubr.msk.f32.gmra.mrb[8].mxu0 %vm319_vm0, %v301_v30 }
  0x2b   : > { %2730 = vmatmul.mubr.msk.f32.gmra.mrb[10].mxu1 %vm319_vm0, %v299_v24  ;;  %2695 = vmatprep.mubr.msk.f32.mxu0 %vm319_vm0, %v302_v35 }
  0x2c   : > { %2732 = vmatprep.mubr.msk.f32.mxu1 %vm319_vm0, %v300_v29 }
  0x2d   : > { %560 = vadd.xlane.f32.xlu0 %v559_v43  ;;  %563 = vadd.xlane.f32.xlu1 %v562_v45 }
  0x2e   : > { %2696 = vmatmul.mubr.msk.f32.gmra.mrb[10].mxu0 %vm319_vm0, %v303_v36 }
  0x2f   : > { %2733 = vmatmul.mubr.msk.f32.gmra.mrb[12].mxu1 %vm319_vm0, %v301_v30  ;;  %2698 = vmatprep.mubr.msk.f32.mxu0 %vm319_vm0, %v304_v41  ;;  %v3227_v30 = vadd.s32 40, %v3186_v10 }
  0x30   : > { %2735 = vmatprep.mubr.msk.f32.mxu1 %vm319_vm0, %v302_v35  ;;  %v3236_v35 = vadd.s32 32, %v3186_v10 }
  0x31   : > { %566 = vadd.xlane.f32.xlu0 %v565_v49  ;;  %569 = vadd.xlane.f32.xlu1 %v568_v51  ;;  %vm1220_vm5 = vcmp.eq.s32.totalorder %v3227_v30, %v3197_v16 }
  0x32   : > { %2699 = vmatmul.mubr.msk.f32.gmra.mrb[12].mxu0 %vm319_vm0, %v305_v42  ;;  %vm1219_vm6 = vcmp.eq.s32.totalorder %v3236_v35, %v3197_v16 }
  0x33   : > { %2736 = vmatmul.mubr.msk.f32.gmra.mrb[14].mxu1 %vm319_vm0, %v303_v36  ;;  %2701 = vmatprep.mubr.msk.f32.mxu0 %vm319_vm0, %v306_v47 }
  0x34   : > { %2738 = vmatprep.mubr.msk.f32.mxu1 %vm319_vm0, %v304_v41 }
  0x35   : > { %572 = vadd.xlane.f32.xlu0 %v571_v53  ;;  %575 = vadd.xlane.f32.xlu1 %v574_v54 }
  0x36   : > { %2702 = vmatmul.mubr.msk.f32.gmra.mrb[14].mxu0 %vm319_vm0, %v307_v48 }
  0x37   : > { %2739 = vmatmul.mubr.msk.f32.gmra.mrb[16].mxu1 %vm319_vm0, %v305_v42 }
  0x38   : > { %2741 = vmatprep.mubr.msk.f32.mxu1 %vm319_vm0, %v306_v47 }
  0x3b   : > { %2742 = vmatmul.mubr.msk.f32.gmra.mrb[18].mxu1 %vm319_vm0, %v307_v48  ;;  %v3263_v48 = vadd.s32 48, %v3186_v10 }
  0x3d   : > { %vm1221_vm8 = vcmp.eq.s32.totalorder %v3263_v48, %v3197_v16 }
  0xa3   : > { %v3182_v63 = vpop.xlane.xlu1 %536 }
  0xa4   : > { %v3242_v37 = vadd.f32 %v3188_v11, %v3182_v63  ;;  %v1150_v57 = vadd.f32 %v3202_v18, %v3182_v63 }
  0xa6   : > { %v531_v62 = vpop.xlane.xlu0 %530 }
  0xa7   : > { %v3207_v21 = vadd.f32 %v3188_v11, %v531_v62  ;;  %v1148_v38 = vadd.f32 %v3202_v18, %v531_v62  ;;  %v3287_v62 = vadd.s32 72, %v3186_v10 }
  0xa9   : > { %vm1224_vm9 = vcmp.eq.s32.totalorder %v3287_v62, %v3197_v16 }
  0xaa   : > { %v534_v3 = vpop.xlane.xlu0 %533  ;;  %v540_v4 = vpop.xlane.xlu1 %539 }
  0xab   : > { %v3200_v17 = vadd.f32 %v3188_v11, %v534_v3  ;;  %v3232_v32 = vadd.f32 %v3188_v11, %v540_v4  ;;  %v1149_v33 = vadd.f32 %v3202_v18, %v534_v3  ;;  %v1151_v51 = vadd.f32 %v3202_v18, %v540_v4 }
  0xae   : > { %v3184_v9 = vpop.xlane.xlu0 %542  ;;  %v3190_v12 = vpop.xlane.xlu1 %545 }
  0xaf   : > { %v3269_v50 = vadd.f32 %v3188_v11, %v3190_v12  ;;  %v3280_v56 = vadd.f32 %v3188_v11, %v3184_v9 }
  0xb1   : > { %4951 = vst [vmem:[#allocation7_spill] sm:$0xff] %v3269_v50  ;;  %4952 = vst [vmem:[#allocation8_spill] sm:$0xff] %v3280_v56 }
  0xb2   : > { %v3204_v20 = vpop.xlane.xlu0 %548  ;;  %v3223_v29 = vpop.xlane.xlu1 %551 }
  0xb3   : > { %v3308_v2 = vadd.f32 %v3188_v11, %v3223_v29 }
  0xb5   : > { %4955 = vst [vmem:[#allocation11_spill] sm:$0xff] %v3308_v2 }
  0xb6   : > { %v3255_v45 = vpop.xlane.xlu0 %554  ;;  %v3274_v54 = vpop.xlane.xlu1 %557 }
  0xb7   : > { %v1156_v49 = vadd.f32 %v3202_v18, %v3255_v45 }
  0xea   : > { %v3192_v13 = vpop.f32.mrb[0].mxu1 }
  0xeb   : > { %4946 = vst [vmem:[#allocation2_spill] sm:$0xff] %v3192_v13  ;;  %v3194_v14 = vpop.f32.mrb[1].mxu1 }
  0xec   : > { %4947 = vst [vmem:[#allocation3_spill] sm:$0xff] %v3194_v14 }
  0xed   : > { %v2682_v19 = vpop.f32.mrb[0].mxu0 }
  0xee   : > { %v3209_v22 = vpop.f32.mrb[2].mxu1  ;;  %v3211_v23 = vmul.f32 2.0, %v2682_v19  ;;  %v434_v24 = vpop.f32.mrb[1].mxu0  ;;  %v1153_v19 = vadd.f32 %v3202_v18, %v3190_v12 }
  0xef   : > { %4949 = vst [vmem:[#allocation5_spill] sm:$0xff] %v3209_v22  ;;  %v3216_v26 = vpop.f32.mrb[3].mxu1  ;;  %v3218_v27 = vmul.f32 2.0, %v434_v24 }
  0xf0   : > { %4950 = vst [vmem:[#allocation6_spill] sm:$0xff] %v3216_v26 }
  0xf1   : > { %v2685_v34 = vpop.f32.mrb[2].mxu0 }
  0xf2   : > { %v2722_v39 = vpop.f32.mrb[4].mxu1  ;;  %v3245_v40 = vmul.f32 2.0, %v2685_v34  ;;  %v444_v41 = vpop.f32.mrb[3].mxu0  ;;  %v3317_v34 = vadd.f32 %v3188_v11, %v3204_v20 }
  0xf3   : > { %v1165_v42 = vmul.f32 2.0, %v2722_v39  ;;  %v1062_v43 = vpop.f32.mrb[5].mxu1  ;;  %v3251_v44 = vmul.f32 2.0, %v444_v41 }
  0xf4   : > { %v1164_v47 = vmul.f32 2.0, %v1062_v43 }
  0xf5   : > { %v1181_v52 = vsub.f32 %v1149_v33, %v1165_v42  ;;  %v2688_v53 = vpop.f32.mrb[4].mxu0  ;;  %v3313_v33 = vpop.xlane.xlu0 %560  ;;  %v1152_v42 = vadd.f32 %v3202_v18, %v3184_v9 }
  0xf6   : > { %v1180_v58 = vsub.f32 %v1148_v38, %v1164_v47  ;;  %v2725_v59 = vpop.f32.mrb[6].mxu1  ;;  %v3284_v60 = vmul.f32 2.0, %v2688_v53  ;;  %v454_v61 = vpop.f32.mrb[5].mxu0  ;;  %v3376_v38 = vadd.s32 80, %v3186_v10 }
  0xf7   : > { %v1167_v0 = vmul.f32 2.0, %v2725_v59  ;;  %v1072_v1 = vpop.f32.mrb[7].mxu1  ;;  %v3291_v3 = vsel %vm1216_vm1, 1e+30, %v1181_v52  ;;  %v3293_v4 = vmul.f32 2.0, %v454_v61  ;;  %v3348_v59 = vadd.f32 %v3188_v11, %v3274_v54 }
  0xf8   : > { %4953 = vst [vmem:[#allocation9_spill] sm:$0xff] %v3284_v60  ;;  %v1166_v63 = vmul.f32 2.0, %v1072_v1  ;;  %1249 = vmin.xlane.f32.xlu1 %v3291_v3  ;;  %v3302_v7 = vsel %vm1215_vm2, 1e+30, %v1180_v58  ;;  %vm1225_vm12 = vcmp.eq.s32.totalorder %v3376_v38, %v3197_v16 }
  0xf9   : > { %4954 = vst [vmem:[#allocation10_spill] sm:$0xff] %v3293_v4  ;;  %v1183_v15 = vsub.f32 %v1151_v51, %v1167_v0  ;;  %1247 = vmin.xlane.f32.xlu0 %v3302_v7  ;;  %v2691_v24 = vpop.f32.mrb[6].mxu0  ;;  %4957 = vst [vmem:[#allocation13_spill] sm:$0xff] %v3348_v59  ;;  %v1155_v0 = vadd.f32 %v3202_v18, %v3223_v29  ;;  %v3366_v29 = vadd.s32 88, %v3186_v10  ;;  %v567_v8 = vpop.xlane.xlu0 %566 }
  0xfa   : > { %v1182_v39 = vsub.f32 %v1150_v57, %v1166_v63  ;;  %v2728_v41 = vpop.f32.mrb[8].mxu1  ;;  %v3323_v43 = vmul.f32 2.0, %v2691_v24  ;;  %v464_v47 = vpop.f32.mrb[7].mxu0  ;;  %v3359_v63 = vadd.f32 %v3188_v11, %v3255_v45 }
  0xfb   : > { %v1169_v12 = vmul.f32 2.0, %v2728_v41  ;;  %v1082_v51 = vpop.f32.mrb[9].mxu1  ;;  %v3330_v52 = vsel %vm1218_vm3, 1e+30, %v1183_v15  ;;  %v3332_v53 = vmul.f32 2.0, %v464_v47  ;;  %v564_v57 = vpop.xlane.xlu1 %563  ;;  %vm1226_vm11 = vcmp.eq.s32.totalorder %v3366_v29, %v3197_v16 }
  0xfc   : > { %4956 = vst [vmem:[#allocation12_spill] sm:$0xff] %v3323_v43  ;;  %v1168_v9 = vmul.f32 2.0, %v1082_v51  ;;  %1253 = vmin.xlane.f32.xlu1 %v3330_v52  ;;  %v3340_v58 = vsel %vm1217_vm4, 1e+30, %v1182_v39  ;;  %4958 = vst [vmem:[#allocation14_spill] sm:$0xff] %v3359_v63 }
  0xfd   : > { %v1185_v61 = vsub.f32 %v1153_v19, %v1169_v12  ;;  %1251 = vmin.xlane.f32.xlu0 %v3340_v58  ;;  %v2694_v1 = vpop.f32.mrb[8].mxu0  ;;  %v1154_v19 = vadd.f32 %v3202_v18, %v3204_v20 }
  0xfe   : > { %v2731_v15 = vpop.f32.mrb[10].mxu1  ;;  %v1184_v24 = vsub.f32 %v1152_v42, %v1168_v9  ;;  %v3363_v39 = vmul.f32 2.0, %v2694_v1  ;;  %v474_v41 = vpop.f32.mrb[9].mxu0  ;;  %v3385_v9 = vadd.f32 %v3188_v11, %v564_v57  ;;  %v1157_v1 = vadd.f32 %v3202_v18, %v3274_v54 }
  0xff   : > { %v1171_v47 = vmul.f32 2.0, %v2731_v15  ;;  %v1092_v12 = vpop.f32.mrb[11].mxu1  ;;  %v3371_v51 = vsel %vm1220_vm5, 1e+30, %v1185_v61  ;;  %v3373_v25 = vmul.f32 2.0, %v474_v41  ;;  %v3394_v15 = vadd.f32 %v3188_v11, %v3313_v33  ;;  %v570_v35 = vpop.xlane.xlu1 %569 }
 0x100   : > { %4959 = vst [vmem:[#allocation15_spill] sm:$0xff] %v3363_v39  ;;  %v1170_v20 = vmul.f32 2.0, %v1092_v12  ;;  %1257 = vmin.xlane.f32.xlu1 %v3371_v51  ;;  %v3382_v42 = vsel %vm1219_vm6, 1e+30, %v1184_v24  ;;  %4961 = vst [vmem:[#allocation17_spill] sm:$0xff] %v3385_v9  ;;  %v3422_v46 = vadd.f32 %v3188_v11, %v570_v35 }
 0x101   : > { %4960 = vst [vmem:[#allocation16_spill] sm:$0xff] %v3373_v25  ;;  %v1187_v61 = vsub.f32 %v1155_v0, %v1171_v47  ;;  %1255 = vmin.xlane.f32.xlu0 %v3382_v42  ;;  %4962 = vst [vmem:[#allocation18_spill] sm:$0xff] %v3394_v15  ;;  %v2697_v41 = vpop.f32.mrb[10].mxu0  ;;  %v1209_v15 = vadd.s32 96, %v3186_v10 }
 0x102   : > { %v2734_v12 = vpop.f32.mrb[12].mxu1  ;;  %v1186_v30 = vsub.f32 %v1154_v19, %v1170_v20  ;;  %v3400_v0 = vmul.f32 2.0, %v2697_v41  ;;  %v484_v47 = vpop.f32.mrb[11].mxu0  ;;  %4965 = vst [vmem:[#allocation21_spill] sm:$0xff] %v3422_v46  ;;  %v1159_v41 = vadd.f32 %v3202_v18, %v564_v57  ;;  %v1158_v20 = vadd.f32 %v3202_v18, %v3313_v33 }
 0x103   : > { %v1173_v54 = vmul.f32 2.0, %v2734_v12  ;;  %v1102_v28 = vpop.f32.mrb[13].mxu1  ;;  %v3407_v55 = vsel %vm1222_vm7, 1e+30, %v1187_v61  ;;  %v3409_v36 = vmul.f32 2.0, %v484_v47  ;;  %v3429_v12 = vadd.f32 %v3188_v11, %v567_v8 }
 0x104   : > { %4963 = vst [vmem:[#allocation19_spill] sm:$0xff] %v3400_v0  ;;  %v1172_v45 = vmul.f32 2.0, %v1102_v28  ;;  %1261 = vmin.xlane.f32.xlu1 %v3407_v55  ;;  %v3417_v19 = vsel %vm1221_vm8, 1e+30, %v1186_v30  ;;  %v573_v30 = vpop.xlane.xlu0 %572  ;;  %vm1227_vm14 = vcmp.eq.s32.totalorder %v1209_v15, %v3197_v16  ;;  %v3508_v15 = vld [vmem:[%s3091_s9] sm:$0xff] }
 0x105   : > { %4964 = vst [vmem:[#allocation20_spill] sm:$0xff] %v3409_v36  ;;  %v1189_v61 = vsub.f32 %v1157_v1, %v1173_v54  ;;  %1259 = vmin.xlane.f32.xlu0 %v3417_v19  ;;  %4966 = vst [vmem:[#allocation22_spill] sm:$0xff] %v3429_v12  ;;  %v2700_v48 = vpop.f32.mrb[12].mxu0  ;;  %v1210_v54 = vadd.s32 104, %v3186_v10  ;;  %v576_v36 = vpop.xlane.xlu1 %575  ;;  %v1162_v38 = vadd.f32 %v3202_v18, %v573_v30  ;;  %2706 = vmatprep.mubr.msk.f32.mxu0 %vm319_vm0, %v3508_v15 }
 0x106   : > { %v2737_v47 = vpop.f32.mrb[14].mxu1  ;;  %v1188_v24 = vsub.f32 %v1156_v49, %v1172_v45  ;;  %v3433_v31 = vmul.f32 2.0, %v2700_v48  ;;  %v494_v1 = vpop.f32.mrb[13].mxu0  ;;  %v3453_v62 = vadd.f32 %v3188_v11, %v576_v36 }
 0x107   : > { %v1175_v0 = vmul.f32 2.0, %v2737_v47  ;;  %v1112_v57 = vpop.f32.mrb[15].mxu1  ;;  %v3439_v28 = vsel %vm1224_vm9, 1e+30, %v1189_v61  ;;  %v3441_v9 = vmul.f32 2.0, %v494_v1  ;;  %v1161_v61 = vadd.f32 %v3202_v18, %v570_v35 }
 0x108   : > { %4967 = vst [vmem:[#allocation23_spill] sm:$0xff] %v3433_v31  ;;  %v1174_v39 = vmul.f32 2.0, %v1112_v57  ;;  %1265 = vmin.xlane.f32.xlu1 %v3439_v28  ;;  %v3448_v49 = vsel %vm1223_vm10, 1e+30, %v1188_v24  ;;  %4969 = vst [vmem:[#allocation25_spill] sm:$0xff] %v3453_v62  ;;  %v3460_v47 = vadd.f32 %v3188_v11, %v573_v30  ;;  %v1160_v1 = vadd.f32 %v3202_v18, %v567_v8 }
 0x109   : > { %4968 = vst [vmem:[#allocation24_spill] sm:$0xff] %v3441_v9  ;;  %v1191_v45 = vsub.f32 %v1159_v41, %v1175_v0  ;;  %1263 = vmin.xlane.f32.xlu0 %v3448_v49  ;;  %v2703_v5 = vpop.f32.mrb[14].mxu0  ;;  %vm1228_vm13 = vcmp.eq.s32.totalorder %v1210_v54, %v3197_v16 }
 0x10a   : > { %4970 = vst [vmem:[#allocation26_spill] sm:$0xff] %v3460_v47  ;;  %v2740_v24 = vpop.f32.mrb[16].mxu1  ;;  %v1190_v57 = vsub.f32 %v1158_v20, %v1174_v39  ;;  %v3463_v33 = vmul.f32 2.0, %v2703_v5  ;;  %v504_v0 = vpop.f32.mrb[15].mxu0  ;;  %v1212_v20 = vadd.s32 120, %v3186_v10  ;;  %v1211_v5 = vadd.s32 112, %v3186_v10 }
 0x10b   : > { %v1177_v41 = vmul.f32 2.0, %v2740_v24  ;;  %v1122_v31 = vpop.f32.mrb[17].mxu1  ;;  %v3469_v35 = vsel %vm1226_vm11, 1e+30, %v1191_v45  ;;  %v3471_v48 = vmul.f32 2.0, %v504_v0  ;;  %v1163_v45 = vadd.f32 %v3202_v18, %v576_v36 }
 0x10c   : > { %4971 = vst [vmem:[#allocation27_spill] sm:$0xff] %v3463_v33  ;;  %v1176_v11 = vmul.f32 2.0, %v1122_v31  ;;  %1269 = vmin.xlane.f32.xlu1 %v3469_v35  ;;  %v3478_v8 = vsel %vm1225_vm12, 1e+30, %v1190_v57  ;;  %vm1230_vm15 = vcmp.eq.s32.totalorder %v1212_v20, %v3197_v16  ;;  %vm1229_vm1 = vcmp.eq.s32.totalorder %v1211_v5, %v3197_v16 }
 0x10d   : > { %4972 = vst [vmem:[#allocation28_spill] sm:$0xff] %v3471_v48  ;;  %v1193_v29 = vsub.f32 %v1161_v61, %v1177_v41  ;;  %1267 = vmin.xlane.f32.xlu0 %v3478_v8 }
 0x10e   : > { %v2743_v24 = vpop.f32.mrb[18].mxu1  ;;  %v1192_v57 = vsub.f32 %v1160_v1, %v1176_v11  ;;  %v3511_v1 = vld [vmem:[%s3091_s9 + $0x8] sm:$0xff]  ;;  %v3514_v11 = vld [vmem:[%s3091_s9 + $0x10] sm:$0xff] }
 0x10f   : > { %v1179_v0 = vmul.f32 2.0, %v2743_v24  ;;  %v1132_v39 = vpop.f32.mrb[19].mxu1  ;;  %v3491_v61 = vsel %vm1228_vm13, 1e+30, %v1193_v29  ;;  %2707 = vmatmul.mubr.msk.f32.vlgmr.msra.gmra.mrb[16].mxu0 %vm319_vm0, %v3511_v1 }
 0x110   : > { %v1178_v41 = vmul.f32 2.0, %v1132_v39  ;;  %1273 = vmin.xlane.f32.xlu1 %v3491_v61  ;;  %v3496_v36 = vsel %vm1227_vm14, 1e+30, %v1192_v57  ;;  %2709 = vmatprep.mubr.msk.f32.mxu0 %vm319_vm0, %v3514_v11  ;;  %v3523_v39 = vld [vmem:[%s3091_s9 + $0x18] sm:$0xff] }
 0x111   : > { %v1195_v10 = vsub.f32 %v1163_v45, %v1179_v0  ;;  %1271 = vmin.xlane.f32.xlu0 %v3496_v36 }
 0x112   : > { %v1194_v18 = vsub.f32 %v1162_v38, %v1178_v41 }
 0x113   : > { %v3501_v30 = vsel %vm1230_vm15, 1e+30, %v1195_v10  ;;  %2710 = vmatmul.mubr.msk.f32.gmra.mrb[18].mxu0 %vm319_vm0, %v3523_v39 }
 0x114   : > { %1277 = vmin.xlane.f32.xlu1 %v3501_v30  ;;  %v3504_v54 = vsel %vm1229_vm1, 1e+30, %v1194_v18 }
 0x115   : > { %1275 = vmin.xlane.f32.xlu0 %v3504_v54 }
 0x185   : > { %v3527_v20 = vpop.xlane.xlu1 %1249 }
 0x186   : > { %4973 = vst [vmem:[#allocation29_spill] sm:$0xff] %v3527_v20  ;;  %v3529_v29 = vpop.xlane.xlu0 %1247  ;;  %vm1520_vm2 = vcmp.le.f32.partialorder %v3291_v3, %v3527_v20 }
 0x187   : > { %4974 = vst [vmem:[#allocation30_spill] sm:$0xff] %v3529_v29  ;;  %v3534_v45 = vsel %vm1520_vm2, 1e+30, %v3291_v3  ;;  %vm1519_vm3 = vcmp.le.f32.partialorder %v3302_v7, %v3529_v29 }
 0x188   : > { %1553 = vmin.xlane.f32.xlu1 %v3534_v45  ;;  %v3540_v38 = vsel %vm1519_vm3, 1e+30, %v3302_v7 }
 0x189   : > { %v1254_v5 = vpop.xlane.xlu1 %1253  ;;  %1551 = vmin.xlane.f32.xlu0 %v3540_v38 }
 0x18a   : > { %v1252_v24 = vpop.xlane.xlu0 %1251  ;;  %vm1522_vm4 = vcmp.le.f32.partialorder %v3330_v52, %v1254_v5  ;;  %v1282_v12 = vmax.f32 %v1254_v5, 1e-12 }
 0x18b   : > { %vm1521_vm5 = vcmp.le.f32.partialorder %v3340_v58, %v1252_v24  ;;  %v3546_v57 = vsel %vm1522_vm4, 1e+30, %v3330_v52 }
 0x18c   : > { %1557 = vmin.xlane.f32.xlu1 %v3546_v57  ;;  %v3550_v0 = vsel %vm1521_vm5, 1e+30, %v3340_v58  ;;  %2762 = vrsqrt.f32 %v1282_v12  ;;  %vm1318_vm3 = vcmp.eq.f32.partialorder %v1282_v12, inf  ;;  %vm1320_vm5 = vcmp.eq.f32.partialorder %v1282_v12, 0.0 }
 0x18d   : > { %v1258_v3 = vpop.xlane.xlu1 %1257  ;;  %1555 = vmin.xlane.f32.xlu0 %v3550_v0 }
 0x18e   : > { %vm1524_vm6 = vcmp.le.f32.partialorder %v3371_v51, %v1258_v3  ;;  %v1256_v7 = vpop.xlane.xlu0 %1255  ;;  %v3637_v59 = vmax.f32 %v1258_v3, 1e-12 }
 0x18f   : > { %vm1523_vm7 = vcmp.le.f32.partialorder %v3382_v42, %v1256_v7  ;;  %v3556_v41 = vsel %vm1524_vm6, 1e+30, %v3371_v51  ;;  %v3639_v22 = vmax.f32 %v1256_v7, 1e-12 }
 0x190   : > { %1561 = vmin.xlane.f32.xlu1 %v3556_v41  ;;  %v3560_v10 = vsel %vm1523_vm7, 1e+30, %v3382_v42  ;;  %vm1332_vm7 = vcmp.eq.f32.partialorder %v3637_v59, inf }
 0x191   : > { %v1262_v52 = vpop.xlane.xlu1 %1261  ;;  %1559 = vmin.xlane.f32.xlu0 %v3560_v10  ;;  %v1411_v14 = vsub.f32 0.0, %v3639_v22 }
 0x192   : > { %vm1526_vm8 = vcmp.le.f32.partialorder %v3407_v55, %v1262_v52  ;;  %v1260_v58 = vpop.xlane.xlu0 %1259  ;;  %v3645_v3 = vmax.f32 %v1262_v52, 1e-12 }
 0x193   : > { %v3565_v18 = vsel %vm1526_vm8, 1e+30, %v3407_v55  ;;  %vm1525_vm9 = vcmp.le.f32.partialorder %v3417_v19, %v1260_v58  ;;  %v1427_v7 = vmul.f32 1111.1111, %v1411_v14  ;;  %v3647_v2 = vmax.f32 %v1260_v58, 1e-12 }
 0x194   : > { %1565 = vmin.xlane.f32.xlu1 %v3565_v18  ;;  %v3576_v42 = vsel %vm1525_vm9, 1e+30, %v3417_v19  ;;  %v1414_v50 = vsub.f32 0.0, %v3645_v3  ;;  %v1321_v14 = vand.u32 2147483648, %v1282_v12  ;;  %vm1334_vm8 = vcmp.eq.f32.partialorder %v3637_v59, 0.0 }
 0x195   : > { %v3568_v31 = vpop.xlane.xlu1 %1265  ;;  %1563 = vmin.xlane.f32.xlu0 %v3576_v42  ;;  %vm1325_vm9 = vcmp.eq.f32.partialorder %v3639_v22, inf }
 0x196   : > { %v3571_v51 = vpop.xlane.xlu0 %1263  ;;  %vm1528_vm10 = vcmp.le.f32.partialorder %v3439_v28, %v3568_v31  ;;  %v2763_v5 = vpop.eup %2762 }
 0x197   : > { %v3579_v16 = vsel %vm1528_vm10, 1e+30, %v3439_v28  ;;  %vm1527_vm11 = vcmp.le.f32.partialorder %v3448_v49, %v3571_v51  ;;  %v1317_v43 = vmul.f32 %v2763_v5, %v1282_v12  ;;  %v1430_v5 = vmul.f32 1111.1111, %v1414_v50 }
 0x198   : > { %1569 = vmin.xlane.f32.xlu1 %v3579_v16  ;;  %v3592_v19 = vsel %vm1527_vm11, 1e+30, %v3448_v49  ;;  %vm1327_vm10 = vcmp.eq.f32.partialorder %v3639_v22, 0.0  ;;  %vm1346_vm11 = vcmp.eq.f32.partialorder %v3645_v3, inf }
 0x199   : > { %v3583_v55 = vpop.xlane.xlu1 %1269  ;;  %1567 = vmin.xlane.f32.xlu0 %v3592_v19  ;;  %v1319_v4 = vsel %vm1318_vm3, %v1282_v12, %v1317_v43 }
 0x19a   : > { %v3587_v33 = vpop.xlane.xlu0 %1267  ;;  %vm1530_vm12 = vcmp.le.f32.partialorder %v3469_v35, %v3583_v55 }
 0x19b   : > { %v3596_v28 = vsel %vm1530_vm12, 1e+30, %v3469_v35  ;;  %vm1529_vm13 = vcmp.le.f32.partialorder %v3478_v8, %v3587_v33  ;;  %vm1348_vm12 = vcmp.eq.f32.partialorder %v3645_v3, 0.0 }
 0x19c   : > { %1573 = vmin.xlane.f32.xlu1 %v3596_v28  ;;  %v3608_v49 = vsel %vm1529_vm13, 1e+30, %v3478_v8  ;;  %vm1339_vm13 = vcmp.eq.f32.partialorder %v3647_v2, inf }
 0x19d   : > { %v3598_v62 = vpop.xlane.xlu1 %1273  ;;  %1571 = vmin.xlane.f32.xlu0 %v3608_v49 }
 0x19e   : > { %v3603_v48 = vpop.xlane.xlu0 %1271  ;;  %vm1532_vm14 = vcmp.le.f32.partialorder %v3491_v61, %v3598_v62 }
 0x19f   : > { %v3612_v35 = vsel %vm1532_vm14, 1e+30, %v3491_v61  ;;  %vm1531_vm15 = vcmp.le.f32.partialorder %v3496_v36, %v3603_v48  ;;  %vm1341_vm14 = vcmp.eq.f32.partialorder %v3647_v2, 0.0 }
 0x1a0   : > { %1577 = vmin.xlane.f32.xlu1 %v3612_v35  ;;  %v3624_v8 = vsel %vm1531_vm15, 1e+30, %v3496_v36  ;;  %v1410_v36 = vsub.f32 0.0, %v1282_v12  ;;  %v3663_v12 = vmul.f32 %v3102_v6, %v3102_v6  ;;  %v1453_v6 = vmul.f32 1.442695, %v1430_v5 }
 0x1a1   : > { %v3615_v47 = vpop.xlane.xlu1 %1277  ;;  %1575 = vmin.xlane.f32.xlu0 %v3624_v8 }
 0x1a2   : > { %4975 = vst [vmem:[#allocation31_spill] sm:$0xff] %v3615_v47  ;;  %v3619_v46 = vpop.xlane.xlu0 %1275  ;;  %vm1534_vm1 = vcmp.le.f32.partialorder %v3501_v30, %v3615_v47  ;;  %v1281_v47 = vmax.f32 %v1252_v24, 1e-12 }
 0x1a3   : > { %4976 = vst [vmem:[#allocation32_spill] sm:$0xff] %v3619_v46  ;;  %vm1533_vm2 = vcmp.le.f32.partialorder %v3504_v54, %v3619_v46  ;;  %v3630_v61 = vsel %vm1534_vm1, 1e+30, %v3501_v30  ;;  %v1426_v46 = vmul.f32 1111.1111, %v1410_v36 }
 0x1a4   : > { %1581 = vmin.xlane.f32.xlu1 %v3630_v61  ;;  %v3634_v9 = vsel %vm1533_vm2, 1e+30, %v3504_v54  ;;  %2764 = vrsqrt.f32 %v1281_v47  ;;  %v1409_v26 = vsub.f32 0.0, %v1281_v47  ;;  %v1412_v54 = vsub.f32 0.0, %v3637_v59 }
 0x1a5   : > { %1579 = vmin.xlane.f32.xlu0 %v3634_v9  ;;  %2766 = vrsqrt.f32 %v3637_v59  ;;  %v1445_v24 = vmul.f32 1.442695, %v1426_v46  ;;  %vm1311_vm4 = vcmp.eq.f32.partialorder %v1281_v47, inf  ;;  %vm1313_vm6 = vcmp.eq.f32.partialorder %v1281_v47, 0.0 }
 0x1a6   : > { %v1425_v30 = vmul.f32 1111.1111, %v1409_v26  ;;  %2768 = vrsqrt.f32 %v3639_v22  ;;  %v1428_v20 = vmul.f32 1111.1111, %v1412_v54  ;;  %v1314_v58 = vand.u32 2147483648, %v1281_v47 }
 0x1a7   : > { %2770 = vpow2.f32 %v1445_v24  ;;  %v1322_v54 = vsel %vm1320_vm5, %v1321_v14, %v1319_v4 }
 0x1a8   : > { %v1443_v29 = vmul.f32 1.442695, %v1425_v30  ;;  %v1449_v60 = vmul.f32 1.442695, %v1428_v20  ;;  %v1447_v30 = vmul.f32 1.442695, %v1427_v7 }
 0x1a9   : > { %v3655_v20 = vmax.f32 %v3571_v51, 1e-12  ;;  %v3659_v7 = vmax.f32 %v3568_v31, 1e-12  ;;  %v1474_v4 = vsub.f32 0.07, %v1322_v54 }
 0x1aa   : > { %2772 = vpow2.f32 %v1443_v29  ;;  %v1413_v29 = vsub.f32 0.0, %v3647_v2  ;;  %v1335_v31 = vand.u32 2147483648, %v3637_v59 }
 0x1ab   : > { %2774 = vrsqrt.f32 %v3645_v3  ;;  %vm1360_vm15 = vcmp.eq.f32.partialorder %v3659_v7, inf  ;;  %vm1353_vm1 = vcmp.eq.f32.partialorder %v3655_v20, inf  ;;  %vm1362_vm3 = vcmp.eq.f32.partialorder %v3659_v7, 0.0 }
 0x1ac   : > { %2776 = vrsqrt.f32 %v3647_v2 }
 0x1ad   : > { %2778 = vpow2.f32 %v1449_v60 }
 0x1ae   : > { %v2765_v13 = vpop.eup %2764  ;;  %2780 = vpow2.f32 %v1447_v30  ;;  %v3676_v30 = vmax.f32 %v3583_v55, 1e-12  ;;  %v1416_v55 = vsub.f32 0.0, %v3659_v7 }
 0x1af   : > { %v1310_v36 = vmul.f32 %v2765_v13, %v1281_v47  ;;  %v2767_v26 = vpop.eup %2766  ;;  %2782 = vrsqrt.f32 %v3655_v20 }
 0x1b0   : > { %v2769_v46 = vpop.eup %2768  ;;  %v1331_v13 = vmul.f32 %v2767_v26, %v3637_v59  ;;  %2784 = vrsqrt.f32 %v3659_v7  ;;  %vm1374_vm5 = vcmp.eq.f32.partialorder %v3676_v30, inf }
 0x1b1   : > { %v1312_v52 = vsel %vm1311_vm4, %v1281_v47, %v1310_v36  ;;  %v1324_v43 = vmul.f32 %v2769_v46, %v3639_v22  ;;  %v1429_v47 = vmul.f32 1111.1111, %v1413_v29  ;;  %v2771_v50 = vpop.eup %2770  ;;  %v1328_v46 = vand.u32 2147483648, %v3639_v22 }
 0x1b2   : > { %v1315_v24 = vsel %vm1313_vm6, %v1314_v58, %v1312_v52  ;;  %v1333_v60 = vsel %vm1332_vm7, %v3637_v59, %v1331_v13  ;;  %v1349_v58 = vand.u32 2147483648, %v3645_v3  ;;  %v3683_v13 = vmax.f32 %v3587_v33, 1e-12 }
 0x1b3   : > { %v1473_v51 = vsub.f32 0.07, %v1315_v24  ;;  %v1326_v36 = vsel %vm1325_vm9, %v3639_v22, %v1324_v43  ;;  %v1336_v52 = vsel %vm1334_vm8, %v1335_v31, %v1333_v60  ;;  %v3685_v54 = vmul.f32 %v2771_v50, %v1474_v4 }
 0x1b4   : > { %v2773_v26 = vpop.eup %2772  ;;  %v1329_v22 = vsel %vm1327_vm10, %v1328_v46, %v1326_v36  ;;  %v1451_v43 = vmul.f32 1.442695, %v1429_v47  ;;  %2786 = vpow2.f32 %v1453_v6  ;;  %v3693_v59 = vmax.f32 %v3598_v62, 1e-12 }
 0x1b5   : > { %v2775_v14 = vpop.eup %2774  ;;  %v3689_v5 = vmul.f32 %v2773_v26, %v1473_v51  ;;  %v1476_v24 = vsub.f32 0.07, %v1336_v52  ;;  %v1415_v4 = vsub.f32 0.0, %v3655_v20  ;;  %2788 = vrsqrt.f32 %v3676_v30 }
 0x1b6   : > { %v2777_v29 = vpop.eup %2776  ;;  %v1345_v33 = vmul.f32 %v2775_v14, %v3645_v3  ;;  %v1475_v50 = vsub.f32 0.07, %v1329_v22  ;;  %v1418_v51 = vsub.f32 0.0, %v3676_v30  ;;  %2790 = vrsqrt.f32 %v3683_v13 }
 0x1b7   : > { %v2779_v60 = vpop.eup %2778  ;;  %v1338_v47 = vmul.f32 %v2777_v29, %v3647_v2  ;;  %2792 = vpow2.f32 %v1451_v43  ;;  %v1432_v36 = vmul.f32 1111.1111, %v1416_v55  ;;  %v1417_v62 = vsub.f32 0.0, %v3683_v13 }
 0x1b8   : > { %v2781_v31 = vpop.eup %2780  ;;  %v3703_v6 = vmax.f32 %v3603_v48, 1e-12  ;;  %v1342_v26 = vand.u32 2147483648, %v3647_v2  ;;  %2794 = vrsqrt.f32 %v3693_v59  ;;  %v1420_v46 = vsub.f32 0.0, %v3693_v59 }
 0x1b9   : > { %v2783_v14 = vpop.eup %2782  ;;  %v3709_v52 = vmul.f32 %v2779_v60, %v1476_v24  ;;  %v1347_v29 = vsel %vm1346_vm11, %v3645_v3, %v1345_v33  ;;  %v1431_v22 = vmul.f32 1111.1111, %v1415_v4  ;;  %v3716_v43 = vmul.f32 %v2781_v31, %v1475_v50 }
 0x1ba   : > { %v1340_v55 = vsel %vm1339_vm13, %v3647_v2, %v1338_v47  ;;  %v1434_v56 = vmul.f32 1111.1111, %v1418_v51  ;;  %v2785_v60 = vpop.eup %2784  ;;  %v1457_v25 = vmul.f32 1.442695, %v1432_v36  ;;  %v1433_v63 = vmul.f32 1111.1111, %v1417_v62 }
 0x1bb   : > { %2796 = vrsqrt.f32 %v3703_v6  ;;  %v3729_v33 = vsel %vm1348_vm12, %v1349_v58, %v1347_v29  ;;  %v1352_v4 = vmul.f32 %v2783_v14, %v3655_v20  ;;  %v1436_v50 = vmul.f32 1111.1111, %v1420_v46 }
 0x1bc   : > { %v1343_v51 = vsel %vm1341_vm14, %v1342_v26, %v1340_v55  ;;  %vm1355_vm4 = vcmp.eq.f32.partialorder %v3655_v20, 0.0  ;;  %v1455_v31 = vmul.f32 1.442695, %v1431_v22  ;;  %v1419_v36 = vsub.f32 0.0, %v3703_v6 }
 0x1bd   : > { %v1359_v58 = vmul.f32 %v2785_v60, %v3659_v7  ;;  %v1356_v62 = vand.u32 2147483648, %v3655_v20  ;;  %2798 = vpow2.f32 %v1457_v25  ;;  %v1459_v14 = vmul.f32 1.442695, %v1433_v63 }
 0x1be   : > { %v3741_v3 = vpop.eup %2786  ;;  %v1477_v22 = vsub.f32 0.07, %v1343_v51  ;;  %v1354_v55 = vsel %vm1353_vm1, %v3655_v20, %v1352_v4  ;;  %v1465_v60 = vmul.f32 1.442695, %v1436_v50  ;;  %2800 = vpow2.f32 %v1455_v31 }
 0x1bf   : > { %v2789_v26 = vpop.eup %2788  ;;  %vm1367_vm7 = vcmp.eq.f32.partialorder %v3683_v13, inf  ;;  %v1435_v25 = vmul.f32 1111.1111, %v1419_v36  ;;  %v1361_v51 = vsel %vm1360_vm15, %v3659_v7, %v1359_v58  ;;  %vm1369_vm8 = vcmp.eq.f32.partialorder %v3683_v13, 0.0 }
 0x1c0   : > { %v2791_v29 = vpop.eup %2790  ;;  %v1373_v4 = vmul.f32 %v2789_v26, %v3676_v30  ;;  %v3768_v31 = vsel %vm1355_vm4, %v1356_v62, %v1354_v55  ;;  %vm1388_vm11 = vcmp.eq.f32.partialorder %v3693_v59, inf  ;;  %vm1376_vm12 = vcmp.eq.f32.partialorder %v3676_v30, 0.0 }
 0x1c1   : > { %v1366_v36 = vmul.f32 %v2791_v29, %v3683_v13  ;;  %v1463_v26 = vmul.f32 1.442695, %v1435_v25  ;;  %v4980_v29 = vand.u32 2147483648, %v3659_v7  ;;  %vm1381_vm14 = vcmp.eq.f32.partialorder %v3703_v6, inf }
 0x1c2   : > { %vm1390_vm15 = vcmp.eq.f32.partialorder %v3693_v59, 0.0  ;;  %vm1383_vm1 = vcmp.eq.f32.partialorder %v3703_v6, 0.0 }
 0x1c3   : > { %v1368_v55 = vsel %vm1367_vm7, %v3683_v13, %v1366_v36 }
 0x215   : > { %v3722_v24 = vpop.xlane.xlu1 %1553 }
 0x216   : > { %vm1824_vm2 = vcmp.le.f32.partialorder %v3534_v45, %v3722_v24  ;;  %v3746_v2 = vpop.xlane.xlu0 %1551 }
 0x217   : > { %v3733_v47 = vsel %vm1824_vm2, 1e+30, %v3534_v45  ;;  %v1461_v45 = vmul.f32 1.442695, %v1434_v56  ;;  %4978 = vst [vmem:[#allocation34_spill] sm:$0xff] %v3746_v2  ;;  %vm1823_vm6 = vcmp.le.f32.partialorder %v3540_v38, %v3746_v2  ;;  %v2793_v56 = vpop.eup %2792 }
 0x218   : > { %4977 = vst [vmem:[#allocation33_spill] sm:$0xff] %v3733_v47  ;;  %1857 = vmin.xlane.f32.xlu1 %v3733_v47  ;;  %v3755_v48 = vsel %vm1823_vm6, 1e+30, %v3540_v38  ;;  %v1377_v47 = vand.u32 2147483648, %v3676_v30  ;;  %v2795_v63 = vpop.eup %2794  ;;  %v1370_v38 = vand.u32 2147483648, %v3683_v13  ;;  %v3773_v2 = vmul.f32 %v2793_v56, %v1477_v22 }
 0x219   : > { %4979 = vst [vmem:[#allocation35_spill] sm:$0xff] %v3755_v48  ;;  %1855 = vmin.xlane.f32.xlu0 %v3755_v48  ;;  %2802 = vpow2.f32 %v1461_v45  ;;  %v1558_v50 = vpop.xlane.xlu1 %1557  ;;  %v2797_v45 = vpop.eup %2796  ;;  %v1387_v20 = vmul.f32 %v2795_v63, %v3693_v59  ;;  %v3788_v22 = vsel %vm1362_vm3, %v4980_v29, %v1361_v51  ;;  %v1375_v56 = vsel %vm1374_vm5, %v3676_v30, %v1373_v4 }
 0x21a   : > { %2804 = vpow2.f32 %v1459_v14  ;;  %v3771_v46 = vmax.f32 %v1558_v50, 1e-12  ;;  %v1556_v48 = vpop.xlane.xlu0 %1555  ;;  %vm1826_vm9 = vcmp.le.f32.partialorder %v3546_v57, %v1558_v50  ;;  %v1380_v25 = vmul.f32 %v2797_v45, %v3703_v6  ;;  %v3806_v51 = vpop.eup %2798 }
 0x21b   : > { %2806 = vpow2.f32 %v1465_v60  ;;  %v3776_v58 = vmax.f32 %v1556_v48, 1e-12  ;;  %vm1825_vm10 = vcmp.le.f32.partialorder %v3550_v0, %v1556_v48  ;;  %v3795_v60 = vsel %vm1826_vm9, 1e+30, %v3546_v57  ;;  %v3814_v45 = vpop.eup %2800 }
 0x21c   : > { %2808 = vrsqrt.f32 %v3771_v46  ;;  %v1714_v14 = vsub.f32 0.0, %v3771_v46  ;;  %4981 = vst [vmem:[#allocation36_spill] sm:$0xff] %v3795_v60  ;;  %1861 = vmin.xlane.f32.xlu1 %v3795_v60  ;;  %v3803_v7 = vsel %vm1825_vm10, 1e+30, %v3550_v0  ;;  %v1389_v4 = vsel %vm1388_vm11, %v3693_v59, %v1387_v20 }
 0x21d   : > { %2810 = vrsqrt.f32 %v3776_v58  ;;  %v1713_v48 = vsub.f32 0.0, %v3776_v58  ;;  %4982 = vst [vmem:[#allocation37_spill] sm:$0xff] %v3803_v7  ;;  %v1562_v57 = vpop.xlane.xlu1 %1561  ;;  %1859 = vmin.xlane.f32.xlu0 %v3803_v7  ;;  %v1391_v0 = vand.u32 2147483648, %v3693_v59  ;;  %v3821_v29 = vsel %vm1369_vm8, %v1370_v38, %v1368_v55 }
 0x21e   : > { %v1730_v63 = vmul.f32 1111.1111, %v1714_v14  ;;  %2812 = vpow2.f32 %v1463_v26  ;;  %vm1828_vm13 = vcmp.le.f32.partialorder %v3556_v41, %v1562_v57  ;;  %v1560_v20 = vpop.xlane.xlu0 %1559  ;;  %v3832_v62 = vmax.f32 %v1562_v57, 1e-12 }
 0x21f   : > { %v1729_v50 = vmul.f32 1111.1111, %v1713_v48  ;;  %v3817_v26 = vsel %vm1828_vm13, 1e+30, %v3556_v41  ;;  %v3827_v48 = vsel %vm1376_vm12, %v1377_v47, %v1375_v56  ;;  %v1384_v13 = vand.u32 2147483648, %v3703_v6 }
 0x220   : > { %v1749_v36 = vmul.f32 1.442695, %v1730_v63  ;;  %4983 = vst [vmem:[#allocation38_spill] sm:$0xff] %v3817_v26  ;;  %1865 = vmin.xlane.f32.xlu1 %v3817_v26  ;;  %v1382_v63 = vsel %vm1381_vm14, %v3703_v6, %v1380_v25  ;;  %v3838_v38 = vmax.f32 %v1560_v20, 1e-12  ;;  %vm1827_vm2 = vcmp.le.f32.partialorder %v3560_v10, %v1560_v20 }
 0x221   : > { %v1747_v14 = vmul.f32 1.442695, %v1729_v50  ;;  %v3830_v50 = vsel %vm1390_vm15, %v1391_v0, %v1389_v4  ;;  %v1480_v47 = vsub.f32 0.07, %v3788_v22  ;;  %v1481_v55 = vsub.f32 0.07, %v3821_v29 }
 0x222   : > { %2814 = vpow2.f32 %v1749_v36  ;;  %v3844_v25 = vsel %vm1827_vm2, 1e+30, %v3560_v10  ;;  %v3846_v57 = vsel %vm1383_vm1, %v1384_v13, %v1382_v63  ;;  %vm1622_vm3 = vcmp.eq.f32.partialorder %v3771_v46, inf }
 0x223   : > { %v3824_v30 = vpop.eup %2802  ;;  %2816 = vpow2.f32 %v1747_v14  ;;  %4984 = vst [vmem:[#allocation39_spill] sm:$0xff] %v3844_v25  ;;  %vm1624_vm4 = vcmp.eq.f32.partialorder %v3771_v46, 0.0  ;;  %1863 = vmin.xlane.f32.xlu0 %v3844_v25  ;;  %v1625_v10 = vand.u32 2147483648, %v3771_v46  ;;  %vm1615_vm5 = vcmp.eq.f32.partialorder %v3776_v58, inf  ;;  %v1566_v14 = vpop.xlane.xlu1 %1565 }
 0x224   : > { %v2805_v41 = vpop.eup %2804  ;;  %2818 = vrsqrt.f32 %v3838_v38  ;;  %v1618_v20 = vand.u32 2147483648, %v3776_v58  ;;  %v1715_v63 = vsub.f32 0.0, %v3838_v38  ;;  %v3862_v13 = vmax.f32 %v1566_v14, 1e-12 }
 0x225   : > { %v3836_v59 = vpop.eup %2806  ;;  %2820 = vrsqrt.f32 %v3832_v62  ;;  %vm1617_vm6 = vcmp.eq.f32.partialorder %v3776_v58, 0.0  ;;  %vm1830_vm7 = vcmp.le.f32.partialorder %v3565_v18, %v1566_v14  ;;  %v1564_v14 = vpop.xlane.xlu0 %1563  ;;  %vm1636_vm8 = vcmp.eq.f32.partialorder %v3832_v62, inf }
 0x226   : > { %v2809_v56 = vpop.eup %2808  ;;  %v1731_v7 = vmul.f32 1111.1111, %v1715_v63  ;;  %2822 = vrsqrt.f32 %v3862_v13  ;;  %v3903_v63 = vmax.f32 %v1564_v14, 1e-12  ;;  %vm1629_vm9 = vcmp.eq.f32.partialorder %v3838_v38, inf }
 0x227   : > { %v2811_v36 = vpop.eup %2810  ;;  %v1621_v0 = vmul.f32 %v2809_v56, %v3771_v46  ;;  %vm1631_vm10 = vcmp.eq.f32.partialorder %v3838_v38, 0.0  ;;  %vm1829_vm11 = vcmp.le.f32.partialorder %v3576_v42, %v1564_v14  ;;  %vm1638_vm12 = vcmp.eq.f32.partialorder %v3832_v62, 0.0 }
 0x228   : > { %v1614_v22 = vmul.f32 %v2811_v36, %v3776_v58  ;;  %v3864_v56 = vpop.eup %2812  ;;  %vm1650_vm14 = vcmp.eq.f32.partialorder %v3862_v13, inf  ;;  %vm1652_vm15 = vcmp.eq.f32.partialorder %v3862_v13, 0.0 }
 0x229   : > { %v1623_v29 = vsel %vm1622_vm3, %v3771_v46, %v1621_v0  ;;  %v4985_v46 = vsub.f32 0.07, %v3729_v33  ;;  %v852_v33 = vmul.f32 %v3514_v11, %v3514_v11  ;;  %v3897_v11 = vmul.f32 %v2805_v41, %v1481_v55 }
 0x22a   : > { %v1626_v6 = vsel %vm1624_vm4, %v1625_v10, %v1623_v29  ;;  %v1616_v4 = vsel %vm1615_vm5, %v3776_v58, %v1614_v22  ;;  %v851_v10 = vmul.f32 %v3511_v1, %v3511_v1  ;;  %v850_v22 = vmul.f32 %v3508_v15, %v3508_v15 }
 0x22b   : > { %v1778_v25 = vsub.f32 0.07, %v1626_v6  ;;  %v1619_v26 = vsel %vm1617_vm6, %v1618_v20, %v1616_v4  ;;  %v3872_v0 = vmul.f32 %v3741_v3, %v4985_v46  ;;  %v1751_v29 = vmul.f32 1.442695, %v1731_v7 }
 0x22c   : > { %v1777_v60 = vsub.f32 0.07, %v1619_v26  ;;  %v2815_v58 = vpop.eup %2814  ;;  %v853_v4 = vmul.f32 %v3523_v39, %v3523_v39  ;;  %v1716_v6 = vsub.f32 0.0, %v3832_v62  ;;  %v3886_v20 = vsel %vm1830_vm7, 1e+30, %v3565_v18 }
 0x22d   : > { %v2817_v3 = vpop.eup %2816  ;;  %v1794_v26 = vmul.f32 %v2815_v58, %v1778_v25  ;;  %v4986_v1 = vsub.f32 0.07, %v3768_v31  ;;  %2824 = vpow2.f32 %v1751_v29  ;;  %1869 = vmin.xlane.f32.xlu1 %v3886_v20  ;;  %v3895_v39 = vmul.f32 %v3806_v51, %v1480_v47  ;;  %v1570_v31 = vpop.xlane.xlu1 %1569 }
 0x22e   : > { %v1793_v7 = vmul.f32 %v2817_v3, %v1777_v60  ;;  %v1718_v18 = vsub.f32 0.0, %v3862_v13  ;;  %v2819_v60 = vpop.eup %2818  ;;  %v3912_v51 = vsel %vm319_vm0, %v850_v22, 0.0  ;;  %v3915_v41 = vsel %vm319_vm0, %v853_v4, 0.0 }
 0x22f   : > { %v3891_v15 = vmul.f32 %v3814_v45, %v4986_v1  ;;  %v3900_v25 = vadd.f32 %v1794_v26, %v3685_v54  ;;  %v3906_v45 = vsel %vm319_vm0, %v851_v10, 0.0  ;;  %v3918_v54 = vsel %vm319_vm0, %v852_v33, 0.0  ;;  %v2821_v47 = vpop.eup %2820  ;;  %v1568_v26 = vpop.xlane.xlu0 %1567 }
 0x230   : > { %v3909_v46 = vadd.f32 %v1793_v7, %v3689_v5  ;;  %v1732_v55 = vmul.f32 1111.1111, %v1716_v6  ;;  %v1628_v10 = vmul.f32 %v2819_v60, %v3838_v38  ;;  %2826 = vrsqrt.f32 %v3903_v63  ;;  %v2823_v6 = vpop.eup %2822 }
 0x231   : > { %4987 = vst [vmem:[#allocation40_spill] sm:$0xff] %v3900_v25  ;;  %v1632_v5 = vand.u32 2147483648, %v3838_v38  ;;  %v3926_v22 = vmax.f32 %v1570_v31, 1e-12  ;;  %v1734_v29 = vmul.f32 1111.1111, %v1718_v18  ;;  %v1635_v33 = vmul.f32 %v2821_v47, %v3832_v62  ;;  %v1574_v36 = vpop.xlane.xlu1 %1573 }
 0x232   : > { %4988 = vst [vmem:[#allocation41_spill] sm:$0xff] %v3909_v46  ;;  %v1630_v58 = vsel %vm1629_vm9, %v3838_v38, %v1628_v10  ;;  %v1717_v4 = vsub.f32 0.0, %v3903_v63  ;;  %vm1832_vm13 = vcmp.le.f32.partialorder %v3579_v16, %v1570_v31  ;;  %v1753_v1 = vmul.f32 1.442695, %v1732_v55  ;;  %v3018_v46 = vld [vmem:[%s3091_s9 + $0x28] sm:$0xff] }
 0x233   : > { %v1633_v3 = vsel %vm1631_vm10, %v1632_v5, %v1630_v58  ;;  %v3935_v38 = vmul.f32 %v3018_v46, %v3018_v46  ;;  %v1639_v18 = vand.u32 2147483648, %v3832_v62  ;;  %v1720_v14 = vsub.f32 0.0, %v3926_v22 }
 0x234   : > { %v1779_v7 = vsub.f32 0.07, %v1633_v3  ;;  %v1733_v60 = vmul.f32 1111.1111, %v1717_v4  ;;  %v3940_v47 = vsel %vm1829_vm11, 1e+30, %v3576_v42  ;;  %2828 = vrsqrt.f32 %v3926_v22 }
 0x235   : > { %4989 = vst [vmem:[#allocation42_spill] sm:$0xff] %v3940_v47  ;;  %v3942_v10 = vmax.f32 %v1568_v26, 1e-12  ;;  %v1757_v5 = vmul.f32 1.442695, %v1734_v29  ;;  %1867 = vmin.xlane.f32.xlu0 %v3940_v47  ;;  %v1637_v42 = vsel %vm1636_vm8, %v3832_v62, %v1635_v33  ;;  %v1649_v4 = vmul.f32 %v2823_v6, %v3862_v13 }
 0x236   : > { %v3949_v55 = vsel %vm1832_vm13, 1e+30, %v3579_v16  ;;  %v3951_v46 = vmax.f32 %v1574_v36, 1e-12  ;;  %v1736_v3 = vmul.f32 1111.1111, %v1720_v14  ;;  %v1572_v16 = vpop.xlane.xlu0 %1571  ;;  %vm1831_vm1 = vcmp.le.f32.partialorder %v3592_v19, %v1568_v26 }
 0x237   : > { %4990 = vst [vmem:[#allocation43_spill] sm:$0xff] %v3949_v55  ;;  %v2825_v58 = vpop.eup %2824  ;;  %2830 = vrsqrt.f32 %v3942_v10  ;;  %1873 = vmin.xlane.f32.xlu1 %v3949_v55  ;;  %v1755_v31 = vmul.f32 1.442695, %v1733_v60  ;;  %v1719_v47 = vsub.f32 0.0, %v3942_v10  ;;  %v3966_v6 = vsel %vm1638_vm12, %v1639_v18, %v1637_v42 }
 0x238   : > { %2832 = vpow2.f32 %v1753_v1  ;;  %v1795_v29 = vmul.f32 %v2825_v58, %v1779_v7  ;;  %v1653_v7 = vand.u32 2147483648, %v3862_v13  ;;  %v1722_v14 = vsub.f32 0.0, %v3951_v46 }
 0x239   : > { %2834 = vrsqrt.f32 %v3951_v46  ;;  %v1651_v60 = vsel %vm1650_vm14, %v3862_v13, %v1649_v4  ;;  %v1761_v58 = vmul.f32 1.442695, %v1736_v3  ;;  %vm1834_vm2 = vcmp.le.f32.partialorder %v3596_v28, %v1574_v36 }
 0x23a   : > { %v2827_v33 = vpop.eup %2826  ;;  %v3969_v1 = vadd.f32 %v1795_v29, %v3716_v43  ;;  %2836 = vpow2.f32 %v1757_v5  ;;  %v1735_v55 = vmul.f32 1111.1111, %v1719_v47  ;;  %v3977_v62 = vsel %vm1831_vm1, 1e+30, %v3592_v19  ;;  %v1578_v43 = vpop.xlane.xlu1 %1577 }
 0x23b   : > { %v1642_v26 = vmul.f32 %v2827_v33, %v3903_v63  ;;  %4992 = vst [vmem:[#allocation45_spill] sm:$0xff] %v3977_v62  ;;  %v3979_v18 = vmax.f32 %v1572_v16, 1e-12  ;;  %vm1643_vm3 = vcmp.eq.f32.partialorder %v3903_v63, inf  ;;  %2838 = vpow2.f32 %v1755_v31  ;;  %1871 = vmin.xlane.f32.xlu0 %v3977_v62  ;;  %v1576_v19 = vpop.xlane.xlu0 %1575 }
 0x23c   : > { %4991 = vst [vmem:[#allocation44_spill] sm:$0xff] %v3969_v1  ;;  %v1738_v42 = vmul.f32 1111.1111, %v1722_v14  ;;  %v3984_v5 = vsel %vm1834_vm2, 1e+30, %v3596_v28  ;;  %v1646_v4 = vand.u32 2147483648, %v3903_v63  ;;  %vm1833_vm4 = vcmp.le.f32.partialorder %v3608_v49, %v1572_v16 }
 0x23d   : > { %4993 = vst [vmem:[#allocation46_spill] sm:$0xff] %v3984_v5  ;;  %2840 = vrsqrt.f32 %v3979_v18  ;;  %1877 = vmin.xlane.f32.xlu1 %v3984_v5  ;;  %v3993_v47 = vsel %vm1652_vm15, %v1653_v7, %v1651_v60  ;;  %vm1645_vm5 = vcmp.eq.f32.partialorder %v3903_v63, 0.0  ;;  %vm1657_vm6 = vcmp.eq.f32.partialorder %v3942_v10, inf }
 0x23e   : > { %2842 = vpow2.f32 %v1761_v58  ;;  %v2829_v3 = vpop.eup %2828  ;;  %v1644_v29 = vsel %vm1643_vm3, %v3903_v63, %v1642_v26  ;;  %vm1664_vm7 = vcmp.eq.f32.partialorder %v3926_v22, inf  ;;  %vm1659_vm8 = vcmp.eq.f32.partialorder %v3942_v10, 0.0 }
 0x23f   : > { %v1759_v31 = vmul.f32 1.442695, %v1735_v55  ;;  %v1721_v13 = vsub.f32 0.0, %v3979_v18  ;;  %v4004_v33 = vmax.f32 %v1578_v43, 1e-12  ;;  %vm1836_vm9 = vcmp.le.f32.partialorder %v3612_v35, %v1578_v43 }
 0x240   : > { %v1765_v14 = vmul.f32 1.442695, %v1738_v42  ;;  %v4010_v60 = vsel %vm1833_vm4, 1e+30, %v3608_v49  ;;  %v4012_v58 = vmax.f32 %v1576_v19, 1e-12  ;;  %v4018_v42 = vpop.xlane.xlu1 %1581  ;;  %vm1835_vm11 = vcmp.le.f32.partialorder %v3624_v8, %v1576_v19 }
 0x241   : > { %v2831_v7 = vpop.eup %2830  ;;  %4994 = vst [vmem:[#allocation47_spill] sm:$0xff] %v4010_v60  ;;  %v1737_v36 = vmul.f32 1111.1111, %v1721_v13  ;;  %2844 = vrsqrt.f32 %v4004_v33  ;;  %v1724_v55 = vsub.f32 0.0, %v4004_v33  ;;  %1875 = vmin.xlane.f32.xlu0 %v4010_v60  ;;  %vm1666_vm10 = vcmp.eq.f32.partialorder %v3926_v22, 0.0  ;;  %v4029_v60 = vpop.xlane.xlu0 %1579 }
 0x242   : > { %v2833_v26 = vpop.eup %2832  ;;  %v1656_v28 = vmul.f32 %v2831_v7, %v3942_v10  ;;  %2846 = vrsqrt.f32 %v4012_v58  ;;  %v1723_v49 = vsub.f32 0.0, %v4012_v58  ;;  %v4025_v16 = vsel %vm1836_vm9, 1e+30, %v3612_v35 }
 0x243   : > { %v2835_v43 = vpop.eup %2834  ;;  %v1663_v13 = vmul.f32 %v2829_v3, %v3926_v22  ;;  %2848 = vpow2.f32 %v1759_v31  ;;  %v1763_v7 = vmul.f32 1.442695, %v1737_v36  ;;  %v1740_v1 = vmul.f32 1111.1111, %v1724_v55  ;;  %1881 = vmin.xlane.f32.xlu1 %v4025_v16 }
 0x244   : > { %v4031_v5 = vpop.eup %2836  ;;  %v1658_v62 = vsel %vm1657_vm6, %v3942_v10, %v1656_v28  ;;  %2850 = vpow2.f32 %v1765_v14  ;;  %v1739_v25 = vmul.f32 1111.1111, %v1723_v49  ;;  %vm1838_vm12 = vcmp.le.f32.partialorder %v3630_v61, %v4018_v42 }
 0x245   : > { %v1677_v35 = vmul.f32 %v2835_v43, %v3951_v46  ;;  %2852 = vpow2.f32 %v1763_v7  ;;  %v1769_v36 = vmul.f32 1.442695, %v1740_v1  ;;  %v4042_v3 = vsel %vm1835_vm11, 1e+30, %v3624_v8  ;;  %v2839_v31 = vpop.eup %2838 }
 0x246   : > { %v1660_v55 = vand.u32 2147483648, %v3942_v10  ;;  %vm1678_vm13 = vcmp.eq.f32.partialorder %v3951_v46, inf  ;;  %v1767_v28 = vmul.f32 1.442695, %v1739_v25  ;;  %1879 = vmin.xlane.f32.xlu0 %v4042_v3  ;;  %vm1837_vm14 = vcmp.le.f32.partialorder %v3634_v9, %v4029_v60 }
 0x247   : > { %v2841_v14 = vpop.eup %2840  ;;  %v1647_v1 = vsel %vm1645_vm5, %v1646_v4, %v1644_v29  ;;  %2854 = vpow2.f32 %v1769_v36  ;;  %v4052_v19 = vsel %vm1838_vm12, 1e+30, %v3630_v61  ;;  %v4055_v8 = vsel %vm1837_vm14, 1e+30, %v3634_v9 }
 0x248   : > { %v2843_v43 = vpop.eup %2842  ;;  %v1665_v25 = vsel %vm1664_vm7, %v3926_v22, %v1663_v13  ;;  %v1661_v49 = vsel %vm1659_vm8, %v1660_v55, %v1658_v62  ;;  %v1670_v7 = vmul.f32 %v2841_v14, %v3979_v18  ;;  %2856 = vpow2.f32 %v1767_v28  ;;  %1885 = vmin.xlane.f32.xlu1 %v4052_v19 }
 0x249   : > { %v4995_v63 = vsub.f32 0.07, %v3966_v6  ;;  %v1782_v4 = vsub.f32 0.07, %v3993_v47  ;;  %vm1671_vm15 = vcmp.eq.f32.partialorder %v3979_v18, inf  ;;  %v1679_v9 = vsel %vm1678_vm13, %v3951_v46, %v1677_v35 }
 0x24a   : > { %v1781_v29 = vsub.f32 0.07, %v1647_v1  ;;  %v1681_v10 = vand.u32 2147483648, %v3951_v46  ;;  %v1672_v62 = vsel %vm1671_vm15, %v3979_v18, %v1670_v7  ;;  %v1674_v13 = vand.u32 2147483648, %v3979_v18  ;;  %1883 = vmin.xlane.f32.xlu0 %v4055_v8 }
 0x24b   : > { %v1796_v61 = vmul.f32 %v2833_v26, %v4995_v63  ;;  %v2845_v36 = vpop.eup %2844  ;;  %v1783_v6 = vsub.f32 0.07, %v1661_v49  ;;  %vm1673_vm1 = vcmp.eq.f32.partialorder %v3979_v18, 0.0  ;;  %v4996_v47 = vand.u32 2147483648, %v3926_v22 }
 0x24c   : > { %vm1680_vm2 = vcmp.eq.f32.partialorder %v3951_v46, 0.0  ;;  %v2847_v35 = vpop.eup %2846  ;;  %862 = vadd.xlane.f32.xlu1 %v3906_v45  ;;  %v1675_v55 = vsel %vm1673_vm1, %v1674_v13, %v1672_v62  ;;  %vm1685_vm3 = vcmp.eq.f32.partialorder %v4012_v58, inf  ;;  %v1691_v14 = vmul.f32 %v2845_v36, %v4004_v33 }
 0x24d   : > { %v1668_v26 = vsel %vm1666_vm10, %v4996_v47, %v1665_v25  ;;  %v1682_v28 = vsel %vm1680_vm2, %v1681_v10, %v1679_v9  ;;  %v2849_v1 = vpop.eup %2848  ;;  %v1684_v49 = vmul.f32 %v2847_v35, %v4012_v58  ;;  %vm1687_vm4 = vcmp.eq.f32.partialorder %v4012_v58, 0.0 }
 0x24e   : > { %vm1692_vm5 = vcmp.eq.f32.partialorder %v4004_v33, inf  ;;  %v1695_v22 = vand.u32 2147483648, %v4004_v33  ;;  %v2851_v18 = vpop.eup %2850  ;;  %859 = vadd.xlane.f32.xlu0 %v3912_v51  ;;  %v1688_v45 = vand.u32 2147483648, %v4012_v58  ;;  %vm1694_vm6 = vcmp.eq.f32.partialorder %v4004_v33, 0.0 }
 0x24f   : > { %v1693_v46 = vsel %vm1692_vm5, %v4004_v33, %v1691_v14  ;;  %v1784_v25 = vsub.f32 0.07, %v1668_v26  ;;  %v2853_v7 = vpop.eup %2852  ;;  %v1686_v63 = vsel %vm1685_vm3, %v4012_v58, %v1684_v49  ;;  %v1785_v10 = vsub.f32 0.07, %v1675_v55  ;;  %v3019_v33 = vld [vmem:[%s3091_s9 + $0x38] sm:$0xff] }
 0x250   : > { %v1696_v9 = vsel %vm1694_vm6, %v1695_v22, %v1693_v46  ;;  %v1786_v62 = vsub.f32 0.07, %v1682_v28  ;;  %v1797_v13 = vmul.f32 %v2839_v31, %v1781_v29  ;;  %868 = vadd.xlane.f32.xlu1 %v3915_v41  ;;  %v873_v51 = vsel %vm319_vm0, %v3935_v38, 0.0  ;;  %v3020_v28 = vld [vmem:[%s3091_s9 + $0x30] sm:$0xff] }
 0x251   : > { %v1689_v36 = vsel %vm1687_vm4, %v1688_v45, %v1686_v63  ;;  %v1788_v47 = vsub.f32 0.07, %v1696_v9  ;;  %v2855_v35 = vpop.eup %2854  ;;  %v857_v26 = vmul.f32 %v3019_v33, %v3019_v33  ;;  %v1798_v49 = vmul.f32 %v4031_v5, %v1782_v4 }
 0x252   : > { %v1787_v14 = vsub.f32 0.07, %v1689_v36  ;;  %v1799_v22 = vmul.f32 %v2849_v1, %v1783_v6  ;;  %v2857_v55 = vpop.eup %2856  ;;  %865 = vadd.xlane.f32.xlu0 %v3918_v54  ;;  %v870_v41 = vsel %vm319_vm0, %v3663_v12, 0.0  ;;  %v1800_v31 = vmul.f32 %v2843_v43, %v1784_v25  ;;  %v5012_v36 = vld [vmem:[#allocation9_spill] sm:$0xff] }
 0x253   : > { %v1801_v29 = vmul.f32 %v2853_v7, %v1785_v10  ;;  %v1802_v38 = vmul.f32 %v2851_v18, %v1786_v62  ;;  %v856_v58 = vmul.f32 %v3020_v28, %v3020_v28  ;;  %v1804_v46 = vmul.f32 %v2855_v35, %v1788_v47  ;;  %v5006_v10 = vld [vmem:[#allocation16_spill] sm:$0xff]  ;;  %v5009_v62 = vld [vmem:[#allocation10_spill] sm:$0xff] }
 0x254   : > { %v1803_v45 = vmul.f32 %v2857_v55, %v1787_v14  ;;  %v4105_v63 = vadd.f32 %v1796_v61, %v3709_v52  ;;  %874 = vadd.xlane.f32.xlu1 %v873_v51  ;;  %v4997_v5 = vsub.f32 0.07, %v3827_v48  ;;  %v4998_v54 = vsub.f32 0.07, %v3846_v57  ;;  %v5011_v51 = vld [vmem:[#allocation7_spill] sm:$0xff]  ;;  %v5015_v47 = vld [vmem:[#allocation12_spill] sm:$0xff] }
 0x255   : > { %v4999_v12 = vsub.f32 0.07, %v3830_v50  ;;  %v4117_v1 = vadd.f32 %v1797_v13, %v3773_v2  ;;  %v879_v18 = vsel %vm319_vm0, %v857_v26, 0.0  ;;  %v4121_v52 = vadd.f32 %v1798_v49, %v3872_v0  ;;  %v4139_v0 = vpop.f32.mrb[16].mxu0  ;;  %v5019_v14 = vld [vmem:[#allocation34_spill] sm:$0xff] }
 0x256   : > { %v1498_v4 = vmul.f32 %v3824_v30, %v4997_v5  ;;  %v1499_v6 = vmul.f32 %v3864_v56, %v4998_v54  ;;  %v4124_v48 = vadd.f32 %v1799_v22, %v3891_v15  ;;  %v4127_v30 = vadd.f32 %v1800_v31, %v3895_v39  ;;  %871 = vadd.xlane.f32.xlu0 %v870_v41  ;;  %v4141_v15 = vpop.f32.mrb[17].mxu0 }
 0x257   : > { %v1500_v43 = vmul.f32 %v3836_v59, %v4999_v12  ;;  %v4130_v57 = vadd.f32 %v1801_v29, %v3897_v11  ;;  %v876_v2 = vsel %vm319_vm0, %v856_v58, 0.0  ;;  %v5000_v39 = vsub.f32 %v3200_v17, %v3211_v23  ;;  %v4149_v61 = vpop.f32.mrb[18].mxu0  ;;  %v5005_v23 = vld [vmem:[#allocation14_spill] sm:$0xff] }
 0x258   : > { %v4132_v50 = vadd.f32 %v1802_v38, %v1498_v4  ;;  %v4134_v59 = vadd.f32 %v1803_v45, %v1499_v6  ;;  %880 = vadd.xlane.f32.xlu1 %v879_v18  ;;  %v5001_v11 = vsub.f32 %v3207_v21, %v3218_v27  ;;  %v4151_v25 = vpop.f32.mrb[19].mxu0  ;;  %v5002_v7 = vsub.f32 %v3242_v37, %v3251_v44  ;;  %v5008_v27 = vld [vmem:[#allocation8_spill] sm:$0xff]  ;;  %v5014_v44 = vld [vmem:[#allocation11_spill] sm:$0xff] }
 0x259   : > { %v4137_v56 = vadd.f32 %v1804_v46, %v1500_v43  ;;  %v5003_v9 = vsub.f32 %v3317_v34, %v3332_v53  ;;  %v5004_v17 = vsub.f32 %v3232_v32, %v3245_v40  ;;  %v5007_v21 = vsub.f32 %v5005_v23, %v5006_v10  ;;  %v5017_v53 = vld [vmem:[#allocation29_spill] sm:$0xff]  ;;  %v5018_v40 = vld [vmem:[#allocation30_spill] sm:$0xff] }
 0x25a   : > { %877 = vadd.xlane.f32.xlu0 %v876_v2  ;;  %v5010_v13 = vsub.f32 %v5008_v27, %v5009_v62  ;;  %v5013_v37 = vsub.f32 %v5011_v51, %v5012_v36  ;;  %v5016_v34 = vsub.f32 %v5014_v44, %v5015_v47  ;;  %v1280_v35 = vmax.f32 %v5017_v53, 1e-12  ;;  %v5020_v10 = vld [vmem:[#allocation33_spill] sm:$0xff] }
 0x25b   : > { %v1584_v32 = vmax.f32 %v3722_v24, 1e-12  ;;  %v1279_v33 = vmax.f32 %v5018_v40, 1e-12  ;;  %v4178_v49 = vmax.f32 %v5019_v14, 1e-12 }
 0x25c   : > { %634 = vmin.xlane.f32.xlu1 %v5000_v39  ;;  %2858 = vrsqrt.f32 %v1280_v35  ;;  %v1408_v22 = vsub.f32 0.0, %v1280_v35  ;;  %vm1304_vm0 = vcmp.eq.f32.partialorder %v1280_v35, inf  ;;  %v1307_v2 = vand.u32 2147483648, %v1280_v35 }
 0x25d   : > { %2860 = vrsqrt.f32 %v1584_v32  ;;  %v1712_v26 = vsub.f32 0.0, %v1584_v32  ;;  %v1407_v55 = vsub.f32 0.0, %v1279_v33  ;;  %v1711_v29 = vsub.f32 0.0, %v4178_v49 }
 0x25e   : > { %632 = vmin.xlane.f32.xlu0 %v5001_v11  ;;  %2862 = vrsqrt.f32 %v1279_v33  ;;  %v1424_v31 = vmul.f32 1111.1111, %v1408_v22  ;;  %vm1608_vm7 = vcmp.eq.f32.partialorder %v1584_v32, inf  ;;  %vm1297_vm8 = vcmp.eq.f32.partialorder %v1279_v33, inf }
 0x25f   : > { %v1728_v41 = vmul.f32 1111.1111, %v1712_v26  ;;  %2864 = vrsqrt.f32 %v4178_v49  ;;  %v1423_v28 = vmul.f32 1111.1111, %v1407_v55  ;;  %v1727_v5 = vmul.f32 1111.1111, %v1711_v29 }
 0x260   : > { %636 = vmin.xlane.f32.xlu1 %v5002_v7  ;;  %v1441_v46 = vmul.f32 1.442695, %v1424_v31  ;;  %vm1610_vm10 = vcmp.eq.f32.partialorder %v1584_v32, 0.0  ;;  %vm1306_vm11 = vcmp.eq.f32.partialorder %v1280_v35, 0.0  ;;  %v1300_v62 = vand.u32 2147483648, %v1279_v33  ;;  %v3021_v31 = vld [vmem:[%s3080_s27] sm:$0xff] }
 0x261   : > { %v1745_v58 = vmul.f32 1.442695, %v1728_v41  ;;  %v1439_v54 = vmul.f32 1.442695, %v1423_v28  ;;  %v1743_v43 = vmul.f32 1.442695, %v1727_v5  ;;  %v882_v29 = vmul.f32 %v3021_v31, %v3021_v31 }
 0x262   : > { %644 = vmin.xlane.f32.xlu0 %v5003_v9  ;;  %vm1299_vm12 = vcmp.eq.f32.partialorder %v1279_v33, 0.0  ;;  %vm1601_vm13 = vcmp.eq.f32.partialorder %v4178_v49, inf  ;;  %vm1603_vm15 = vcmp.eq.f32.partialorder %v4178_v49, 0.0  ;;  %vm883_vm1 = vcmask 523264   ;;  %v5024_v31 = vld [vmem:[#allocation38_spill] sm:$0xff] }
 0x263   : > { %2866 = vpow2.f32 %v1745_v58 }
 0x264   : > { %638 = vmin.xlane.f32.xlu1 %v5004_v17  ;;  %2868 = vpow2.f32 %v1441_v46  ;;  %v1611_v17 = vand.u32 2147483648, %v1584_v32 }
 0x265   : > { %2870 = vpow2.f32 %v1439_v54 }
 0x266   : > { %648 = vmin.xlane.f32.xlu0 %v5007_v21  ;;  %v2859_v38 = vpop.eup %2858  ;;  %2872 = vpow2.f32 %v1743_v43  ;;  %v5022_v43 = vld [vmem:[#allocation36_spill] sm:$0xff] }
 0x267   : > { %v2861_v24 = vpop.eup %2860  ;;  %v1303_v4 = vmul.f32 %v2859_v38, %v1280_v35 }
 0x268   : > { %640 = vmin.xlane.f32.xlu1 %v5010_v13  ;;  %v2863_v45 = vpop.eup %2862  ;;  %v1607_v6 = vmul.f32 %v2861_v24, %v1584_v32 }
 0x269   : > { %v1296_v12 = vmul.f32 %v2863_v45, %v1279_v33  ;;  %v2865_v18 = vpop.eup %2864  ;;  %v1305_v39 = vsel %vm1304_vm0, %v1280_v35, %v1303_v4 }
 0x26a   : > { %v1609_v11 = vsel %vm1608_vm7, %v1584_v32, %v1607_v6  ;;  %v1600_v21 = vmul.f32 %v2865_v18, %v4178_v49  ;;  %v1308_v51 = vsel %vm1306_vm11, %v1307_v2, %v1305_v39  ;;  %v4204_v2 = vsel %vm883_vm1, %v882_v29, 0.0 }
 0x26b   : > { %v1298_v9 = vsel %vm1297_vm8, %v1279_v33, %v1296_v12  ;;  %v1612_v13 = vsel %vm1610_vm10, %v1611_v17, %v1609_v11  ;;  %v1472_v14 = vsub.f32 0.07, %v1308_v51  ;;  %v1604_v33 = vand.u32 2147483648, %v4178_v49 }
 0x26c   : > { %642 = vmin.xlane.f32.xlu1 %v5013_v37  ;;  %v1301_v44 = vsel %vm1299_vm12, %v1300_v62, %v1298_v9  ;;  %v1776_v53 = vsub.f32 0.07, %v1612_v13  ;;  %v1602_v35 = vsel %vm1601_vm13, %v4178_v49, %v1600_v21  ;;  %v5023_v62 = vld [vmem:[#allocation37_spill] sm:$0xff] }
 0x26d   : > { %v2867_v26 = vpop.eup %2866  ;;  %v1471_v38 = vsub.f32 0.07, %v1301_v44  ;;  %v1605_v28 = vsel %vm1603_vm15, %v1604_v33, %v1602_v35 }
 0x26e   : > { %v2869_v22 = vpop.eup %2868  ;;  %v1792_v58 = vmul.f32 %v2867_v26, %v1776_v53  ;;  %v1775_v54 = vsub.f32 0.07, %v1605_v28 }
 0x26f   : > { %v2871_v24 = vpop.eup %2870  ;;  %v1488_v46 = vmul.f32 %v2869_v22, %v1472_v14 }
 0x270   : > { %646 = vmin.xlane.f32.xlu1 %v5016_v34  ;;  %v5021_v34 = vld [vmem:[#allocation35_spill] sm:$0xff]  ;;  %v2873_v4 = vpop.eup %2872  ;;  %v1487_v39 = vmul.f32 %v2871_v24, %v1471_v38 }
 0x271   : > { %v1808_v9 = vadd.f32 %v1792_v58, %v1488_v46  ;;  %v1791_v13 = vmul.f32 %v2873_v4, %v1775_v54  ;;  %v5025_v46 = vld [vmem:[#allocation39_spill] sm:$0xff] }
 0x2a5   : > { %v1858_v7 = vpop.xlane.xlu1 %1857 }
 0x2a6   : > { %v4182_v23 = vmax.f32 %v1858_v7, 1e-12  ;;  %vm2128_vm9 = vcmp.le.f32.partialorder %v5020_v10, %v1858_v7  ;;  %v1856_v37 = vpop.xlane.xlu0 %1855 }
 0x2a7   : > { %v2144_v27 = vsel %vm2128_vm9, 1e+30, %v5020_v10  ;;  %v4190_v47 = vmax.f32 %v1856_v37, 1e-12  ;;  %vm2127_vm14 = vcmp.le.f32.partialorder %v5021_v34, %v1856_v37 }
 0x2a8   : > { %2874 = vrsqrt.f32 %v4182_v23  ;;  %2161 = vmin.xlane.f32.xlu1 %v2144_v27  ;;  %v2016_v36 = vsub.f32 0.0, %v4182_v23  ;;  %v2143_v40 = vsel %vm2127_vm14, 1e+30, %v5021_v34  ;;  %vm1912_vm3 = vcmp.eq.f32.partialorder %v4182_v23, inf }
 0x2a9   : > { %2876 = vrsqrt.f32 %v4190_v47  ;;  %2159 = vmin.xlane.f32.xlu0 %v2143_v40  ;;  %v2015_v41 = vsub.f32 0.0, %v4190_v47  ;;  %v1862_v5 = vpop.xlane.xlu1 %1861  ;;  %v1915_v10 = vand.u32 2147483648, %v4182_v23  ;;  %vm1914_vm5 = vcmp.eq.f32.partialorder %v4182_v23, 0.0 }
 0x2aa   : > { %v2032_v32 = vmul.f32 1111.1111, %v2016_v36  ;;  %v4200_v12 = vmax.f32 %v1862_v5, 1e-12  ;;  %v1860_v49 = vpop.xlane.xlu0 %1859  ;;  %vm2130_vm2 = vcmp.le.f32.partialorder %v5022_v43, %v1862_v5  ;;  %vm1905_vm6 = vcmp.eq.f32.partialorder %v4190_v47, inf }
 0x2ab   : > { %v2031_v45 = vmul.f32 1111.1111, %v2015_v41  ;;  %v4206_v11 = vmax.f32 %v1860_v49, 1e-12  ;;  %v2146_v7 = vsel %vm2130_vm2, 1e+30, %v5022_v43  ;;  %vm2129_vm4 = vcmp.le.f32.partialorder %v5023_v62, %v1860_v49 }
 0x2ac   : > { %v2049_v55 = vmul.f32 1.442695, %v2032_v32  ;;  %2165 = vmin.xlane.f32.xlu1 %v2146_v7  ;;  %v2018_v21 = vsub.f32 0.0, %v4200_v12  ;;  %v2145_v40 = vsel %vm2129_vm4, 1e+30, %v5023_v62  ;;  %v1908_v26 = vand.u32 2147483648, %v4190_v47 }
 0x2ad   : > { %v2047_v6 = vmul.f32 1.442695, %v2031_v45  ;;  %v1866_v27 = vpop.xlane.xlu1 %1865  ;;  %v2017_v34 = vsub.f32 0.0, %v4206_v11  ;;  %2163 = vmin.xlane.f32.xlu0 %v2145_v40  ;;  %vm1907_vm0 = vcmp.eq.f32.partialorder %v4190_v47, 0.0  ;;  %v885_v43 = vrot.slane %v4204_v2, 4 }
 0x2ae   : > { %2878 = vpow2.f32 %v2049_v55  ;;  %v2034_v44 = vmul.f32 1111.1111, %v2018_v21  ;;  %v4219_v53 = vmax.f32 %v1866_v27, 1e-12  ;;  %vm2132_vm7 = vcmp.le.f32.partialorder %v5024_v31, %v1866_v27 }
 0x2af   : > { %2880 = vpow2.f32 %v2047_v6  ;;  %v2148_v4 = vsel %vm2132_vm7, 1e+30, %v5024_v31  ;;  %vm1926_vm9 = vcmp.eq.f32.partialorder %v4200_v12, inf  ;;  %vm1928_vm10 = vcmp.eq.f32.partialorder %v4200_v12, 0.0 }
 0x2b0   : > { %2882 = vrsqrt.f32 %v4200_v12  ;;  %v2053_v14 = vmul.f32 1.442695, %v2034_v44  ;;  %v1864_v33 = vpop.xlane.xlu0 %1863  ;;  %v2020_v41 = vsub.f32 0.0, %v4219_v53  ;;  %2169 = vmin.xlane.f32.xlu1 %v2148_v4  ;;  %vm1919_vm11 = vcmp.eq.f32.partialorder %v4206_v11, inf }
 0x2b1   : > { %2884 = vrsqrt.f32 %v4206_v11  ;;  %v4230_v45 = vmax.f32 %v1864_v33, 1e-12  ;;  %vm2131_vm8 = vcmp.le.f32.partialorder %v5025_v46, %v1864_v33  ;;  %vm1921_vm13 = vcmp.eq.f32.partialorder %v4206_v11, 0.0 }
 0x2b2   : > { %v2875_v18 = vpop.eup %2874  ;;  %2886 = vrsqrt.f32 %v4219_v53  ;;  %v2036_v58 = vmul.f32 1111.1111, %v2020_v41  ;;  %vm1940_vm14 = vcmp.eq.f32.partialorder %v4219_v53, inf  ;;  %vm1942_vm15 = vcmp.eq.f32.partialorder %v4219_v53, 0.0  ;;  %v5026_v41 = vld [vmem:[#allocation40_spill] sm:$0xff] }
 0x2b3   : > { %v1911_v17 = vmul.f32 %v2875_v18, %v4182_v23  ;;  %v2877_v36 = vpop.eup %2876  ;;  %2888 = vpow2.f32 %v2053_v14  ;;  %v1807_v18 = vadd.f32 %v1791_v13, %v1487_v39  ;;  %v1922_v13 = vand.u32 2147483648, %v4206_v11 }
 0x2b4   : > { %v1904_v32 = vmul.f32 %v2877_v36, %v4190_v47  ;;  %v2057_v6 = vmul.f32 1.442695, %v2036_v58  ;;  %v2019_v33 = vsub.f32 0.0, %v4230_v45  ;;  %vm1933_vm4 = vcmp.eq.f32.partialorder %v4230_v45, inf }
 0x2b5   : > { %v1913_v51 = vsel %vm1912_vm3, %v4182_v23, %v1911_v17  ;;  %v2033_v23 = vmul.f32 1111.1111, %v2017_v34 }
 0x2b6   : > { %v1916_v37 = vsel %vm1914_vm5, %v1915_v10, %v1913_v51  ;;  %v1906_v55 = vsel %vm1905_vm6, %v4190_v47, %v1904_v32  ;;  %v2147_v47 = vsel %vm2131_vm8, 1e+30, %v5025_v46  ;;  %v1929_v10 = vand.u32 2147483648, %v4200_v12  ;;  %v5027_v46 = vld [vmem:[#allocation41_spill] sm:$0xff] }
 0x2b7   : > { %v2080_v35 = vsub.f32 0.07, %v1916_v37  ;;  %v1909_v38 = vsel %vm1907_vm0, %v1908_v26, %v1906_v55  ;;  %v2051_v28 = vmul.f32 1.442695, %v2033_v23  ;;  %2167 = vmin.xlane.f32.xlu0 %v2147_v47  ;;  %v1943_v23 = vand.u32 2147483648, %v4219_v53 }
 0x2b8   : > { %v2879_v22 = vpop.eup %2878  ;;  %v2079_v24 = vsub.f32 0.07, %v1909_v38  ;;  %vm1935_vm0 = vcmp.eq.f32.partialorder %v4230_v45, 0.0 }
 0x2b9   : > { %v2096_v29 = vmul.f32 %v2879_v22, %v2080_v35  ;;  %2890 = vpow2.f32 %v2051_v28  ;;  %v2881_v54 = vpop.eup %2880  ;;  %v886_v35 = vadd.f32 %v885_v43, %v4204_v2  ;;  %v2035_v28 = vmul.f32 1111.1111, %v2019_v33 }
 0x2ba   : > { %v2883_v49 = vpop.eup %2882  ;;  %v2095_v7 = vmul.f32 %v2881_v54, %v2079_v24  ;;  %2892 = vpow2.f32 %v2057_v6  ;;  %v1870_v39 = vpop.xlane.xlu1 %1869  ;;  %v5028_v6 = vld [vmem:[#allocation42_spill] sm:$0xff] }
 0x2bb   : > { %v4233_v5 = vadd.f32 %v2096_v29, %v1808_v9  ;;  %v2885_v17 = vpop.eup %2884  ;;  %v1925_v9 = vmul.f32 %v2883_v49, %v4200_v12  ;;  %2894 = vrsqrt.f32 %v4230_v45  ;;  %v4249_v51 = vmax.f32 %v1870_v39, 1e-12 }
 0x2bc   : > { %v4242_v21 = vadd.f32 %v2095_v7, %v1807_v18  ;;  %v1918_v27 = vmul.f32 %v2885_v17, %v4206_v11  ;;  %vm2134_vm12 = vcmp.le.f32.partialorder %v3886_v20, %v1870_v39  ;;  %v2887_v36 = vpop.eup %2886  ;;  %v887_v55 = vrot.slane %v886_v35, 2 }
 0x2bd   : > { %v1927_v62 = vsel %vm1926_vm9, %v4200_v12, %v1925_v9  ;;  %v2150_v34 = vsel %vm2134_vm12, 1e+30, %v3886_v20  ;;  %v1939_v12 = vmul.f32 %v2887_v36, %v4219_v53  ;;  %v2889_v26 = vpop.eup %2888  ;;  %2896 = vrsqrt.f32 %v4249_v51 }
 0x2be   : > { %v1930_v37 = vsel %vm1928_vm10, %v1929_v10, %v1927_v62  ;;  %v1920_v44 = vsel %vm1919_vm11, %v4206_v11, %v1918_v27  ;;  %2173 = vmin.xlane.f32.xlu1 %v2150_v34  ;;  %v2022_v24 = vsub.f32 0.0, %v4249_v51  ;;  %v888_v49 = vadd.f32 %v887_v55, %v886_v35  ;;  %v5033_v55 = vld [vmem:[#allocation3_spill] sm:$0xff] }
 0x2bf   : > { %v2082_v32 = vsub.f32 0.07, %v1930_v37  ;;  %v1923_v40 = vsel %vm1921_vm13, %v1922_v13, %v1920_v44  ;;  %v1941_v11 = vsel %vm1940_vm14, %v4219_v53, %v1939_v12  ;;  %v2055_v17 = vmul.f32 1.442695, %v2035_v28  ;;  %v5029_v13 = vld [vmem:[#allocation43_spill] sm:$0xff] }
 0x2c0   : > { %v2081_v14 = vsub.f32 0.07, %v1923_v40  ;;  %v1944_v2 = vsel %vm1942_vm15, %v1943_v23, %v1941_v11  ;;  %v2038_v9 = vmul.f32 1111.1111, %v2022_v24  ;;  %v889_v62 = vrot.slane %v888_v49, 1  ;;  %v5030_v40 = vld [vmem:[#allocation45_spill] sm:$0xff] }
 0x2c1   : > { %v2098_v22 = vmul.f32 %v2889_v26, %v2082_v32  ;;  %v2084_v38 = vsub.f32 0.07, %v1944_v2  ;;  %v5032_v23 = vld [vmem:[#allocation2_spill] sm:$0xff]  ;;  %vm1954_vm7 = vcmp.eq.f32.partialorder %v4249_v51, inf  ;;  %vm1956_vm8 = vcmp.eq.f32.partialorder %v4249_v51, 0.0 }
 0x2c2   : > { %v1868_v47 = vpop.xlane.xlu0 %1867  ;;  %v2061_v37 = vmul.f32 1.442695, %v2038_v9  ;;  %v4293_v33 = vmul.f32 2.0, %v5032_v23 }
 0x2c3   : > { %v2891_v20 = vpop.eup %2890  ;;  %v4264_v31 = vadd.f32 %v2098_v22, %v5026_v41  ;;  %v4270_v53 = vmax.f32 %v1868_v47, 1e-12  ;;  %vm2133_vm2 = vcmp.le.f32.partialorder %v5028_v6, %v1868_v47  ;;  %v1936_v22 = vand.u32 2147483648, %v4230_v45 }
 0x2c4   : > { %v2097_v29 = vmul.f32 %v2891_v20, %v2081_v14  ;;  %v2893_v58 = vpop.eup %2892  ;;  %v1874_v18 = vpop.xlane.xlu1 %1873  ;;  %v2149_v7 = vsel %vm2133_vm2, 1e+30, %v5028_v6  ;;  %v4290_v14 = vadd.f32 %v889_v62, %v888_v49  ;;  %v4302_v41 = vmul.f32 2.0, %v5033_v55  ;;  %v5035_v49 = vld [vmem:[#allocation6_spill] sm:$0xff] }
 0x2c5   : > { %v2895_v54 = vpop.eup %2894  ;;  %v2100_v43 = vmul.f32 %v2893_v58, %v2084_v38  ;;  %2171 = vmin.xlane.f32.xlu0 %v2149_v7  ;;  %2898 = vrsqrt.f32 %v4270_v53  ;;  %v4276_v27 = vmax.f32 %v1874_v18, 1e-12  ;;  %vm2136_vm3 = vcmp.le.f32.partialorder %v5029_v13, %v1874_v18 }
 0x2c6   : > { %v4268_v4 = vadd.f32 %v2097_v29, %v5027_v46  ;;  %v1932_v10 = vmul.f32 %v2895_v54, %v4230_v45  ;;  %2900 = vpow2.f32 %v2055_v17  ;;  %v2152_v34 = vsel %vm2136_vm3, 1e+30, %v5029_v13  ;;  %v5034_v54 = vld [vmem:[#allocation5_spill] sm:$0xff] }
 0x2c7   : > { %v2897_v39 = vpop.eup %2896  ;;  %v4280_v36 = vadd.f32 %v2100_v43, %v4105_v63  ;;  %2177 = vmin.xlane.f32.xlu1 %v2152_v34  ;;  %v2021_v26 = vsub.f32 0.0, %v4270_v53  ;;  %2902 = vrsqrt.f32 %v4276_v27  ;;  %v5031_v63 = vld [vmem:[#allocation46_spill] sm:$0xff]  ;;  %v2024_v11 = vsub.f32 0.0, %v4276_v27 }
 0x2c8   : > { %v1872_v44 = vpop.xlane.xlu0 %1871  ;;  %v1934_v35 = vsel %vm1933_vm4, %v4230_v45, %v1932_v10  ;;  %v1953_v12 = vmul.f32 %v2897_v39, %v4249_v51  ;;  %2904 = vpow2.f32 %v2061_v37  ;;  %v4315_v6 = vmul.f32 2.0, %v5034_v54 }
 0x2c9   : > { %vm2135_vm5 = vcmp.le.f32.partialorder %v5030_v40, %v1872_v44  ;;  %v4298_v20 = vmax.f32 %v1872_v44, 1e-12  ;;  %v1937_v29 = vsel %vm1935_vm0, %v1936_v22, %v1934_v35  ;;  %v2037_v24 = vmul.f32 1111.1111, %v2021_v26 }
 0x2ca   : > { %v1878_v32 = vpop.xlane.xlu1 %1877  ;;  %v2151_v2 = vsel %vm2135_vm5, 1e+30, %v5030_v40  ;;  %v1955_v45 = vsel %vm1954_vm7, %v4249_v51, %v1953_v12  ;;  %v4318_v43 = vmul.f32 2.0, %v5035_v49  ;;  %v1957_v18 = vand.u32 2147483648, %v4249_v51  ;;  %v5037_v40 = vld [vmem:[#allocation15_spill] sm:$0xff] }
 0x2cb   : > { %vm2138_vm6 = vcmp.le.f32.partialorder %v5031_v63, %v1878_v32  ;;  %2175 = vmin.xlane.f32.xlu0 %v2151_v2  ;;  %v4309_v58 = vmax.f32 %v1878_v32, 1e-12  ;;  %v4324_v17 = vmul.f32 2.0, %v4139_v0  ;;  %v2040_v9 = vmul.f32 1111.1111, %v2024_v11  ;;  %v5036_v32 = vld [vmem:[#allocation13_spill] sm:$0xff] }
 0x2cc   : > { %v2154_v28 = vsel %vm2138_vm6, 1e+30, %v5031_v63  ;;  %2906 = vrsqrt.f32 %v4298_v20  ;;  %v2023_v10 = vsub.f32 0.0, %v4298_v20  ;;  %v2083_v39 = vsub.f32 0.07, %v1937_v29 }
 0x2cd   : > { %2181 = vmin.xlane.f32.xlu1 %v2154_v28  ;;  %v1958_v62 = vsel %vm1956_vm8, %v1957_v18, %v1955_v45  ;;  %v4330_v13 = vmul.f32 2.0, %v4141_v15  ;;  %v4333_v37 = vmul.f32 2.0, %v4149_v61  ;;  %v2059_v0 = vmul.f32 1.442695, %v2037_v24 }
 0x2ce   : > { %v4305_v38 = vpop.xlane.xlu0 %1875  ;;  %v2026_v35 = vsub.f32 0.0, %v4309_v58  ;;  %v5038_v12 = vsub.f32 %v5036_v32, %v5037_v40  ;;  %vm1947_vm9 = vcmp.eq.f32.partialorder %v4270_v53, inf  ;;  %v4349_v61 = vmul.f32 2.0, %v4151_v25 }
 0x2cf   : > { %v4312_v46 = vmax.f32 %v4305_v38, 1e-12  ;;  %v2899_v47 = vpop.eup %2898  ;;  %vm1949_vm10 = vcmp.eq.f32.partialorder %v4270_v53, 0.0  ;;  %v1950_v63 = vand.u32 2147483648, %v4270_v53  ;;  %v2065_v23 = vmul.f32 1.442695, %v2040_v9 }
 0x2d0   : > { %v4321_v7 = vpop.xlane.xlu1 %1881  ;;  %v2901_v44 = vpop.eup %2900  ;;  %v1946_v34 = vmul.f32 %v2899_v47, %v4270_v53  ;;  %v2039_v22 = vmul.f32 1111.1111, %v2023_v10  ;;  %v2086_v55 = vsub.f32 0.07, %v1958_v62  ;;  %vm1968_vm11 = vcmp.eq.f32.partialorder %v4276_v27, inf  ;;  %v5039_v62 = vld [vmem:[#allocation47_spill] sm:$0xff] }
 0x2d1   : > { %2908 = vrsqrt.f32 %v4312_v46  ;;  %650 = vmin.xlane.f32.xlu1 %v5038_v12  ;;  %v2903_v26 = vpop.eup %2902  ;;  %v4355_v2 = vmul.f32 %v2901_v44, %v2083_v39  ;;  %v1971_v29 = vand.u32 2147483648, %v4276_v27  ;;  %v2042_v45 = vmul.f32 1111.1111, %v2026_v35 }
 0x2d2   : > { %2910 = vrsqrt.f32 %v4309_v58  ;;  %v2905_v28 = vpop.eup %2904  ;;  %v1948_v25 = vsel %vm1947_vm9, %v4270_v53, %v1946_v34  ;;  %v2025_v24 = vsub.f32 0.0, %v4312_v46  ;;  %v1967_v54 = vmul.f32 %v2903_v26, %v4276_v27 }
 0x2d3   : > { %v4338_v51 = vpop.xlane.xlu0 %1879  ;;  %2912 = vpow2.f32 %v2059_v0  ;;  %v1964_v49 = vand.u32 2147483648, %v4298_v20  ;;  %v4366_v18 = vmax.f32 %v4321_v7, 1e-12  ;;  %vm1961_vm12 = vcmp.eq.f32.partialorder %v4298_v20, inf }
 0x2d4   : > { %v4346_v15 = vmax.f32 %v4338_v51, 1e-12  ;;  %v2063_v9 = vmul.f32 1.442695, %v2039_v22  ;;  %vm2137_vm13 = vcmp.le.f32.partialorder %v5039_v62, %v4305_v38  ;;  %v4375_v44 = vsel %vm1949_vm10, %v1950_v63, %v1948_v25 }
 0x2d5   : > { %v4353_v11 = vpop.xlane.xlu1 %1885  ;;  %vm1970_vm14 = vcmp.eq.f32.partialorder %v4276_v27, 0.0  ;;  %v4380_v35 = vmul.f32 %v2905_v28, %v2086_v55  ;;  %v2069_v40 = vmul.f32 1.442695, %v2042_v45  ;;  %vm1975_vm15 = vcmp.eq.f32.partialorder %v4312_v46, inf }
 0x2d6   : > { %2914 = vrsqrt.f32 %v4346_v15  ;;  %v2027_v10 = vsub.f32 0.0, %v4346_v15  ;;  %v2907_v32 = vpop.eup %2906  ;;  %v2041_v26 = vmul.f32 1111.1111, %v2025_v24  ;;  %v1969_v53 = vsel %vm1968_vm11, %v4276_v27, %v1967_v54 }
 0x2d7   : > { %v4361_v47 = vpop.xlane.xlu0 %1883  ;;  %2916 = vpow2.f32 %v2065_v23  ;;  %vm1963_vm2 = vcmp.eq.f32.partialorder %v4298_v20, 0.0  ;;  %vm1982_vm3 = vcmp.eq.f32.partialorder %v4309_v58, inf  ;;  %v2028_v25 = vsub.f32 0.0, %v4366_v18 }
 0x2d8   : > { %2918 = vrsqrt.f32 %v4366_v18  ;;  %v2043_v45 = vmul.f32 1111.1111, %v2027_v10  ;;  %v1960_v54 = vmul.f32 %v2907_v32, %v4298_v20  ;;  %vm2140_vm4 = vcmp.le.f32.partialorder %v4025_v16, %v4321_v7 }
 0x2d9   : > { %v863_v39 = vpop.xlane.xlu1 %862  ;;  %2920 = vpow2.f32 %v2063_v9  ;;  %vm2139_vm5 = vcmp.le.f32.partialorder %v4042_v3, %v4338_v51  ;;  %vm1984_vm6 = vcmp.eq.f32.partialorder %v4309_v58, 0.0  ;;  %v2153_v28 = vsel %vm2137_vm13, 1e+30, %v5039_v62 }
 0x2da   : > { %v892_v34 = vadd.f32 %v4290_v14, %v863_v39  ;;  %2922 = vpow2.f32 %v2069_v40  ;;  %vm680_vm0 = vcmask 7168   ;;  %v2155_v62 = vsel %vm2139_vm5, 1e+30, %v4042_v3 }
 0x2db   : > { %v860_v23 = vpop.xlane.xlu0 %859  ;;  %v2909_v55 = vpop.eup %2908  ;;  %vm1977_vm7 = vcmp.eq.f32.partialorder %v4312_v46, 0.0  ;;  %vm2142_vm8 = vcmp.le.f32.partialorder %v4052_v19, %v4353_v11  ;;  %vm1989_vm9 = vcmp.eq.f32.partialorder %v4346_v15, inf  ;;  %vm1991_vm10 = vcmp.eq.f32.partialorder %v4346_v15, 0.0 }
 0x2dc   : > { %v908_v63 = vsub.f32 %v892_v34, %v4324_v17  ;;  %v891_v22 = vadd.f32 %v4290_v14, %v860_v23  ;;  %v2911_v39 = vpop.eup %2910  ;;  %v2067_v34 = vmul.f32 1.442695, %v2041_v26  ;;  %v1974_v9 = vmul.f32 %v2909_v55, %v4312_v46 }
 0x2dd   : > { %v869_v24 = vpop.xlane.xlu1 %868  ;;  %v4410_v40 = vpop.eup %2912  ;;  %v1981_v26 = vmul.f32 %v2911_v39, %v4309_v58  ;;  %vm1996_vm11 = vcmp.eq.f32.partialorder %v4366_v18, inf }
 0x2de   : > { %v894_v0 = vadd.f32 %v4290_v14, %v869_v24  ;;  %v4397_v12 = vsel %vm883_vm1, %v908_v63, inf  ;;  %v907_v17 = vsub.f32 %v891_v22, %v4330_v13  ;;  %v2044_v63 = vmul.f32 1111.1111, %v2028_v25 }
 0x2df   : > { %v866_v23 = vpop.xlane.xlu0 %865  ;;  %919 = vmin.xlane.f32.xlu1 %v4397_v12  ;;  %v2071_v22 = vmul.f32 1.442695, %v2043_v45  ;;  %v2156_v25 = vsel %vm2140_vm4, 1e+30, %v4025_v16  ;;  %2924 = vpow2.f32 %v2067_v34 }
 0x2e0   : > { %v910_v10 = vsub.f32 %v894_v0, %v4333_v37  ;;  %v893_v32 = vadd.f32 %v4290_v14, %v866_v23  ;;  %v915_v13 = vsel %vm883_vm1, %v907_v17, inf  ;;  %v2915_v55 = vpop.eup %2914  ;;  %v1962_v37 = vsel %vm1961_vm12, %v4298_v20, %v1960_v54 }
 0x2e1   : > { %916 = vmin.xlane.f32.xlu0 %v915_v13  ;;  %v875_v24 = vpop.xlane.xlu1 %874  ;;  %v4426_v45 = vpop.eup %2916  ;;  %v1976_v54 = vsel %vm1975_vm15, %v4312_v46, %v1974_v9  ;;  %2926 = vpow2.f32 %v2071_v22  ;;  %v4451_v27 = vsel %vm1963_vm2, %v1964_v49, %v1962_v37  ;;  %v1988_v51 = vmul.f32 %v2915_v55, %v4346_v15 }
 0x2e2   : > { %v909_v0 = vsub.f32 %v893_v32, %v4349_v61  ;;  %v896_v17 = vadd.f32 %v4290_v14, %v875_v24  ;;  %v4436_v61 = vsel %vm1970_vm14, %v1971_v29, %v1969_v53  ;;  %v2919_v29 = vpop.eup %2918  ;;  %v924_v34 = vsel %vm883_vm1, %v910_v10, inf }
 0x2e3   : > { %v872_v38 = vpop.xlane.xlu0 %871  ;;  %v2921_v9 = vpop.eup %2920  ;;  %v5040_v49 = vand.u32 2147483648, %v4312_v46  ;;  %v5041_v24 = vand.u32 2147483648, %v4309_v58  ;;  %vm1998_vm12 = vcmp.eq.f32.partialorder %v4366_v18, 0.0 }
 0x2e4   : > { %v912_v7 = vsub.f32 %v896_v17, %v4293_v33  ;;  %v895_v16 = vadd.f32 %v4290_v14, %v872_v38  ;;  %v921_v39 = vsel %vm883_vm1, %v909_v0, inf  ;;  %v1983_v33 = vsel %vm1982_vm3, %v4309_v58, %v1981_v26  ;;  %v2923_v55 = vpop.eup %2922 }
 0x2e5   : > { %2179 = vmin.xlane.f32.xlu0 %v2153_v28  ;;  %922 = vmin.xlane.f32.xlu1 %v921_v39  ;;  %v881_v3 = vpop.xlane.xlu1 %880  ;;  %v1979_v26 = vsel %vm1977_vm7, %v5040_v49, %v1976_v54  ;;  %v1990_v0 = vsel %vm1989_vm9, %v4346_v15, %v1988_v51  ;;  %v1992_v17 = vand.u32 2147483648, %v4346_v15  ;;  %v2088_v49 = vsub.f32 0.07, %v4436_v61 }
 0x2e6   : > { %v911_v53 = vsub.f32 %v895_v16, %v4302_v41  ;;  %v898_v28 = vadd.f32 %v4290_v14, %v881_v3  ;;  %v930_v23 = vsel %vm883_vm1, %v912_v7, inf  ;;  %v2073_v16 = vmul.f32 1.442695, %v2044_v63 }
 0x2e7   : > { %v878_v32 = vpop.xlane.xlu0 %877  ;;  %v972_v20 = vmin.f32 %v4397_v12, %v930_v23  ;;  %v1986_v12 = vsel %vm1984_vm6, %v5041_v24, %v1983_v33  ;;  %v1993_v63 = vsel %vm1991_vm10, %v1992_v17, %v1990_v0  ;;  %v2158_v15 = vsel %vm2142_vm8, 1e+30, %v4052_v19 }
 0x2e8   : > { %v914_v41 = vsub.f32 %v898_v28, %v4315_v6  ;;  %v897_v22 = vadd.f32 %v4290_v14, %v878_v32  ;;  %v927_v10 = vsel %vm883_vm1, %v911_v53, inf  ;;  %v1995_v6 = vmul.f32 %v2919_v29, %v4366_v18 }
 0x2e9   : > { %2185 = vmin.xlane.f32.xlu0 %v2156_v25  ;;  %925 = vmin.xlane.f32.xlu1 %v924_v34  ;;  %v635_v46 = vpop.xlane.xlu1 %634  ;;  %v971_v37 = vmin.f32 %v915_v13, %v927_v10  ;;  %2928 = vpow2.f32 %v2073_v16  ;;  %v2925_v51 = vpop.eup %2924  ;;  %v1999_v28 = vand.u32 2147483648, %v4366_v18  ;;  %v2090_v24 = vsub.f32 0.07, %v1986_v12 }
 0x2ea   : > { %v913_v14 = vsub.f32 %v897_v22, %v4318_v43  ;;  %v665_v38 = vmax.f32 %v635_v46, 0.0  ;;  %v936_v7 = vsel %vm883_vm1, %v914_v41, inf  ;;  %v1997_v53 = vsel %vm1996_vm11, %v4366_v18, %v1995_v6 }
 0x2eb   : > { %v633_v54 = vpop.xlane.xlu0 %632  ;;  %v975_v58 = vmin.f32 %v971_v37, %v972_v20  ;;  %v974_v3 = vmin.f32 %v924_v34, %v936_v7  ;;  %v2087_v20 = vsub.f32 0.07, %v4451_v27  ;;  %v2927_v41 = vpop.eup %2926  ;;  %v2000_v46 = vsel %vm1998_vm12, %v1999_v28, %v1997_v53  ;;  %v5054_v53 = vld [vmem:[#allocation23_spill] sm:$0xff]  ;;  %v5056_v28 = vld [vmem:[#allocation26_spill] sm:$0xff] }
 0x2ec   : > { %v682_v13 = vsel %vm680_vm0, %v665_v38, 0.0  ;;  %v664_v25 = vmax.f32 %v633_v54, 0.0  ;;  %v933_v33 = vsel %vm883_vm1, %v913_v14, inf  ;;  %v2091_v37 = vsub.f32 0.07, %v1993_v63 }
 0x2ed   : > { %2183 = vmin.xlane.f32.xlu0 %v2155_v62  ;;  %928 = vmin.xlane.f32.xlu1 %v927_v10  ;;  %v637_v43 = vpop.xlane.xlu1 %636  ;;  %v973_v29 = vmin.f32 %v921_v39, %v933_v33  ;;  %v2089_v10 = vsub.f32 0.07, %v1979_v26  ;;  %vm2141_vm1 = vcmp.le.f32.partialorder %v4055_v8, %v4361_v47  ;;  %v5042_v0 = vsub.f32 0.07, %v4375_v44 }
 0x2ee   : > { %v681_v34 = vsel %vm680_vm0, %v664_v25, 0.0  ;;  %v666_v32 = vmax.f32 %v637_v43, 0.0  ;;  %v2103_v6 = vmul.f32 %v2921_v9, %v2087_v20  ;;  %v2092_v19 = vsub.f32 0.07, %v2000_v46  ;;  %v5060_v20 = vld [vmem:[#allocation27_spill] sm:$0xff] }
 0x2ef   : > { %v683_v22 = vadd.f32 %v682_v13, %v681_v34  ;;  %v976_v62 = vmin.f32 %v973_v29, %v974_v3  ;;  %v2101_v17 = vmul.f32 %v4410_v40, %v5042_v0  ;;  %v2104_v18 = vmul.f32 %v4426_v45, %v2088_v49  ;;  %v5051_v29 = vld [vmem:[#allocation24_spill] sm:$0xff] }
 0x2f0   : > { %v684_v39 = vsel %vm680_vm0, %v666_v32, 0.0  ;;  %v2105_v14 = vmul.f32 %v2925_v51, %v2089_v10  ;;  %v2106_v38 = vmul.f32 %v2923_v55, %v2090_v24  ;;  %v2157_v54 = vsel %vm2141_vm1, 1e+30, %v4055_v8  ;;  %v5048_v51 = vld [vmem:[#allocation19_spill] sm:$0xff]  ;;  %v5057_v34 = vld [vmem:[#allocation28_spill] sm:$0xff] }
 0x2f1   : > { %v685_v61 = vadd.f32 %v684_v39, %v683_v22  ;;  %2189 = vmin.xlane.f32.xlu0 %v2158_v15  ;;  %931 = vmin.xlane.f32.xlu1 %v930_v23  ;;  %v639_v27 = vpop.xlane.xlu1 %638  ;;  %v4500_v26 = vmin.f32 %v975_v58, %v976_v62  ;;  %v2107_v3 = vmul.f32 %v2927_v41, %v2091_v37  ;;  %v5043_v23 = vld [vmem:[#allocation44_spill] sm:$0xff]  ;;  %v5063_v62 = vld [vmem:[#allocation31_spill] sm:$0xff]  ;;  %v4563_v15 = vpop.xlane.xlu0 %644 }
 0x2f2   : > { %v667_v12 = vmax.f32 %v639_v27, 0.0  ;;  %v4510_v58 = vadd.f32 %v4355_v2, %v5043_v23  ;;  %v4515_v44 = vadd.f32 %v2101_v17, %v4117_v1  ;;  %v4519_v40 = vadd.f32 %v4380_v35, %v4121_v52  ;;  %v5045_v52 = vld [vmem:[#allocation20_spill] sm:$0xff] }
 0x2f3   : > { %v2929_v45 = vpop.eup %2928  ;;  %v4522_v9 = vadd.f32 %v2103_v6, %v4124_v48  ;;  %v4525_v8 = vadd.f32 %v2104_v18, %v4127_v30  ;;  %v4528_v55 = vadd.f32 %v2105_v14, %v4130_v57  ;;  %v4531_v25 = vadd.f32 %v2106_v38, %v4132_v50  ;;  %v5047_v30 = vld [vmem:[#allocation17_spill] sm:$0xff]  ;;  %v5050_v57 = vld [vmem:[#allocation22_spill] sm:$0xff]  ;;  %v5062_v41 = vld [vmem:[#allocation32_spill] sm:$0xff] }
 0x2f4   : > { %v686_v16 = vsel %vm680_vm0, %v667_v12, 0.0  ;;  %v2108_v2 = vmul.f32 %v2929_v45, %v2092_v19  ;;  %v4534_v1 = vadd.f32 %v2107_v3, %v4134_v59  ;;  %v5049_v43 = vsub.f32 %v5047_v30, %v5048_v51  ;;  %v5053_v50 = vld [vmem:[#allocation21_spill] sm:$0xff] }
 0x2f5   : > { %v4512_v13 = vadd.f32 %v686_v16, %v685_v61  ;;  %2187 = vmin.xlane.f32.xlu0 %v2157_v54  ;;  %934 = vmin.xlane.f32.xlu1 %v933_v33  ;;  %v5044_v33 = vld [vmem:[#allocation18_spill] sm:$0xff]  ;;  %v5052_v63 = vsub.f32 %v5050_v57, %v5051_v29  ;;  %v5055_v59 = vsub.f32 %v5053_v50, %v5054_v53  ;;  %v4557_v49 = vpop.xlane.xlu1 %640  ;;  %v1293_v22 = vmax.f32 %v5062_v41, 1e-12  ;;  %v4567_v61 = vpop.xlane.xlu0 %648 }
 0x2f6   : > { %v5046_v35 = vsub.f32 %v5044_v33, %v5045_v52  ;;  %v4540_v48 = vadd.f32 %v2108_v2, %v4137_v56  ;;  %v5058_v32 = vsub.f32 %v5056_v28, %v5057_v34  ;;  %v1294_v10 = vmax.f32 %v5063_v62, 1e-12 }
 0x2f7   : > { %2930 = vrsqrt.f32 %v1293_v22  ;;  %v1421_v39 = vsub.f32 0.0, %v1293_v22  ;;  %v4570_v16 = vmax.f32 %v4029_v60, 1e-12  ;;  %v4575_v23 = vmax.f32 %v4018_v42, 1e-12 }
 0x2f8   : > { %2932 = vrsqrt.f32 %v1294_v10  ;;  %v1422_v38 = vsub.f32 0.0, %v1294_v10  ;;  %vm1395_vm13 = vcmp.eq.f32.partialorder %v1293_v22, inf  ;;  %v1398_v30 = vand.u32 2147483648, %v1293_v22 }
 0x2f9   : > { %652 = vmin.xlane.f32.xlu0 %v5046_v35  ;;  %937 = vmin.xlane.f32.xlu1 %v936_v7  ;;  %v5059_v7 = vld [vmem:[#allocation25_spill] sm:$0xff]  ;;  %v4561_v24 = vpop.xlane.xlu1 %642  ;;  %v1437_v37 = vmul.f32 1111.1111, %v1421_v39  ;;  %v1725_v60 = vsub.f32 0.0, %v4570_v16  ;;  %vm1397_vm14 = vcmp.eq.f32.partialorder %v1293_v22, 0.0  ;;  %vm1402_vm15 = vcmp.eq.f32.partialorder %v1294_v10, inf }
 0x2fa   : > { %v5061_v56 = vsub.f32 %v5059_v7, %v5060_v20  ;;  %v1438_v35 = vmul.f32 1111.1111, %v1422_v38  ;;  %v1405_v29 = vand.u32 2147483648, %v1294_v10  ;;  %vm1404_vm2 = vcmp.eq.f32.partialorder %v1294_v10, 0.0 }
 0x2fb   : > { %v1467_v17 = vmul.f32 1.442695, %v1437_v37  ;;  %v1741_v28 = vmul.f32 1111.1111, %v1725_v60  ;;  %v1726_v39 = vsub.f32 0.0, %v4575_v23  ;;  %vm1699_vm7 = vcmp.eq.f32.partialorder %v4570_v16, inf }
 0x2fc   : > { %v1469_v53 = vmul.f32 1.442695, %v1438_v35  ;;  %vm1701_vm8 = vcmp.eq.f32.partialorder %v4570_v16, 0.0  ;;  %vm1706_vm9 = vcmp.eq.f32.partialorder %v4575_v23, inf }
 0x2fd   : > { %654 = vmin.xlane.f32.xlu0 %v5049_v43  ;;  %v4565_v46 = vpop.xlane.xlu1 %646 }
 0x301   : > { %656 = vmin.xlane.f32.xlu0 %v5052_v63  ;;  %v2931_v12 = vpop.eup %2930 }
 0x302   : > { %v2933_v6 = vpop.eup %2932  ;;  %v1394_v14 = vmul.f32 %v2931_v12, %v1293_v22 }
 0x303   : > { %v1401_v45 = vmul.f32 %v2933_v6, %v1294_v10 }
 0x304   : > { %v1396_v52 = vsel %vm1395_vm13, %v1293_v22, %v1394_v14  ;;  %vm1708_vm13 = vcmp.eq.f32.partialorder %v4575_v23, 0.0 }
 0x305   : > { %658 = vmin.xlane.f32.xlu0 %v5055_v59  ;;  %v1399_v43 = vsel %vm1397_vm14, %v1398_v30, %v1396_v52  ;;  %v1403_v57 = vsel %vm1402_vm15, %v1294_v10, %v1401_v45 }
 0x306   : > { %v1485_v7 = vsub.f32 0.07, %v1399_v43 }
 0x309   : > { %660 = vmin.xlane.f32.xlu0 %v5058_v32  ;;  %v4584_v32 = vsel %vm1404_vm2, %v1405_v29, %v1403_v57 }
 0x30d   : > { %662 = vmin.xlane.f32.xlu0 %v5061_v56 }
 0x335   : > { %v2162_v27 = vpop.xlane.xlu1 %2161 }
 0x336   : > { %v2192_v0 = vmax.f32 %v2162_v27, 1e-12  ;;  %v2160_v18 = vpop.xlane.xlu0 %2159 }
 0x337   : > { %v4572_v54 = vmax.f32 %v2160_v18, 1e-12  ;;  %v1486_v18 = vsub.f32 0.07, %v4584_v32 }
 0x338   : > { %2934 = vrsqrt.f32 %v2192_v0  ;;  %v2320_v19 = vsub.f32 0.0, %v2192_v0  ;;  %vm2216_vm3 = vcmp.eq.f32.partialorder %v2192_v0, inf  ;;  %v2219_v56 = vand.u32 2147483648, %v2192_v0 }
 0x339   : > { %2936 = vpow2.f32 %v1467_v17  ;;  %v2319_v33 = vsub.f32 0.0, %v4572_v54  ;;  %v2166_v42 = vpop.xlane.xlu1 %2165  ;;  %vm2218_vm4 = vcmp.eq.f32.partialorder %v2192_v0, 0.0  ;;  %v1771_v17 = vmul.f32 1.442695, %v1741_v28 }
 0x33a   : > { %v2336_v3 = vmul.f32 1111.1111, %v2320_v19  ;;  %2938 = vrsqrt.f32 %v4572_v54  ;;  %v4582_v50 = vmax.f32 %v2166_v42, 1e-12  ;;  %v2164_v62 = vpop.xlane.xlu0 %2163  ;;  %vm2209_vm5 = vcmp.eq.f32.partialorder %v4572_v54, inf }
 0x33b   : > { %2940 = vrsqrt.f32 %v4570_v16  ;;  %v2335_v51 = vmul.f32 1111.1111, %v2319_v33  ;;  %v4589_v12 = vmax.f32 %v2164_v62, 1e-12  ;;  %vm2211_vm6 = vcmp.eq.f32.partialorder %v4572_v54, 0.0 }
 0x33c   : > { %v2353_v2 = vmul.f32 1.442695, %v2336_v3  ;;  %v2322_v41 = vsub.f32 0.0, %v4582_v50  ;;  %v1742_v42 = vmul.f32 1111.1111, %v1726_v39  ;;  %vm2230_vm10 = vcmp.eq.f32.partialorder %v4582_v50, inf }
 0x33d   : > { %v2351_v63 = vmul.f32 1.442695, %v2335_v51  ;;  %v2321_v33 = vsub.f32 0.0, %v4589_v12  ;;  %v2170_v30 = vpop.xlane.xlu1 %2169  ;;  %vm2232_vm11 = vcmp.eq.f32.partialorder %v4582_v50, 0.0  ;;  %vm2223_vm12 = vcmp.eq.f32.partialorder %v4589_v12, inf }
 0x33e   : > { %2942 = vpow2.f32 %v2353_v2  ;;  %v2338_v27 = vmul.f32 1111.1111, %v2322_v41  ;;  %v4602_v29 = vmax.f32 %v2170_v30, 1e-12  ;;  %vm2225_vm1 = vcmp.eq.f32.partialorder %v4589_v12, 0.0 }
 0x33f   : > { %2944 = vrsqrt.f32 %v4575_v23  ;;  %v2337_v57 = vmul.f32 1111.1111, %v2321_v33 }
 0x340   : > { %2946 = vpow2.f32 %v2351_v63  ;;  %v2357_v3 = vmul.f32 1.442695, %v2338_v27  ;;  %vm2244_vm14 = vcmp.eq.f32.partialorder %v4602_v29, inf  ;;  %vm2246_vm2 = vcmp.eq.f32.partialorder %v4602_v29, 0.0 }
 0x341   : > { %2948 = vrsqrt.f32 %v4582_v50  ;;  %v2355_v28 = vmul.f32 1.442695, %v2337_v57 }
 0x342   : > { %v2935_v59 = vpop.eup %2934  ;;  %2950 = vpow2.f32 %v1469_v53 }
 0x343   : > { %v2215_v34 = vmul.f32 %v2935_v59, %v2192_v0  ;;  %v2937_v20 = vpop.eup %2936  ;;  %2952 = vrsqrt.f32 %v4589_v12 }
 0x344   : > { %v2939_v37 = vpop.eup %2938  ;;  %v4593_v14 = vmul.f32 %v2937_v20, %v1485_v7  ;;  %v2168_v51 = vpop.xlane.xlu0 %2167  ;;  %2954 = vpow2.f32 %v1771_v17  ;;  %v1709_v7 = vand.u32 2147483648, %v4575_v23 }
 0x345   : > { %v2217_v22 = vsel %vm2216_vm3, %v2192_v0, %v2215_v34  ;;  %v2208_v19 = vmul.f32 %v2939_v37, %v4572_v54  ;;  %v2941_v38 = vpop.eup %2940  ;;  %v2212_v0 = vand.u32 2147483648, %v4572_v54  ;;  %2956 = vpow2.f32 %v2357_v3 }
 0x346   : > { %v2220_v10 = vsel %vm2218_vm4, %v2219_v56, %v2217_v22  ;;  %v1698_v63 = vmul.f32 %v2941_v38, %v4570_v16  ;;  %v4605_v53 = vmax.f32 %v2168_v51, 1e-12  ;;  %2958 = vrsqrt.f32 %v4602_v29 }
 0x347   : > { %v2384_v6 = vsub.f32 0.07, %v2220_v10  ;;  %v2210_v2 = vsel %vm2209_vm5, %v4572_v54, %v2208_v19  ;;  %v1702_v54 = vand.u32 2147483648, %v4570_v16  ;;  %v2324_v22 = vsub.f32 0.0, %v4602_v29 }
 0x348   : > { %v2943_v45 = vpop.eup %2942  ;;  %v2213_v60 = vsel %vm2211_vm6, %v2212_v0, %v2210_v2  ;;  %2960 = vrsqrt.f32 %v4605_v53  ;;  %v1700_v37 = vsel %vm1699_vm7, %v4570_v16, %v1698_v63  ;;  %v1773_v10 = vmul.f32 1.442695, %v1742_v42 }
 0x349   : > { %v2945_v52 = vpop.eup %2944  ;;  %v2400_v35 = vmul.f32 %v2943_v45, %v2384_v6  ;;  %v2383_v43 = vsub.f32 0.07, %v2213_v60  ;;  %2962 = vpow2.f32 %v2355_v28  ;;  %v2323_v17 = vsub.f32 0.0, %v4605_v53 }
 0x34a   : > { %v2947_v59 = vpop.eup %2946  ;;  %v1705_v34 = vmul.f32 %v2945_v52, %v4575_v23  ;;  %v2233_v38 = vand.u32 2147483648, %v4582_v50  ;;  %v1703_v60 = vsel %vm1701_vm8, %v1702_v54, %v1700_v37  ;;  %vm2237_vm15 = vcmp.eq.f32.partialorder %v4605_v53, inf }
 0x34b   : > { %v2949_v20 = vpop.eup %2948  ;;  %v2416_v56 = vadd.f32 %v2400_v35, %v4233_v5  ;;  %v2399_v41 = vmul.f32 %v2947_v59, %v2383_v43  ;;  %v2340_v5 = vmul.f32 1111.1111, %v2324_v22  ;;  %v2174_v6 = vpop.xlane.xlu1 %2173  ;;  %v2339_v2 = vmul.f32 1111.1111, %v2323_v17 }
 0x34c   : > { %v4616_v62 = vpop.eup %2950  ;;  %v2229_v39 = vmul.f32 %v2949_v20, %v4582_v50  ;;  %v4628_v0 = vmax.f32 %v2174_v6, 1e-12  ;;  %v1707_v54 = vsel %vm1706_vm9, %v4575_v23, %v1705_v34  ;;  %vm2239_vm3 = vcmp.eq.f32.partialorder %v4605_v53, 0.0 }
 0x34d   : > { %v2415_v27 = vadd.f32 %v2399_v41, %v4242_v21  ;;  %v2953_v3 = vpop.eup %2952  ;;  %v2361_v45 = vmul.f32 1.442695, %v2340_v5  ;;  %v2432_v21 = vsel %vm680_vm0, %v2416_v56, 0.0  ;;  %v2359_v51 = vmul.f32 1.442695, %v2339_v2 }
 0x34e   : > { %v2231_v19 = vsel %vm2230_vm10, %v4582_v50, %v2229_v39  ;;  %v2222_v35 = vmul.f32 %v2953_v3, %v4589_v12  ;;  %2964 = vrsqrt.f32 %v4628_v0  ;;  %v2955_v30 = vpop.eup %2954  ;;  %v2226_v50 = vand.u32 2147483648, %v4589_v12 }
 0x34f   : > { %v2431_v33 = vsel %vm680_vm0, %v2415_v27, 0.0  ;;  %v2234_v52 = vsel %vm2232_vm11, %v2233_v38, %v2231_v19  ;;  %2966 = vpow2.f32 %v2361_v45  ;;  %v2326_v43 = vsub.f32 0.0, %v4628_v0  ;;  %v2957_v63 = vpop.eup %2956 }
 0x350   : > { %v2224_v42 = vsel %vm2223_vm12, %v4589_v12, %v2222_v35  ;;  %v2433_v57 = vadd.f32 %v2432_v21, %v2431_v33  ;;  %v2386_v59 = vsub.f32 0.07, %v2234_v52  ;;  %2968 = vpow2.f32 %v2359_v51  ;;  %v2959_v28 = vpop.eup %2958 }
 0x351   : > { %v2227_v16 = vsel %vm2225_vm1, %v2226_v50, %v2224_v42  ;;  %v2342_v56 = vmul.f32 1111.1111, %v2326_v43  ;;  %2970 = vpow2.f32 %v1773_v10  ;;  %v1789_v41 = vsub.f32 0.07, %v1703_v60 }
 0x352   : > { %v2385_v20 = vsub.f32 0.07, %v2227_v16  ;;  %v2961_v22 = vpop.eup %2960  ;;  %v4646_v12 = vmax.f32 %v4353_v11, 1e-12  ;;  %v4649_v39 = vmax.f32 %v4361_v47, 1e-12  ;;  %v2243_v37 = vmul.f32 %v2959_v28, %v4602_v29  ;;  %v2172_v17 = vpop.xlane.xlu0 %2171 }
 0x353   : > { %v2963_v27 = vpop.eup %2962  ;;  %v2247_v5 = vand.u32 2147483648, %v4602_v29  ;;  %v2236_v34 = vmul.f32 %v2961_v22, %v4605_v53  ;;  %v2240_v10 = vand.u32 2147483648, %v4605_v53  ;;  %v2402_v6 = vmul.f32 %v2957_v63, %v2386_v59 }
 0x354   : > { %v2401_v11 = vmul.f32 %v2963_v27, %v2385_v20  ;;  %v2245_v19 = vsel %vm2244_vm14, %v4602_v29, %v2243_v37  ;;  %v4658_v47 = vmax.f32 %v2172_v17, 1e-12  ;;  %v2365_v3 = vmul.f32 1.442695, %v2342_v56 }
 0x355   : > { %v2238_v38 = vsel %vm2237_vm15, %v4605_v53, %v2236_v34  ;;  %v2248_v2 = vsel %vm2246_vm2, %v2247_v5, %v2245_v19  ;;  %v4670_v29 = vsel %vm1708_vm13, %v1709_v7, %v1707_v54  ;;  %v1805_v35 = vmul.f32 %v2955_v30, %v1789_v41 }
 0x356   : > { %v2417_v45 = vadd.f32 %v2401_v11, %v4268_v4  ;;  %v2241_v33 = vsel %vm2239_vm3, %v2240_v10, %v2238_v38  ;;  %2972 = vrsqrt.f32 %v4658_v47  ;;  %v2325_v53 = vsub.f32 0.0, %v4658_v47  ;;  %v2178_v4 = vpop.xlane.xlu1 %2177 }
 0x357   : > { %2974 = vrsqrt.f32 %v4649_v39  ;;  %v2387_v52 = vsub.f32 0.07, %v2241_v33  ;;  %v2418_v60 = vadd.f32 %v2402_v6, %v4264_v31  ;;  %v2388_v42 = vsub.f32 0.07, %v2248_v2 }
 0x358   : > { %v2965_v21 = vpop.eup %2964  ;;  %2976 = vrsqrt.f32 %v4646_v12  ;;  %v2434_v50 = vsel %vm680_vm0, %v2417_v45, 0.0  ;;  %v4677_v63 = vmax.f32 %v2178_v4, 1e-12  ;;  %v2341_v7 = vmul.f32 1111.1111, %v2325_v53  ;;  %v2176_v56 = vpop.xlane.xlu0 %2175 }
 0x359   : > { %v2967_v51 = vpop.eup %2966  ;;  %v2257_v43 = vmul.f32 %v2965_v21, %v4628_v0  ;;  %v2435_v59 = vadd.f32 %v2434_v50, %v2433_v57  ;;  %2978 = vpow2.f32 %v2365_v3  ;;  %v4682_v30 = vmul.f32 %v4616_v62, %v1486_v18 }
 0x35a   : > { %v2969_v23 = vpop.eup %2968  ;;  %2980 = vrsqrt.f32 %v4677_v63  ;;  %v1790_v54 = vsub.f32 0.07, %v4670_v29  ;;  %v4689_v28 = vadd.f32 %v1805_v35, %v4593_v14  ;;  %vm2258_vm4 = vcmp.eq.f32.partialorder %v4628_v0, inf  ;;  %v2182_v41 = vpop.xlane.xlu1 %2181 }
 0x35b   : > { %v4684_v16 = vpop.eup %2970  ;;  %v2403_v31 = vmul.f32 %v2969_v23, %v2387_v52  ;;  %v2261_v57 = vand.u32 2147483648, %v4628_v0  ;;  %v2363_v20 = vmul.f32 1.442695, %v2341_v7  ;;  %v2328_v32 = vsub.f32 0.0, %v4677_v63 }
 0x35c   : > { %v2259_v18 = vsel %vm2258_vm4, %v4628_v0, %v2257_v43  ;;  %v4695_v62 = vmax.f32 %v2176_v56, 1e-12  ;;  %v2404_v22 = vmul.f32 %v2967_v51, %v2388_v42  ;;  %v2436_v37 = vsel %vm680_vm0, %v2418_v60, 0.0 }
 0x35d   : > { %2982 = vpow2.f32 %v2363_v20  ;;  %v2344_v27 = vmul.f32 1111.1111, %v2328_v32  ;;  %v4698_v14 = vmax.f32 %v2182_v41, 1e-12  ;;  %v2437_v5 = vadd.f32 %v2436_v37, %v2435_v59 }
 0x35e   : > { %vm2260_vm5 = vcmp.eq.f32.partialorder %v4628_v0, 0.0  ;;  %2984 = vrsqrt.f32 %v4695_v62  ;;  %v2029_v34 = vsub.f32 0.0, %v4649_v39  ;;  %v2419_v10 = vadd.f32 %v2403_v31, %v4510_v58 }
 0x35f   : > { %v2369_v6 = vmul.f32 1.442695, %v2344_v27  ;;  %v2327_v11 = vsub.f32 0.0, %v4695_v62  ;;  %2986 = vrsqrt.f32 %v4698_v14  ;;  %v2262_v19 = vsel %vm2260_vm5, %v2261_v57, %v2259_v18  ;;  %v4727_v27 = vpop.xlane.xlu1 %650 }
 0x360   : > { %v2973_v17 = vpop.eup %2972  ;;  %vm2251_vm6 = vcmp.eq.f32.partialorder %v4658_v47, inf  ;;  %vm2253_vm7 = vcmp.eq.f32.partialorder %v4658_v47, 0.0  ;;  %vm2003_vm8 = vcmp.eq.f32.partialorder %v4649_v39, inf  ;;  %v2030_v0 = vsub.f32 0.0, %v4646_v12 }
 0x361   : > { %v2975_v38 = vpop.eup %2974  ;;  %v2250_v3 = vmul.f32 %v2973_v17, %v4658_v47  ;;  %v2254_v58 = vand.u32 2147483648, %v4658_v47  ;;  %v2343_v2 = vmul.f32 1111.1111, %v2327_v11  ;;  %v2330_v33 = vsub.f32 0.0, %v4698_v14 }
 0x362   : > { %v2977_v45 = vpop.eup %2976  ;;  %v2420_v21 = vadd.f32 %v2404_v22, %v4280_v36  ;;  %2988 = vpow2.f32 %v2369_v6  ;;  %v2390_v35 = vsub.f32 0.07, %v2262_v19  ;;  %v2438_v53 = vsel %vm680_vm0, %v2419_v10, 0.0 }
 0x363   : > { %v2252_v52 = vsel %vm2251_vm6, %v4658_v47, %v2250_v3  ;;  %v2979_v4 = vpop.eup %2978  ;;  %v2367_v50 = vmul.f32 1.442695, %v2343_v2  ;;  %v2002_v51 = vmul.f32 %v2975_v38, %v4649_v39  ;;  %v2006_v42 = vand.u32 2147483648, %v4649_v39 }
 0x364   : > { %v2255_v60 = vsel %vm2253_vm7, %v2254_v58, %v2252_v52  ;;  %v2981_v43 = vpop.eup %2980  ;;  %v2045_v23 = vmul.f32 1111.1111, %v2029_v34  ;;  %v2046_v7 = vmul.f32 1111.1111, %v2030_v0  ;;  %v2439_v31 = vadd.f32 %v2438_v53, %v2437_v5 }
 0x365   : > { %v2389_v59 = vsub.f32 0.07, %v2255_v60  ;;  %v2271_v36 = vmul.f32 %v2981_v43, %v4677_v63  ;;  %2990 = vpow2.f32 %v2367_v50  ;;  %v2346_v47 = vmul.f32 1111.1111, %v2330_v33 }
 0x366   : > { %v2440_v57 = vsel %vm680_vm0, %v2420_v21, 0.0  ;;  %vm2272_vm9 = vcmp.eq.f32.partialorder %v4677_v63, inf  ;;  %v2275_v20 = vand.u32 2147483648, %v4677_v63  ;;  %v2406_v32 = vmul.f32 %v2979_v4, %v2390_v35 }
 0x367   : > { %v2441_v56 = vadd.f32 %v2440_v57, %v2439_v31  ;;  %v2983_v18 = vpop.eup %2982  ;;  %v2273_v41 = vsel %vm2272_vm9, %v4677_v63, %v2271_v36  ;;  %vm2274_vm10 = vcmp.eq.f32.partialorder %v4677_v63, 0.0  ;;  %vm2005_vm11 = vcmp.eq.f32.partialorder %v4649_v39, 0.0 }
 0x368   : > { %v2009_v22 = vmul.f32 %v2977_v45, %v4646_v12  ;;  %vm2010_vm12 = vcmp.eq.f32.partialorder %v4646_v12, inf  ;;  %v2985_v37 = vpop.eup %2984  ;;  %vm2012_vm1 = vcmp.eq.f32.partialorder %v4646_v12, 0.0  ;;  %v2075_v5 = vmul.f32 1.442695, %v2045_v23 }
 0x369   : > { %v2276_v34 = vsel %vm2274_vm10, %v2275_v20, %v2273_v41  ;;  %v2405_v10 = vmul.f32 %v2983_v18, %v2389_v59  ;;  %v2987_v17 = vpop.eup %2986  ;;  %v2264_v6 = vmul.f32 %v2985_v37, %v4695_v62  ;;  %v2373_v11 = vmul.f32 1.442695, %v2346_v47 }
 0x36a   : > { %v2004_v63 = vsel %vm2003_vm8, %v4649_v39, %v2002_v51  ;;  %v2077_v19 = vmul.f32 1.442695, %v2046_v7  ;;  %vm2265_vm13 = vcmp.eq.f32.partialorder %v4695_v62, inf  ;;  %v2268_v38 = vand.u32 2147483648, %v4695_v62 }
 0x36b   : > { %v2421_v3 = vadd.f32 %v2405_v10, %v4515_v44  ;;  %v2422_v0 = vadd.f32 %v2406_v32, %v4519_v40  ;;  %v668_v45 = vmax.f32 %v4557_v49, 0.0  ;;  %v2266_v58 = vsel %vm2265_vm13, %v4695_v62, %v2264_v6 }
 0x36c   : > { %vm2267_vm14 = vcmp.eq.f32.partialorder %v4695_v62, 0.0  ;;  %v2392_v2 = vsub.f32 0.07, %v2276_v34  ;;  %v2989_v33 = vpop.eup %2988  ;;  %v2285_v21 = vmul.f32 %v2987_v17, %v4698_v14  ;;  %v4742_v52 = vpop.xlane.xlu1 %919  ;;  %2992 = vpow2.f32 %v2075_v5 }
 0x36d   : > { %v2269_v35 = vsel %vm2267_vm14, %v2268_v38, %v2266_v58  ;;  %v2442_v53 = vsel %vm680_vm0, %v2421_v3, 0.0  ;;  %v669_v44 = vmax.f32 %v4561_v24, 0.0  ;;  %2994 = vpow2.f32 %v2373_v11 }
 0x36e   : > { %v2391_v40 = vsub.f32 0.07, %v2269_v35  ;;  %v2443_v4 = vadd.f32 %v2442_v53, %v2441_v56  ;;  %v917_v49 = vpop.xlane.xlu0 %916  ;;  %v2011_v62 = vsel %vm2010_vm12, %v4646_v12, %v2009_v22  ;;  %v2013_v60 = vand.u32 2147483648, %v4646_v12 }
 0x36f   : > { %2996 = vpow2.f32 %v2077_v19  ;;  %v2444_v50 = vsel %vm680_vm0, %v2422_v0, 0.0  ;;  %v2991_v51 = vpop.eup %2990  ;;  %v688_v43 = vsel %vm680_vm0, %v668_v45, 0.0  ;;  %vm2286_vm15 = vcmp.eq.f32.partialorder %v4698_v14, inf }
 0x370   : > { %v2408_v59 = vmul.f32 %v2989_v33, %v2392_v2  ;;  %v2445_v24 = vadd.f32 %v2444_v50, %v2443_v4  ;;  %v978_v23 = vrot.slane %v4500_v26, 4  ;;  %v2007_v7 = vsel %vm2005_vm11, %v2006_v42, %v2004_v63 }
 0x371   : > { %v2287_v31 = vsel %vm2286_vm15, %v4698_v14, %v2285_v21  ;;  %v2407_v36 = vmul.f32 %v2991_v51, %v2391_v40  ;;  %v690_v47 = vsel %vm680_vm0, %v669_v44, 0.0  ;;  %v4761_v57 = vmul.f32 %v4684_v16, %v1790_v54 }
 0x372   : > { %v2014_v20 = vsel %vm2012_vm1, %v2013_v60, %v2011_v62  ;;  %v2289_v32 = vand.u32 2147483648, %v4698_v14  ;;  %v670_v56 = vmax.f32 %v4563_v15, 0.0  ;;  %v689_v39 = vadd.f32 %v688_v43, %v4512_v13  ;;  %v2180_v42 = vpop.xlane.xlu0 %2179  ;;  %v923_v18 = vpop.xlane.xlu1 %922 }
 0x373   : > { %vm2288_vm2 = vcmp.eq.f32.partialorder %v4698_v14, 0.0  ;;  %v2423_v41 = vadd.f32 %v2407_v36, %v4522_v9  ;;  %v4770_v22 = vmax.f32 %v2180_v42, 1e-12  ;;  %v2093_v29 = vsub.f32 0.07, %v2007_v7 }
 0x374   : > { %v2290_v16 = vsel %vm2288_vm2, %v2289_v32, %v2287_v31  ;;  %v2424_v54 = vadd.f32 %v2408_v59, %v4525_v8  ;;  %v691_v12 = vadd.f32 %v690_v47, %v689_v39  ;;  %v671_v37 = vmax.f32 %v4565_v46, 0.0 }
 0x375   : > { %v2446_v5 = vsel %vm680_vm0, %v2423_v41, 0.0  ;;  %v979_v15 = vmin.f32 %v4500_v26, %v978_v23  ;;  %v672_v13 = vmax.f32 %v4567_v61, 0.0  ;;  %2998 = vrsqrt.f32 %v4770_v22 }
 0x376   : > { %v2329_v14 = vsub.f32 0.0, %v4770_v22  ;;  %v2094_v9 = vsub.f32 0.07, %v2014_v20  ;;  %v2993_v34 = vpop.eup %2992  ;;  %v940_v10 = vmax.f32 %v4742_v52, 0.0  ;;  %v939_v17 = vmax.f32 %v917_v49, 0.0  ;;  %v2186_v6 = vpop.xlane.xlu0 %2185 }
 0x377   : > { %v926_v8 = vpop.xlane.xlu1 %925  ;;  %v2394_v11 = vsub.f32 0.07, %v2290_v16  ;;  %v2447_v63 = vadd.f32 %v2446_v5, %v2445_v24  ;;  %v2995_v46 = vpop.eup %2994  ;;  %v692_v19 = vsel %vm680_vm0, %v670_v56, 0.0  ;;  %v4781_v26 = vmax.f32 %v2186_v6, 1e-12 }
 0x378   : > { %v2345_v38 = vmul.f32 1111.1111, %v2329_v14  ;;  %v2448_v61 = vsel %vm680_vm0, %v2424_v54, 0.0  ;;  %v693_v0 = vadd.f32 %v692_v19, %v691_v12  ;;  %v694_v45 = vsel %vm680_vm0, %v671_v37, 0.0 }
 0x379   : > { %v2997_v3 = vpop.eup %2996  ;;  %v4785_v58 = vadd.f32 %v2448_v61, %v2447_v63  ;;  %v980_v2 = vrot.slane %v979_v15, 2  ;;  %v941_v21 = vmax.f32 %v923_v18, 0.0  ;;  %3000 = vrsqrt.f32 %v4781_v26 }
 0x37a   : > { %v2371_v33 = vmul.f32 1.442695, %v2345_v38  ;;  %v2332_v52 = vsub.f32 0.0, %v4781_v26  ;;  %v4790_v35 = vsel %vm680_vm0, %v672_v13, 0.0  ;;  %v948_v53 = vsel %vm680_vm0, %v940_v10, 0.0  ;;  %v2184_v40 = vpop.xlane.xlu0 %2183 }
 0x37b   : > { %v947_v44 = vsel %vm680_vm0, %v939_v17, 0.0  ;;  %v929_v4 = vpop.xlane.xlu1 %928  ;;  %v2410_v49 = vmul.f32 %v2995_v46, %v2394_v11  ;;  %v942_v62 = vmax.f32 %v926_v8, 0.0  ;;  %v4794_v60 = vmax.f32 %v2184_v40, 1e-12 }
 0x37c   : > { %3002 = vpow2.f32 %v2371_v33  ;;  %v2348_v50 = vmul.f32 1111.1111, %v2332_v52  ;;  %v4796_v51 = vadd.f32 %v694_v45, %v693_v0  ;;  %v4798_v43 = vmul.f32 %v2993_v34, %v2093_v29 }
 0x37d   : > { %v4800_v59 = vmul.f32 %v2997_v3, %v2094_v9  ;;  %v4802_v24 = vmin.f32 %v979_v15, %v980_v2  ;;  %v950_v23 = vsel %vm680_vm0, %v941_v21, 0.0  ;;  %3004 = vrsqrt.f32 %v4794_v60 }
 0x37e   : > { %v2331_v7 = vsub.f32 0.0, %v4794_v60  ;;  %v943_v31 = vmax.f32 %v929_v4, 0.0  ;;  %v673_v36 = vmax.f32 %v4727_v27, 0.0  ;;  %v949_v47 = vadd.f32 %v948_v53, %v947_v44  ;;  %v2190_v20 = vpop.xlane.xlu0 %2189 }
 0x37f   : > { %v932_v32 = vpop.xlane.xlu1 %931  ;;  %v2377_v56 = vmul.f32 1.442695, %v2348_v50  ;;  %v4809_v39 = vadd.f32 %v2410_v49, %v4531_v25  ;;  %v2999_v42 = vpop.eup %2998  ;;  %v952_v18 = vsel %vm680_vm0, %v942_v62, 0.0  ;;  %v4812_v29 = vmax.f32 %v2190_v20, 1e-12 }
 0x380   : > { %v2347_v41 = vmul.f32 1111.1111, %v2331_v7  ;;  %v944_v16 = vmax.f32 %v932_v32, 0.0  ;;  %v2278_v54 = vmul.f32 %v2999_v42, %v4770_v22  ;;  %vm2279_vm3 = vcmp.eq.f32.partialorder %v4770_v22, inf }
 0x381   : > { %v951_v12 = vadd.f32 %v950_v23, %v949_v47  ;;  %3006 = vpow2.f32 %v2377_v56  ;;  %v2282_v37 = vand.u32 2147483648, %v4770_v22  ;;  %v954_v15 = vsel %vm680_vm0, %v943_v31, 0.0 }
 0x382   : > { %v2375_v5 = vmul.f32 1.442695, %v2347_v41  ;;  %3008 = vrsqrt.f32 %v4812_v29  ;;  %v956_v13 = vsel %vm680_vm0, %v944_v16, 0.0  ;;  %v2188_v14 = vpop.xlane.xlu0 %2187  ;;  %v2280_v34 = vsel %vm2279_vm3, %v4770_v22, %v2278_v54 }
 0x383   : > { %v953_v25 = vadd.f32 %v952_v18, %v951_v12  ;;  %v935_v9 = vpop.xlane.xlu1 %934  ;;  %vm2281_vm4 = vcmp.eq.f32.partialorder %v4770_v22, 0.0  ;;  %v3001_v10 = vpop.eup %3000  ;;  %v4822_v17 = vmax.f32 %v2188_v14, 1e-12  ;;  %v2334_v11 = vsub.f32 0.0, %v4812_v29 }
 0x384   : > { %v945_v6 = vmax.f32 %v935_v9, 0.0  ;;  %v2283_v8 = vsel %vm2281_vm4, %v2282_v37, %v2280_v34  ;;  %v2299_v46 = vmul.f32 %v3001_v10, %v4781_v26  ;;  %3010 = vpow2.f32 %v2375_v5 }
 0x385   : > { %v955_v63 = vadd.f32 %v954_v15, %v953_v25  ;;  %v2393_v19 = vsub.f32 0.07, %v2283_v8  ;;  %3012 = vrsqrt.f32 %v4822_v17  ;;  %vm2300_vm5 = vcmp.eq.f32.partialorder %v4781_v26, inf }
 0x386   : > { %v3003_v38 = vpop.eup %3002  ;;  %v958_v61 = vsel %vm680_vm0, %v945_v6, 0.0  ;;  %v2303_v22 = vand.u32 2147483648, %v4781_v26  ;;  %v653_v0 = vpop.xlane.xlu0 %652  ;;  %v2301_v2 = vsel %vm2300_vm5, %v4781_v26, %v2299_v46  ;;  %vm2302_vm6 = vcmp.eq.f32.partialorder %v4781_v26, 0.0 }
 0x387   : > { %v957_v3 = vadd.f32 %v956_v13, %v955_v63  ;;  %v938_v45 = vpop.xlane.xlu1 %937  ;;  %v2333_v33 = vsub.f32 0.0, %v4822_v17  ;;  %v3005_v21 = vpop.eup %3004  ;;  %vm2293_vm7 = vcmp.eq.f32.partialorder %v4794_v60, inf  ;;  %v2350_v44 = vmul.f32 1111.1111, %v2334_v11 }
 0x388   : > { %v946_v52 = vmax.f32 %v938_v45, 0.0  ;;  %v2304_v53 = vsel %vm2302_vm6, %v2303_v22, %v2301_v2  ;;  %v2292_v4 = vmul.f32 %v3005_v21, %v4794_v60  ;;  %v2409_v62 = vmul.f32 %v3003_v38, %v2393_v19 }
 0x389   : > { %v959_v40 = vadd.f32 %v958_v61, %v957_v3  ;;  %v2349_v49 = vmul.f32 1111.1111, %v2333_v33  ;;  %v2296_v23 = vand.u32 2147483648, %v4794_v60  ;;  %v2381_v7 = vmul.f32 1.442695, %v2350_v44 }
 0x38a   : > { %v960_v50 = vsel %vm680_vm0, %v946_v52, 0.0  ;;  %v2396_v31 = vsub.f32 0.07, %v2304_v53  ;;  %v655_v20 = vpop.xlane.xlu0 %654  ;;  %v2294_v32 = vsel %vm2293_vm7, %v4794_v60, %v2292_v4  ;;  %vm2295_vm8 = vcmp.eq.f32.partialorder %v4794_v60, 0.0 }
 0x38b   : > { %v3007_v26 = vpop.eup %3006  ;;  %v961_v47 = vadd.f32 %v960_v50, %v959_v40  ;;  %v2379_v56 = vmul.f32 1.442695, %v2349_v49  ;;  %v697_v18 = vadd.f32 %v4790_v35, %v4796_v51  ;;  %v674_v41 = vmax.f32 %v653_v0, 0.0 }
 0x38c   : > { %v3009_v42 = vpop.eup %3008  ;;  %v2297_v16 = vsel %vm2295_vm8, %v2296_v23, %v2294_v32  ;;  %3014 = vpow2.f32 %v2381_v7  ;;  %v2425_v37 = vadd.f32 %v2409_v62, %v4528_v55  ;;  %v698_v5 = vsel %vm680_vm0, %v673_v36, 0.0 }
 0x38d   : > { %962 = vadd.xlane.f32.xlu1 %v961_v47  ;;  %v2313_v54 = vmul.f32 %v3009_v42, %v4812_v29  ;;  %3016 = vpow2.f32 %v2379_v56  ;;  %v2395_v12 = vsub.f32 0.07, %v2297_v16  ;;  %vm2314_vm9 = vcmp.eq.f32.partialorder %v4812_v29, inf }
 0x38e   : > { %v2317_v60 = vand.u32 2147483648, %v4812_v29  ;;  %v2412_v15 = vmul.f32 %v3007_v26, %v2396_v31  ;;  %v3011_v35 = vpop.eup %3010  ;;  %v657_v51 = vpop.xlane.xlu0 %656  ;;  %vm2316_vm10 = vcmp.eq.f32.partialorder %v4812_v29, 0.0  ;;  %v2450_v13 = vsel %vm680_vm0, %v2425_v37, 0.0 }
 0x38f   : > { %v2315_v25 = vsel %vm2314_vm9, %v4812_v29, %v2313_v54  ;;  %v2452_v55 = vsel %vm680_vm0, %v4809_v39, 0.0  ;;  %v3013_v14 = vpop.eup %3012  ;;  %v675_v27 = vmax.f32 %v655_v20, 0.0  ;;  %v2411_v36 = vmul.f32 %v3011_v35, %v2395_v12 }
 0x390   : > { %v2318_v9 = vsel %vm2316_vm10, %v2317_v60, %v2315_v25  ;;  %v2451_v34 = vadd.f32 %v2450_v13, %v4785_v58  ;;  %v700_v10 = vsel %vm680_vm0, %v674_v41, 0.0  ;;  %v2306_v6 = vmul.f32 %v3013_v14, %v4822_v17 }
 0x391   : > { %vm2307_vm11 = vcmp.eq.f32.partialorder %v4822_v17, inf  ;;  %v2310_v8 = vand.u32 2147483648, %v4822_v17  ;;  %v676_v29 = vmax.f32 %v657_v51, 0.0  ;;  %v2427_v11 = vadd.f32 %v2411_v36, %v4534_v1 }
 0x392   : > { %v2428_v63 = vadd.f32 %v2412_v15, %v4540_v48  ;;  %v2453_v39 = vadd.f32 %v2452_v55, %v2451_v34  ;;  %v699_v46 = vadd.f32 %v698_v5, %v697_v18  ;;  %v659_v19 = vpop.xlane.xlu0 %658  ;;  %v2308_v38 = vsel %vm2307_vm11, %v4822_v17, %v2306_v6 }
 0x393   : > { %vm2309_vm12 = vcmp.eq.f32.partialorder %v4822_v17, 0.0  ;;  %v2398_v58 = vsub.f32 0.07, %v2318_v9  ;;  %v702_v61 = vsel %vm680_vm0, %v675_v27, 0.0  ;;  %v677_v22 = vmax.f32 %v659_v19, 0.0 }
 0x394   : > { %v2311_v3 = vsel %vm2309_vm12, %v2310_v8, %v2308_v38  ;;  %v2454_v0 = vsel %vm680_vm0, %v2427_v11, 0.0  ;;  %v701_v45 = vadd.f32 %v700_v10, %v699_v46  ;;  %v1822_v1 = vadd.f32 %v4761_v57, %v4682_v30 }
 0x395   : > { %v2397_v2 = vsub.f32 0.07, %v2311_v3  ;;  %v2455_v48 = vadd.f32 %v2454_v0, %v2453_v39  ;;  %v704_v21 = vsel %vm680_vm0, %v676_v29, 0.0  ;;  %v2125_v52 = vadd.f32 %v4798_v43, %v4689_v28  ;;  %v5064_v0 = vld [vmem:[#allocation4_spill] sm:$0xff] }
 0x396   : > { %v3015_v33 = vpop.eup %3014  ;;  %v2456_v17 = vsel %vm680_vm0, %v2428_v63, 0.0  ;;  %v703_v44 = vadd.f32 %v702_v61, %v701_v45  ;;  %v661_v40 = vpop.xlane.xlu0 %660  ;;  %v2126_v4 = vadd.f32 %v4800_v59, %v1822_v1  ;;  %v706_v50 = vsel %vm680_vm0, %v677_v22, 0.0 }
 0x397   : > { %v3017_v53 = vpop.eup %3016  ;;  %v2414_v49 = vmul.f32 %v3015_v33, %v2398_v58  ;;  %v2457_v62 = vadd.f32 %v2456_v17, %v2455_v48  ;;  %v678_v30 = vmax.f32 %v661_v40, 0.0  ;;  %v982_v23 = vrot.slane %v4802_v24, 1 }
 0x398   : > { %v2413_v57 = vmul.f32 %v3017_v53, %v2397_v2  ;;  %v705_v7 = vadd.f32 %v704_v21, %v703_v44  ;;  %vm985_vm1 = vcmask 516096   ;;  %vm2473_vm13 = vcmp.eq.s32.totalorder %v5064_v0, 2 }
 0x399   : > { %v708_v31 = vsel %vm680_vm0, %v678_v30, 0.0  ;;  %v2430_v28 = vadd.f32 %v2414_v49, %v2126_v4  ;;  %v983_v59 = vmin.f32 %v4802_v24, %v982_v23  ;;  %vm2472_vm14 = vcmp.eq.s32.totalorder %v5064_v0, 1 }
 0x39a   : > { %v2429_v26 = vadd.f32 %v2413_v57, %v2125_v52  ;;  %v707_v43 = vadd.f32 %v706_v50, %v705_v7  ;;  %v663_v47 = vpop.xlane.xlu0 %662  ;;  %vm2471_vm15 = vcmp.eq.s32.totalorder %v5064_v0, 0 }
 0x39b   : > { %v679_v20 = vmax.f32 %v663_v47, 0.0  ;;  %v2460_v41 = vsel %vm680_vm0, %v2430_v28, 0.0  ;;  %v984_v12 = vmax.f32 %v983_v59, 0.0 }
 0x39c   : > { %v2458_v32 = vsel %vm680_vm0, %v2429_v26, 0.0  ;;  %v709_v56 = vadd.f32 %v708_v31, %v707_v43 }
 0x39d   : > { %v2459_v42 = vadd.f32 %v2458_v32, %v2457_v62  ;;  %v710_v18 = vsel %vm680_vm0, %v679_v20, 0.0  ;;  %v986_v37 = vsel %vm985_vm1, %v984_v12, 0.0  ;;  %vm2474_vm0 = vcmp.eq.s32.totalorder %v5064_v0, 3 }
 0x39e   : > { %v711_v16 = vadd.f32 %v710_v18, %v709_v56 }
 0x39f   : > { %v2461_v54 = vadd.f32 %v2460_v41, %v2459_v42 }
 0x3a0   : > { %712 = vadd.xlane.f32.xlu0 %v711_v16 }
 0x3a1   : > { %2462 = vadd.xlane.f32.xlu1 %v2461_v54 }
 0x3a4   : > { %987 = vadd.xlane.f32.xlu0 %v986_v37 }
 0x41a   : > { %v963_v5 = vpop.xlane.xlu1 %962 }
 0x41b   : > { %v964_v60 = vrot.slane %v963_v5, 4 }
 0x41d   : > { %v965_v15 = vadd.f32 %v964_v60, %v963_v5 }
 0x41f   : > { %v966_v35 = vrot.slane %v965_v15, 2 }
 0x421   : > { %v967_v9 = vadd.f32 %v966_v35, %v965_v15 }
 0x423   : > { %v968_v11 = vrot.slane %v967_v9, 1 }
 0x425   : > { %v969_v38 = vadd.f32 %v968_v11, %v967_v9 }
 0x42d   : > { %v713_v24 = vpop.xlane.xlu0 %712 }
 0x42e   : > { %v2463_v51 = vpop.xlane.xlu1 %2462  ;;  %v714_v13 = vrot.slane %v713_v24, 4 }
 0x42f   : > { %v2464_v25 = vrot.slane %v2463_v51, 4 }
 0x430   : > { %v715_v14 = vadd.f32 %v714_v13, %v713_v24 }
 0x431   : > { %v2465_v55 = vadd.f32 %v2464_v25, %v2463_v51  ;;  %v988_v27 = vpop.xlane.xlu0 %987 }
 0x432   : > { %v716_v34 = vrot.slane %v715_v14, 2  ;;  %v989_v10 = vrot.slane %v988_v27, 4 }
 0x433   : > { %v2466_v36 = vrot.slane %v2465_v55, 2 }
 0x434   : > { %v990_v6 = vadd.f32 %v989_v10, %v988_v27  ;;  %v717_v8 = vadd.f32 %v716_v34, %v715_v14 }
 0x435   : > { %v2467_v29 = vadd.f32 %v2466_v36, %v2465_v55 }
 0x436   : > { %v991_v63 = vrot.slane %v990_v6, 2  ;;  %v718_v39 = vrot.slane %v717_v8, 1 }
 0x437   : > { %v2468_v58 = vrot.slane %v2467_v29, 1 }
 0x438   : > { %v992_v46 = vadd.f32 %v991_v63, %v990_v6  ;;  %v719_v19 = vadd.f32 %v718_v39, %v717_v8 }
 0x439   : > { %v2469_v3 = vadd.f32 %v2468_v58, %v2467_v29 }
 0x43a   : > { %2746 = vpush %v719_v19  ;;  %v993_v61 = vrot.slane %v992_v46, 1 }
 0x43b   : > { %2748 = vpush %v969_v38 }
 0x43c   : > { %v994_v22 = vadd.f32 %v993_v61, %v992_v46 }
 0x43e   : > { %2750 = vpush %v994_v22 }
 0x43f   : > { %2752 = vpush %v2469_v3 }
 0x46b   : > { %s2747_s13 = spop %2746 }
 0x46c   : > { %s2749_s14 = spop %2748  ;;  %v2481_v21 = vstv %s2747_s13 }
 0x46d   : > { %v2479_v48 = vstv %s2749_s14 }
 0x46f   : > { %s2751_s15 = spop %2750 }
 0x470   : > { %v2477_v45 = vstv %s2751_s15  ;;  %s2753_s16 = spop %2752 }
 0x471   : > { %v2475_v1 = vstv %s2753_s16 }
 0x472   : > { %v2476_v2 = vsel %vm2474_vm0, %v2475_v1, 0.0 }
 0x473   : > { %v2478_v33 = vsel %vm2473_vm13, %v2477_v45, %v2476_v2 }
 0x474   : > { %v2480_v52 = vsel %vm2472_vm14, %v2479_v48, %v2478_v33 }
 0x475   : > { %v2482_v17 = vsel %vm2471_vm15, %v2481_v21, %v2480_v52 }
 0x476   : > { %2483 = vst [vmem:[%s291_s21] sm:$0x1] %v2482_v17 }
 0x477 PF: > { %s15_s18 = sadd.s32 1, %s3028_s18  }
 0x478   : > { %p12_p4 = scmp.ge.s32.totalorder %s15_s18, 4  }
 0x47a   :  { %14 = sbr.rel (!%p12_p4) target bundleno = 1 (0x1), region = 82 }

</bundles_post_ra>
